<compile_context>
chip_gen: v7x
topology: tpu7x:2x2x1
jax: 0.10.0
libtpu: 0.0.40
codegen_flags: <defaults>
</compile_context>

<pallas_src>
import math
from functools import partial

import jax
import jax.numpy as jnp
from jax.experimental import pallas as pl
from jax.experimental.pallas import tpu as pltpu


# ---------------------------------------------------------------------------
# Fused Pallas kernel: all layers + all time steps + FC head in one call
# ---------------------------------------------------------------------------
def _build_gru_kernel(num_layers, T, B, H, out_dtype):
    """Kernel closed over static sizes.

    Ref layout (inputs, output, scratch):
      x_ref                     : (T*B, D)  time-major input, flattened, f32
      per layer l (10 refs):
        w_ir, w_iz, w_in        : (Din, H)  per-gate input weights
        w_hr, w_hz, w_hn        : (H,   H)  per-gate hidden weights
        b_r, b_z                : (1,   H)  b_i* + b_h* folded
        b_in, b_hn              : (1,   H)  kept separate (b_hn scaled by r)
      fcw_ref                   : (1, H)
      fcb_ref                   : (1, 1)
      out_ref                   : (B, 1)
      gir0_s, giz0_s, gin0_s    : (T*B, H)  VMEM scratch, precomputed layer-0
                                            input projections (bias folded)
    """
    TB = T * B
    n_w = 10

    def kernel(*refs):
        x_ref = refs[0]
        layer_refs = [refs[1 + l * n_w: 1 + (l + 1) * n_w]
                      for l in range(num_layers)]
        fcw_ref = refs[1 + num_layers * n_w]
        fcb_ref = refs[2 + num_layers * n_w]
        out_ref = refs[3 + num_layers * n_w]
        gir0_s, giz0_s, gin0_s = refs[4 + num_layers * n_w:]

        f32 = jnp.float32
        (w_ir0, w_iz0, w_in0, w_hr0, w_hz0, w_hn0,
         b_r0, b_z0, b_in0, b_hn0) = layer_refs[0]

        # ---- Hoisted layer-0 input projections over ALL time steps --------
        # One M=T*B MXU pass per gate, completely off the recurrence critical
        # path; r/z/n biases folded here so the loop does no layer-0 bias adds.
        x_all = x_ref[...]                                        # (T*B, D)
        gir0_s[...] = (jnp.dot(x_all, w_ir0[...], preferred_element_type=f32)
                       + jnp.broadcast_to(b_r0[...], (TB, H)))
        giz0_s[...] = (jnp.dot(x_all, w_iz0[...], preferred_element_type=f32)
                       + jnp.broadcast_to(b_z0[...], (TB, H)))
        gin0_s[...] = (jnp.dot(x_all, w_in0[...], preferred_element_type=f32)
                       + jnp.broadcast_to(b_in0[...], (TB, H)))

        # ---- Hoisted (B, H) bias broadcasts (JAX does not CSE broadcasts) --
        b_hn0_b = jnp.broadcast_to(b_hn0[...], (B, H))
        upper_b = []
        for l in range(1, num_layers):
            (_, _, _, _, _, _, b_r, b_z, b_in, b_hn) = layer_refs[l]
            upper_b.append((jnp.broadcast_to(b_r[...], (B, H)),
                            jnp.broadcast_to(b_z[...], (B, H)),
                            jnp.broadcast_to(b_in[...], (B, H)),
                            jnp.broadcast_to(b_hn[...], (B, H))))

        h = [jnp.zeros((B, H), f32) for _ in range(num_layers)]

        # Recurrence: T is small & static -> straight-line unroll with static
        # (sublane-aligned, B == 8) slices into the precomputed projections.
        for t in range(T):
            lo = t * B

            # ------------------------- layer 0 -----------------------------
            h0 = h[0]
            # Per-gate (H-wide) outputs land at lane 0 -> no XLU relayouts.
            ghr = jnp.dot(h0, w_hr0[...], preferred_element_type=f32)
            ghz = jnp.dot(h0, w_hz0[...], preferred_element_type=f32)
            ghn = jnp.dot(h0, w_hn0[...], preferred_element_type=f32) + b_hn0_b
            r = jax.nn.sigmoid(gir0_s[lo:lo + B, :] + ghr)
            z = jax.nn.sigmoid(giz0_s[lo:lo + B, :] + ghz)
            n = jnp.tanh(gin0_s[lo:lo + B, :] + r * ghn)
            h0 = n + z * (h0 - n)                 # == (1-z)*n + z*h0
            h[0] = h0

            # ----------------------- layers >= 1 ---------------------------
            inp = h0
            for l in range(1, num_layers):
                (w_ir, w_iz, w_in, w_hr, w_hz, w_hn, *_rest) = layer_refs[l]
                b_r_b, b_z_b, b_in_b, b_hn_b = upper_b[l - 1]
                hl = h[l]
                # Off this step's critical path: depend only on h_l(t-1), so
                # the scheduler overlaps them with layer l-1's gate math.
                # Biases folded here (also off-chain).
                ghr = jnp.dot(hl, w_hr[...], preferred_element_type=f32) + b_r_b
                ghz = jnp.dot(hl, w_hz[...], preferred_element_type=f32) + b_z_b
                ghn = jnp.dot(hl, w_hn[...], preferred_element_type=f32) + b_hn_b
                # On-chain: projection of the freshly computed lower-layer h.
                gir = jnp.dot(inp, w_ir[...], preferred_element_type=f32)
                giz = jnp.dot(inp, w_iz[...], preferred_element_type=f32)
                gin = jnp.dot(inp, w_in[...], preferred_element_type=f32) + b_in_b
                r = jax.nn.sigmoid(gir + ghr)
                z = jax.nn.sigmoid(giz + ghz)
                n = jnp.tanh(gin + r * ghn)
                hl = n + z * (hl - n)
                h[l] = hl
                inp = hl

        # ---- FC head: VPU multiply + lane reduce (no trailing MXU push) ----
        fcw_b = jnp.broadcast_to(fcw_ref[...], (B, H))
        out = jnp.sum(h[-1] * fcw_b, axis=-1, keepdims=True) + fcb_ref[...]
        out_ref[...] = out.astype(out_dtype)      # (B_pad, 1) masked vst, one-off

    return kernel


# ---------------------------------------------------------------------------
# One-time parameter preparation (keep OUT of the per-call hot path)
# ---------------------------------------------------------------------------
def prepare_gru_params(layer_params, fc_w, fc_b):
    """Transpose / split per gate / fold biases / cast, once.

    layer_params : list of (w_ih (3H, Din), w_hh (3H, H), b_ih (3H,), b_hh (3H,))
                   in PyTorch layout, gate order (r, z, n).
    Returns a flat tuple of arrays matching the kernel's ref layout.
    """
    args = []
    for (w_ih, w_hh, b_ih, b_hh) in layer_params:
        H = w_hh.shape[1]
        w_ih = jnp.asarray(w_ih, jnp.float32)
        w_hh = jnp.asarray(w_hh, jnp.float32)
        b_ih = jnp.asarray(b_ih, jnp.float32)
        b_hh = jnp.asarray(b_hh, jnp.float32)
        # Per-gate split + transpose -> each gate result lane-aligned at 0.
        w_ir = w_ih[0 * H:1 * H].T
        w_iz = w_ih[1 * H:2 * H].T
        w_in = w_ih[2 * H:3 * H].T
        w_hr = w_hh[0 * H:1 * H].T
        w_hz = w_hh[1 * H:2 * H].T
        w_hn = w_hh[2 * H:3 * H].T
        b_r = (b_ih[0 * H:1 * H] + b_hh[0 * H:1 * H]).reshape(1, H)
        b_z = (b_ih[1 * H:2 * H] + b_hh[1 * H:2 * H]).reshape(1, H)
        b_in = b_ih[2 * H:3 * H].reshape(1, H)
        b_hn = b_hh[2 * H:3 * H].reshape(1, H)   # stays separate: scaled by r
        args += [w_ir, w_iz, w_in, w_hr, w_hz, w_hn, b_r, b_z, b_in, b_hn]
    args.append(jnp.asarray(fc_w, jnp.float32).reshape(1, -1))   # (1, H)
    args.append(jnp.asarray(fc_b, jnp.float32).reshape(1, 1))    # (1, 1)
    return tuple(args)


# ---------------------------------------------------------------------------
# Forward wrapper (hot path: only x transpose / pad / reshape + pallas_call)
# ---------------------------------------------------------------------------
@partial(jax.jit, static_argnames=("num_layers", "hidden"))
def gru_forward_pallas(x_btd, prepared, *, num_layers, hidden):
    """Equivalent of GRU.forward (PyTorch module), eval mode.  Returns (B, 1)."""
    B, T, D = x_btd.shape
    H = hidden

    # Pad batch up to the f32 sublane count (8) so VPU/EUP ops run on fuller
    # vregs; padded rows are sliced away below.
    B_pad = max(8, ((B + 7) // 8) * 8)
    x_tbd = jnp.transpose(x_btd, (1, 0, 2)).astype(jnp.float32)   # (T, B, D)
    if B_pad != B:
        x_tbd = jnp.pad(x_tbd, ((0, 0), (0, B_pad - B), (0, 0)))
    x_flat = x_tbd.reshape(T * B_pad, D)                          # (T*B, D)

    kernel = _build_gru_kernel(num_layers, T, B_pad, H, jnp.float32)
    # Single grid-free invocation: every operand is one full-array VMEM block;
    # total resident footprint at these shapes is a few tens of KiB.
    out = pl.pallas_call(
        kernel,
        out_shape=jax.ShapeDtypeStruct((B_pad, 1), jnp.float32),
        scratch_shapes=[pltpu.VMEM((T * B_pad, H), jnp.float32)
                        for _ in range(3)],
    )(x_flat, *prepared)
    return out[:B]


# ---------------------------------------------------------------------------
# Pure-JAX reference (mirrors torch.nn.GRU equations, gate order r, z, n)
# ---------------------------------------------------------------------------
def gru_forward_ref(x_btd, layer_params, fc_w, fc_b):
    B, T, _ = x_btd.shape
    h_seq = x_btd.astype(jnp.float32)
    for (w_ih, w_hh, b_ih, b_hh) in layer_params:
        H = w_hh.shape[1]
        h = jnp.zeros((B, H), jnp.float32)
        outs = []
        for t in range(T):
            xt = h_seq[:, t, :]
            gi = xt @ w_ih.T + b_ih
            gh = h @ w_hh.T + b_hh
            r = jax.nn.sigmoid(gi[:, :H] + gh[:, :H])
            z = jax.nn.sigmoid(gi[:, H:2 * H] + gh[:, H:2 * H])
            n = jnp.tanh(gi[:, 2 * H:] + r * gh[:, 2 * H:])
            h = (1.0 - z) * n + z * h
            outs.append(h)
        h_seq = jnp.stack(outs, axis=1)
    return h_seq[:, -1, :] @ fc_w.T + fc_b


# ---------------------------------------------------------------------------
# Main
# ---------------------------------------------------------------------------
if __name__ == "__main__":
    B, T = 2, 8            # batch, sequence length
    D_in = 8               # input_size
    H = 32                 # hidden_layer_size
    num_layers = 2

    key = jax.random.PRNGKey(0)
    bound = 1.0 / math.sqrt(H)   # PyTorch nn.GRU init range

    layer_params = []
    d = D_in
    for _layer in range(num_layers):
        key, k1, k2, k3, k4 = jax.random.split(key, 5)
        w_ih = jax.random.uniform(k1, (3 * H, d), jnp.float32, -bound, bound)
        w_hh = jax.random.uniform(k2, (3 * H, H), jnp.float32, -bound, bound)
        b_ih = jax.random.uniform(k3, (3 * H,), jnp.float32, -bound, bound)
        b_hh = jax.random.uniform(k4, (3 * H,), jnp.float32, -bound, bound)
        layer_params.append((w_ih, w_hh, b_ih, b_hh))
        d = H

    key, k5, k6, kx = jax.random.split(key, 4)
    fc_w = jax.random.uniform(k5, (1, H), jnp.float32, -bound, bound)
    fc_b = jax.random.uniform(k6, (1,), jnp.float32, -bound, bound)

    x = jax.random.normal(kx, (B, T, D_in), jnp.float32)

    prepared = prepare_gru_params(layer_params, fc_w, fc_b)   # one-time prep

    out = gru_forward_pallas(x, prepared, num_layers=num_layers, hidden=H)
    out = jax.block_until_ready(out)

    ref = gru_forward_ref(x, layer_params, fc_w, fc_b)
    assert out.shape == (B, 1), out.shape
    assert jnp.allclose(out, ref, atol=1e-4, rtol=1e-4), (out, ref)

    print("KERNEL_OK")
</pallas_src>

<mosaic_0001>
module attributes {stable_mosaic.version = 11 : i64} {
  func.func @kernel(%arg0: memref<64x8xf32, #tpu.memory_space<vmem>>, %arg1: memref<8x32xf32, #tpu.memory_space<vmem>>, %arg2: memref<8x32xf32, #tpu.memory_space<vmem>>, %arg3: memref<8x32xf32, #tpu.memory_space<vmem>>, %arg4: memref<32x32xf32, #tpu.memory_space<vmem>>, %arg5: memref<32x32xf32, #tpu.memory_space<vmem>>, %arg6: memref<32x32xf32, #tpu.memory_space<vmem>>, %arg7: memref<1x32xf32, #tpu.memory_space<vmem>>, %arg8: memref<1x32xf32, #tpu.memory_space<vmem>>, %arg9: memref<1x32xf32, #tpu.memory_space<vmem>>, %arg10: memref<1x32xf32, #tpu.memory_space<vmem>>, %arg11: memref<32x32xf32, #tpu.memory_space<vmem>>, %arg12: memref<32x32xf32, #tpu.memory_space<vmem>>, %arg13: memref<32x32xf32, #tpu.memory_space<vmem>>, %arg14: memref<32x32xf32, #tpu.memory_space<vmem>>, %arg15: memref<32x32xf32, #tpu.memory_space<vmem>>, %arg16: memref<32x32xf32, #tpu.memory_space<vmem>>, %arg17: memref<1x32xf32, #tpu.memory_space<vmem>>, %arg18: memref<1x32xf32, #tpu.memory_space<vmem>>, %arg19: memref<1x32xf32, #tpu.memory_space<vmem>>, %arg20: memref<1x32xf32, #tpu.memory_space<vmem>>, %arg21: memref<1x32xf32, #tpu.memory_space<vmem>>, %arg22: memref<1x1xf32, #tpu.memory_space<vmem>>, %arg23: memref<8x1xf32, #tpu.memory_space<vmem>>, %arg24: memref<64x32xf32, #tpu.memory_space<vmem>>, %arg25: memref<64x32xf32, #tpu.memory_space<vmem>>, %arg26: memref<64x32xf32, #tpu.memory_space<vmem>>) attributes {dimension_semantics = [], scalar_prefetch = 0 : i64, scratch_operands = 3 : i64, tpu.core_type = #tpu.core_type<tc>} {
    %c0 = arith.constant 0 : index
    %c0_0 = arith.constant 0 : index
    %0 = vector.load %arg0[%c0, %c0_0] : memref<64x8xf32, #tpu.memory_space<vmem>>, vector<64x8xf32>
    %c0_1 = arith.constant 0 : index
    %c0_2 = arith.constant 0 : index
    %1 = vector.load %arg1[%c0_1, %c0_2] : memref<8x32xf32, #tpu.memory_space<vmem>>, vector<8x32xf32>
    %cst = arith.constant dense<0.000000e+00> : vector<64x32xf32>
    %2 = tpu.matmul %0, %1, %cst {dimension_numbers = #tpu.dot_dimension_numbers<[1], [0], [0], [1], [0, 0, 1, 1], [], []>} : vector<64x8xf32>, vector<8x32xf32>, vector<64x32xf32> -> vector<64x32xf32>
    %c0_3 = arith.constant 0 : index
    %c0_4 = arith.constant 0 : index
    %3 = vector.load %arg7[%c0_3, %c0_4] : memref<1x32xf32, #tpu.memory_space<vmem>>, vector<1x32xf32>
    %4 = vector.shape_cast %3 : vector<1x32xf32> to vector<1x32xf32>
    %5 = vector.broadcast %4 : vector<1x32xf32> to vector<64x32xf32>
    %6 = arith.addf %2, %5 : vector<64x32xf32>
    %c0_5 = arith.constant 0 : index
    %c0_6 = arith.constant 0 : index
    %7 = vector.load %arg24[%c0_5, %c0_6] : memref<64x32xf32, #tpu.memory_space<vmem>>, vector<64x32xf32>
    tpu.vector_store %arg24[%c0_5, %c0_6], %6 {strides = array<i32>} : memref<64x32xf32, #tpu.memory_space<vmem>>, vector<64x32xf32>,
    %c0_7 = arith.constant 0 : index
    %c0_8 = arith.constant 0 : index
    %8 = vector.load %arg2[%c0_7, %c0_8] : memref<8x32xf32, #tpu.memory_space<vmem>>, vector<8x32xf32>
    %cst_9 = arith.constant dense<0.000000e+00> : vector<64x32xf32>
    %9 = tpu.matmul %0, %8, %cst_9 {dimension_numbers = #tpu.dot_dimension_numbers<[1], [0], [0], [1], [0, 0, 1, 1], [], []>} : vector<64x8xf32>, vector<8x32xf32>, vector<64x32xf32> -> vector<64x32xf32>
    %c0_10 = arith.constant 0 : index
    %c0_11 = arith.constant 0 : index
    %10 = vector.load %arg8[%c0_10, %c0_11] : memref<1x32xf32, #tpu.memory_space<vmem>>, vector<1x32xf32>
    %11 = vector.shape_cast %10 : vector<1x32xf32> to vector<1x32xf32>
    %12 = vector.broadcast %11 : vector<1x32xf32> to vector<64x32xf32>
    %13 = arith.addf %9, %12 : vector<64x32xf32>
    %c0_12 = arith.constant 0 : index
    %c0_13 = arith.constant 0 : index
    %14 = vector.load %arg25[%c0_12, %c0_13] : memref<64x32xf32, #tpu.memory_space<vmem>>, vector<64x32xf32>
    tpu.vector_store %arg25[%c0_12, %c0_13], %13 {strides = array<i32>} : memref<64x32xf32, #tpu.memory_space<vmem>>, vector<64x32xf32>,
    %c0_14 = arith.constant 0 : index
    %c0_15 = arith.constant 0 : index
    %15 = vector.load %arg3[%c0_14, %c0_15] : memref<8x32xf32, #tpu.memory_space<vmem>>, vector<8x32xf32>
    %cst_16 = arith.constant dense<0.000000e+00> : vector<64x32xf32>
    %16 = tpu.matmul %0, %15, %cst_16 {dimension_numbers = #tpu.dot_dimension_numbers<[1], [0], [0], [1], [0, 0, 1, 1], [], []>} : vector<64x8xf32>, vector<8x32xf32>, vector<64x32xf32> -> vector<64x32xf32>
    %c0_17 = arith.constant 0 : index
    %c0_18 = arith.constant 0 : index
    %17 = vector.load %arg9[%c0_17, %c0_18] : memref<1x32xf32, #tpu.memory_space<vmem>>, vector<1x32xf32>
    %18 = vector.shape_cast %17 : vector<1x32xf32> to vector<1x32xf32>
    %19 = vector.broadcast %18 : vector<1x32xf32> to vector<64x32xf32>
    %20 = arith.addf %16, %19 : vector<64x32xf32>
    %c0_19 = arith.constant 0 : index
    %c0_20 = arith.constant 0 : index
    %21 = vector.load %arg26[%c0_19, %c0_20] : memref<64x32xf32, #tpu.memory_space<vmem>>, vector<64x32xf32>
    tpu.vector_store %arg26[%c0_19, %c0_20], %20 {strides = array<i32>} : memref<64x32xf32, #tpu.memory_space<vmem>>, vector<64x32xf32>,
    %c0_21 = arith.constant 0 : index
    %c0_22 = arith.constant 0 : index
    %22 = vector.load %arg10[%c0_21, %c0_22] : memref<1x32xf32, #tpu.memory_space<vmem>>, vector<1x32xf32>
    %23 = vector.shape_cast %22 : vector<1x32xf32> to vector<1x32xf32>
    %24 = vector.broadcast %23 : vector<1x32xf32> to vector<8x32xf32>
    %c0_23 = arith.constant 0 : index
    %c0_24 = arith.constant 0 : index
    %25 = vector.load %arg17[%c0_23, %c0_24] : memref<1x32xf32, #tpu.memory_space<vmem>>, vector<1x32xf32>
    %26 = vector.shape_cast %25 : vector<1x32xf32> to vector<1x32xf32>
    %27 = vector.broadcast %26 : vector<1x32xf32> to vector<8x32xf32>
    %c0_25 = arith.constant 0 : index
    %c0_26 = arith.constant 0 : index
    %28 = vector.load %arg18[%c0_25, %c0_26] : memref<1x32xf32, #tpu.memory_space<vmem>>, vector<1x32xf32>
    %29 = vector.shape_cast %28 : vector<1x32xf32> to vector<1x32xf32>
    %30 = vector.broadcast %29 : vector<1x32xf32> to vector<8x32xf32>
    %c0_27 = arith.constant 0 : index
    %c0_28 = arith.constant 0 : index
    %31 = vector.load %arg19[%c0_27, %c0_28] : memref<1x32xf32, #tpu.memory_space<vmem>>, vector<1x32xf32>
    %32 = vector.shape_cast %31 : vector<1x32xf32> to vector<1x32xf32>
    %33 = vector.broadcast %32 : vector<1x32xf32> to vector<8x32xf32>
    %c0_29 = arith.constant 0 : index
    %c0_30 = arith.constant 0 : index
    %34 = vector.load %arg20[%c0_29, %c0_30] : memref<1x32xf32, #tpu.memory_space<vmem>>, vector<1x32xf32>
    %35 = vector.shape_cast %34 : vector<1x32xf32> to vector<1x32xf32>
    %36 = vector.broadcast %35 : vector<1x32xf32> to vector<8x32xf32>
    %cst_31 = arith.constant 0.000000e+00 : f32
    %37 = vector.broadcast %cst_31 : f32 to vector<8x32xf32>
    %cst_32 = arith.constant 0.000000e+00 : f32
    %38 = vector.broadcast %cst_32 : f32 to vector<8x32xf32>
    %c0_33 = arith.constant 0 : index
    %c0_34 = arith.constant 0 : index
    %39 = vector.load %arg4[%c0_33, %c0_34] : memref<32x32xf32, #tpu.memory_space<vmem>>, vector<32x32xf32>
    %cst_35 = arith.constant dense<0.000000e+00> : vector<8x32xf32>
    %40 = tpu.matmul %37, %39, %cst_35 {dimension_numbers = #tpu.dot_dimension_numbers<[1], [0], [0], [1], [0, 0, 1, 1], [], []>} : vector<8x32xf32>, vector<32x32xf32>, vector<8x32xf32> -> vector<8x32xf32>
    %c0_36 = arith.constant 0 : index
    %c0_37 = arith.constant 0 : index
    %41 = vector.load %arg5[%c0_36, %c0_37] : memref<32x32xf32, #tpu.memory_space<vmem>>, vector<32x32xf32>
    %cst_38 = arith.constant dense<0.000000e+00> : vector<8x32xf32>
    %42 = tpu.matmul %37, %41, %cst_38 {dimension_numbers = #tpu.dot_dimension_numbers<[1], [0], [0], [1], [0, 0, 1, 1], [], []>} : vector<8x32xf32>, vector<32x32xf32>, vector<8x32xf32> -> vector<8x32xf32>
    %c0_39 = arith.constant 0 : index
    %c0_40 = arith.constant 0 : index
    %43 = vector.load %arg6[%c0_39, %c0_40] : memref<32x32xf32, #tpu.memory_space<vmem>>, vector<32x32xf32>
    %cst_41 = arith.constant dense<0.000000e+00> : vector<8x32xf32>
    %44 = tpu.matmul %37, %43, %cst_41 {dimension_numbers = #tpu.dot_dimension_numbers<[1], [0], [0], [1], [0, 0, 1, 1], [], []>} : vector<8x32xf32>, vector<32x32xf32>, vector<8x32xf32> -> vector<8x32xf32>
    %45 = arith.addf %44, %24 : vector<8x32xf32>
    %c0_42 = arith.constant 0 : index
    %c0_43 = arith.constant 0 : index
    %46 = vector.load %arg24[%c0_42, %c0_43] : memref<64x32xf32, #tpu.memory_space<vmem>>, vector<8x32xf32>
    %47 = arith.addf %46, %40 : vector<8x32xf32>
    %48 = arith.negf %47 : vector<8x32xf32>
    %49 = math.exp %48 : vector<8x32xf32>
    %cst_44 = arith.constant 1.000000e+00 : f32
    %50 = vector.broadcast %cst_44 : f32 to vector<8x32xf32>
    %51 = arith.addf %50, %49 : vector<8x32xf32>
    %52 = arith.divf %50, %51 : vector<8x32xf32>
    %c0_45 = arith.constant 0 : index
    %c0_46 = arith.constant 0 : index
    %53 = vector.load %arg25[%c0_45, %c0_46] : memref<64x32xf32, #tpu.memory_space<vmem>>, vector<8x32xf32>
    %54 = arith.addf %53, %42 : vector<8x32xf32>
    %55 = arith.negf %54 : vector<8x32xf32>
    %56 = math.exp %55 : vector<8x32xf32>
    %cst_47 = arith.constant 1.000000e+00 : f32
    %57 = vector.broadcast %cst_47 : f32 to vector<8x32xf32>
    %58 = arith.addf %57, %56 : vector<8x32xf32>
    %59 = arith.divf %57, %58 : vector<8x32xf32>
    %c0_48 = arith.constant 0 : index
    %c0_49 = arith.constant 0 : index
    %60 = vector.load %arg26[%c0_48, %c0_49] : memref<64x32xf32, #tpu.memory_space<vmem>>, vector<8x32xf32>
    %61 = arith.mulf %52, %45 : vector<8x32xf32>
    %62 = arith.addf %60, %61 : vector<8x32xf32>
    %63 = math.tanh %62 : vector<8x32xf32>
    %64 = arith.subf %37, %63 : vector<8x32xf32>
    %65 = arith.mulf %59, %64 : vector<8x32xf32>
    %66 = arith.addf %63, %65 : vector<8x32xf32>
    %c0_50 = arith.constant 0 : index
    %c0_51 = arith.constant 0 : index
    %67 = vector.load %arg14[%c0_50, %c0_51] : memref<32x32xf32, #tpu.memory_space<vmem>>, vector<32x32xf32>
    %cst_52 = arith.constant dense<0.000000e+00> : vector<8x32xf32>
    %68 = tpu.matmul %38, %67, %cst_52 {dimension_numbers = #tpu.dot_dimension_numbers<[1], [0], [0], [1], [0, 0, 1, 1], [], []>} : vector<8x32xf32>, vector<32x32xf32>, vector<8x32xf32> -> vector<8x32xf32>
    %69 = arith.addf %68, %27 : vector<8x32xf32>
    %c0_53 = arith.constant 0 : index
    %c0_54 = arith.constant 0 : index
    %70 = vector.load %arg15[%c0_53, %c0_54] : memref<32x32xf32, #tpu.memory_space<vmem>>, vector<32x32xf32>
    %cst_55 = arith.constant dense<0.000000e+00> : vector<8x32xf32>
    %71 = tpu.matmul %38, %70, %cst_55 {dimension_numbers = #tpu.dot_dimension_numbers<[1], [0], [0], [1], [0, 0, 1, 1], [], []>} : vector<8x32xf32>, vector<32x32xf32>, vector<8x32xf32> -> vector<8x32xf32>
    %72 = arith.addf %71, %30 : vector<8x32xf32>
    %c0_56 = arith.constant 0 : index
    %c0_57 = arith.constant 0 : index
    %73 = vector.load %arg16[%c0_56, %c0_57] : memref<32x32xf32, #tpu.memory_space<vmem>>, vector<32x32xf32>
    %cst_58 = arith.constant dense<0.000000e+00> : vector<8x32xf32>
    %74 = tpu.matmul %38, %73, %cst_58 {dimension_numbers = #tpu.dot_dimension_numbers<[1], [0], [0], [1], [0, 0, 1, 1], [], []>} : vector<8x32xf32>, vector<32x32xf32>, vector<8x32xf32> -> vector<8x32xf32>
    %75 = arith.addf %74, %36 : vector<8x32xf32>
    %c0_59 = arith.constant 0 : index
    %c0_60 = arith.constant 0 : index
    %76 = vector.load %arg11[%c0_59, %c0_60] : memref<32x32xf32, #tpu.memory_space<vmem>>, vector<32x32xf32>
    %cst_61 = arith.constant dense<0.000000e+00> : vector<8x32xf32>
    %77 = tpu.matmul %66, %76, %cst_61 {dimension_numbers = #tpu.dot_dimension_numbers<[1], [0], [0], [1], [0, 0, 1, 1], [], []>} : vector<8x32xf32>, vector<32x32xf32>, vector<8x32xf32> -> vector<8x32xf32>
    %c0_62 = arith.constant 0 : index
    %c0_63 = arith.constant 0 : index
    %78 = vector.load %arg12[%c0_62, %c0_63] : memref<32x32xf32, #tpu.memory_space<vmem>>, vector<32x32xf32>
    %cst_64 = arith.constant dense<0.000000e+00> : vector<8x32xf32>
    %79 = tpu.matmul %66, %78, %cst_64 {dimension_numbers = #tpu.dot_dimension_numbers<[1], [0], [0], [1], [0, 0, 1, 1], [], []>} : vector<8x32xf32>, vector<32x32xf32>, vector<8x32xf32> -> vector<8x32xf32>
    %c0_65 = arith.constant 0 : index
    %c0_66 = arith.constant 0 : index
    %80 = vector.load %arg13[%c0_65, %c0_66] : memref<32x32xf32, #tpu.memory_space<vmem>>, vector<32x32xf32>
    %cst_67 = arith.constant dense<0.000000e+00> : vector<8x32xf32>
    %81 = tpu.matmul %66, %80, %cst_67 {dimension_numbers = #tpu.dot_dimension_numbers<[1], [0], [0], [1], [0, 0, 1, 1], [], []>} : vector<8x32xf32>, vector<32x32xf32>, vector<8x32xf32> -> vector<8x32xf32>
    %82 = arith.addf %81, %33 : vector<8x32xf32>
    %83 = arith.addf %77, %69 : vector<8x32xf32>
    %84 = arith.negf %83 : vector<8x32xf32>
    %85 = math.exp %84 : vector<8x32xf32>
    %cst_68 = arith.constant 1.000000e+00 : f32
    %86 = vector.broadcast %cst_68 : f32 to vector<8x32xf32>
    %87 = arith.addf %86, %85 : vector<8x32xf32>
    %88 = arith.divf %86, %87 : vector<8x32xf32>
    %89 = arith.addf %79, %72 : vector<8x32xf32>
    %90 = arith.negf %89 : vector<8x32xf32>
    %91 = math.exp %90 : vector<8x32xf32>
    %cst_69 = arith.constant 1.000000e+00 : f32
    %92 = vector.broadcast %cst_69 : f32 to vector<8x32xf32>
    %93 = arith.addf %92, %91 : vector<8x32xf32>
    %94 = arith.divf %92, %93 : vector<8x32xf32>
    %95 = arith.mulf %88, %75 : vector<8x32xf32>
    %96 = arith.addf %82, %95 : vector<8x32xf32>
    %97 = math.tanh %96 : vector<8x32xf32>
    %98 = arith.subf %38, %97 : vector<8x32xf32>
    %99 = arith.mulf %94, %98 : vector<8x32xf32>
    %100 = arith.addf %97, %99 : vector<8x32xf32>
    %c0_70 = arith.constant 0 : index
    %c0_71 = arith.constant 0 : index
    %101 = vector.load %arg4[%c0_70, %c0_71] : memref<32x32xf32, #tpu.memory_space<vmem>>, vector<32x32xf32>
    %cst_72 = arith.constant dense<0.000000e+00> : vector<8x32xf32>
    %102 = tpu.matmul %66, %101, %cst_72 {dimension_numbers = #tpu.dot_dimension_numbers<[1], [0], [0], [1], [0, 0, 1, 1], [], []>} : vector<8x32xf32>, vector<32x32xf32>, vector<8x32xf32> -> vector<8x32xf32>
    %c0_73 = arith.constant 0 : index
    %c0_74 = arith.constant 0 : index
    %103 = vector.load %arg5[%c0_73, %c0_74] : memref<32x32xf32, #tpu.memory_space<vmem>>, vector<32x32xf32>
    %cst_75 = arith.constant dense<0.000000e+00> : vector<8x32xf32>
    %104 = tpu.matmul %66, %103, %cst_75 {dimension_numbers = #tpu.dot_dimension_numbers<[1], [0], [0], [1], [0, 0, 1, 1], [], []>} : vector<8x32xf32>, vector<32x32xf32>, vector<8x32xf32> -> vector<8x32xf32>
    %c0_76 = arith.constant 0 : index
    %c0_77 = arith.constant 0 : index
    %105 = vector.load %arg6[%c0_76, %c0_77] : memref<32x32xf32, #tpu.memory_space<vmem>>, vector<32x32xf32>
    %cst_78 = arith.constant dense<0.000000e+00> : vector<8x32xf32>
    %106 = tpu.matmul %66, %105, %cst_78 {dimension_numbers = #tpu.dot_dimension_numbers<[1], [0], [0], [1], [0, 0, 1, 1], [], []>} : vector<8x32xf32>, vector<32x32xf32>, vector<8x32xf32> -> vector<8x32xf32>
    %107 = arith.addf %106, %24 : vector<8x32xf32>
    %c8 = arith.constant 8 : index
    %c0_79 = arith.constant 0 : index
    %108 = vector.load %arg24[%c8, %c0_79] : memref<64x32xf32, #tpu.memory_space<vmem>>, vector<8x32xf32>
    %109 = arith.addf %108, %102 : vector<8x32xf32>
    %110 = arith.negf %109 : vector<8x32xf32>
    %111 = math.exp %110 : vector<8x32xf32>
    %cst_80 = arith.constant 1.000000e+00 : f32
    %112 = vector.broadcast %cst_80 : f32 to vector<8x32xf32>
    %113 = arith.addf %112, %111 : vector<8x32xf32>
    %114 = arith.divf %112, %113 : vector<8x32xf32>
    %c8_81 = arith.constant 8 : index
    %c0_82 = arith.constant 0 : index
    %115 = vector.load %arg25[%c8_81, %c0_82] : memref<64x32xf32, #tpu.memory_space<vmem>>, vector<8x32xf32>
    %116 = arith.addf %115, %104 : vector<8x32xf32>
    %117 = arith.negf %116 : vector<8x32xf32>
    %118 = math.exp %117 : vector<8x32xf32>
    %cst_83 = arith.constant 1.000000e+00 : f32
    %119 = vector.broadcast %cst_83 : f32 to vector<8x32xf32>
    %120 = arith.addf %119, %118 : vector<8x32xf32>
    %121 = arith.divf %119, %120 : vector<8x32xf32>
    %c8_84 = arith.constant 8 : index
    %c0_85 = arith.constant 0 : index
    %122 = vector.load %arg26[%c8_84, %c0_85] : memref<64x32xf32, #tpu.memory_space<vmem>>, vector<8x32xf32>
    %123 = arith.mulf %114, %107 : vector<8x32xf32>
    %124 = arith.addf %122, %123 : vector<8x32xf32>
    %125 = math.tanh %124 : vector<8x32xf32>
    %126 = arith.subf %66, %125 : vector<8x32xf32>
    %127 = arith.mulf %121, %126 : vector<8x32xf32>
    %128 = arith.addf %125, %127 : vector<8x32xf32>
    %c0_86 = arith.constant 0 : index
    %c0_87 = arith.constant 0 : index
    %129 = vector.load %arg14[%c0_86, %c0_87] : memref<32x32xf32, #tpu.memory_space<vmem>>, vector<32x32xf32>
    %cst_88 = arith.constant dense<0.000000e+00> : vector<8x32xf32>
    %130 = tpu.matmul %100, %129, %cst_88 {dimension_numbers = #tpu.dot_dimension_numbers<[1], [0], [0], [1], [0, 0, 1, 1], [], []>} : vector<8x32xf32>, vector<32x32xf32>, vector<8x32xf32> -> vector<8x32xf32>
    %131 = arith.addf %130, %27 : vector<8x32xf32>
    %c0_89 = arith.constant 0 : index
    %c0_90 = arith.constant 0 : index
    %132 = vector.load %arg15[%c0_89, %c0_90] : memref<32x32xf32, #tpu.memory_space<vmem>>, vector<32x32xf32>
    %cst_91 = arith.constant dense<0.000000e+00> : vector<8x32xf32>
    %133 = tpu.matmul %100, %132, %cst_91 {dimension_numbers = #tpu.dot_dimension_numbers<[1], [0], [0], [1], [0, 0, 1, 1], [], []>} : vector<8x32xf32>, vector<32x32xf32>, vector<8x32xf32> -> vector<8x32xf32>
    %134 = arith.addf %133, %30 : vector<8x32xf32>
    %c0_92 = arith.constant 0 : index
    %c0_93 = arith.constant 0 : index
    %135 = vector.load %arg16[%c0_92, %c0_93] : memref<32x32xf32, #tpu.memory_space<vmem>>, vector<32x32xf32>
    %cst_94 = arith.constant dense<0.000000e+00> : vector<8x32xf32>
    %136 = tpu.matmul %100, %135, %cst_94 {dimension_numbers = #tpu.dot_dimension_numbers<[1], [0], [0], [1], [0, 0, 1, 1], [], []>} : vector<8x32xf32>, vector<32x32xf32>, vector<8x32xf32> -> vector<8x32xf32>
    %137 = arith.addf %136, %36 : vector<8x32xf32>
    %c0_95 = arith.constant 0 : index
    %c0_96 = arith.constant 0 : index
    %138 = vector.load %arg11[%c0_95, %c0_96] : memref<32x32xf32, #tpu.memory_space<vmem>>, vector<32x32xf32>
    %cst_97 = arith.constant dense<0.000000e+00> : vector<8x32xf32>
    %139 = tpu.matmul %128, %138, %cst_97 {dimension_numbers = #tpu.dot_dimension_numbers<[1], [0], [0], [1], [0, 0, 1, 1], [], []>} : vector<8x32xf32>, vector<32x32xf32>, vector<8x32xf32> -> vector<8x32xf32>
    %c0_98 = arith.constant 0 : index
    %c0_99 = arith.constant 0 : index
    %140 = vector.load %arg12[%c0_98, %c0_99] : memref<32x32xf32, #tpu.memory_space<vmem>>, vector<32x32xf32>
    %cst_100 = arith.constant dense<0.000000e+00> : vector<8x32xf32>
    %141 = tpu.matmul %128, %140, %cst_100 {dimension_numbers = #tpu.dot_dimension_numbers<[1], [0], [0], [1], [0, 0, 1, 1], [], []>} : vector<8x32xf32>, vector<32x32xf32>, vector<8x32xf32> -> vector<8x32xf32>
    %c0_101 = arith.constant 0 : index
    %c0_102 = arith.constant 0 : index
    %142 = vector.load %arg13[%c0_101, %c0_102] : memref<32x32xf32, #tpu.memory_space<vmem>>, vector<32x32xf32>
    %cst_103 = arith.constant dense<0.000000e+00> : vector<8x32xf32>
    %143 = tpu.matmul %128, %142, %cst_103 {dimension_numbers = #tpu.dot_dimension_numbers<[1], [0], [0], [1], [0, 0, 1, 1], [], []>} : vector<8x32xf32>, vector<32x32xf32>, vector<8x32xf32> -> vector<8x32xf32>
    %144 = arith.addf %143, %33 : vector<8x32xf32>
    %145 = arith.addf %139, %131 : vector<8x32xf32>
    %146 = arith.negf %145 : vector<8x32xf32>
    %147 = math.exp %146 : vector<8x32xf32>
    %cst_104 = arith.constant 1.000000e+00 : f32
    %148 = vector.broadcast %cst_104 : f32 to vector<8x32xf32>
    %149 = arith.addf %148, %147 : vector<8x32xf32>
    %150 = arith.divf %148, %149 : vector<8x32xf32>
    %151 = arith.addf %141, %134 : vector<8x32xf32>
    %152 = arith.negf %151 : vector<8x32xf32>
    %153 = math.exp %152 : vector<8x32xf32>
    %cst_105 = arith.constant 1.000000e+00 : f32
    %154 = vector.broadcast %cst_105 : f32 to vector<8x32xf32>
    %155 = arith.addf %154, %153 : vector<8x32xf32>
    %156 = arith.divf %154, %155 : vector<8x32xf32>
    %157 = arith.mulf %150, %137 : vector<8x32xf32>
    %158 = arith.addf %144, %157 : vector<8x32xf32>
    %159 = math.tanh %158 : vector<8x32xf32>
    %160 = arith.subf %100, %159 : vector<8x32xf32>
    %161 = arith.mulf %156, %160 : vector<8x32xf32>
    %162 = arith.addf %159, %161 : vector<8x32xf32>
    %c0_106 = arith.constant 0 : index
    %c0_107 = arith.constant 0 : index
    %163 = vector.load %arg4[%c0_106, %c0_107] : memref<32x32xf32, #tpu.memory_space<vmem>>, vector<32x32xf32>
    %cst_108 = arith.constant dense<0.000000e+00> : vector<8x32xf32>
    %164 = tpu.matmul %128, %163, %cst_108 {dimension_numbers = #tpu.dot_dimension_numbers<[1], [0], [0], [1], [0, 0, 1, 1], [], []>} : vector<8x32xf32>, vector<32x32xf32>, vector<8x32xf32> -> vector<8x32xf32>
    %c0_109 = arith.constant 0 : index
    %c0_110 = arith.constant 0 : index
    %165 = vector.load %arg5[%c0_109, %c0_110] : memref<32x32xf32, #tpu.memory_space<vmem>>, vector<32x32xf32>
    %cst_111 = arith.constant dense<0.000000e+00> : vector<8x32xf32>
    %166 = tpu.matmul %128, %165, %cst_111 {dimension_numbers = #tpu.dot_dimension_numbers<[1], [0], [0], [1], [0, 0, 1, 1], [], []>} : vector<8x32xf32>, vector<32x32xf32>, vector<8x32xf32> -> vector<8x32xf32>
    %c0_112 = arith.constant 0 : index
    %c0_113 = arith.constant 0 : index
    %167 = vector.load %arg6[%c0_112, %c0_113] : memref<32x32xf32, #tpu.memory_space<vmem>>, vector<32x32xf32>
    %cst_114 = arith.constant dense<0.000000e+00> : vector<8x32xf32>
    %168 = tpu.matmul %128, %167, %cst_114 {dimension_numbers = #tpu.dot_dimension_numbers<[1], [0], [0], [1], [0, 0, 1, 1], [], []>} : vector<8x32xf32>, vector<32x32xf32>, vector<8x32xf32> -> vector<8x32xf32>
    %169 = arith.addf %168, %24 : vector<8x32xf32>
    %c16 = arith.constant 16 : index
    %c0_115 = arith.constant 0 : index
    %170 = vector.load %arg24[%c16, %c0_115] : memref<64x32xf32, #tpu.memory_space<vmem>>, vector<8x32xf32>
    %171 = arith.addf %170, %164 : vector<8x32xf32>
    %172 = arith.negf %171 : vector<8x32xf32>
    %173 = math.exp %172 : vector<8x32xf32>
    %cst_116 = arith.constant 1.000000e+00 : f32
    %174 = vector.broadcast %cst_116 : f32 to vector<8x32xf32>
    %175 = arith.addf %174, %173 : vector<8x32xf32>
    %176 = arith.divf %174, %175 : vector<8x32xf32>
    %c16_117 = arith.constant 16 : index
    %c0_118 = arith.constant 0 : index
    %177 = vector.load %arg25[%c16_117, %c0_118] : memref<64x32xf32, #tpu.memory_space<vmem>>, vector<8x32xf32>
    %178 = arith.addf %177, %166 : vector<8x32xf32>
    %179 = arith.negf %178 : vector<8x32xf32>
    %180 = math.exp %179 : vector<8x32xf32>
    %cst_119 = arith.constant 1.000000e+00 : f32
    %181 = vector.broadcast %cst_119 : f32 to vector<8x32xf32>
    %182 = arith.addf %181, %180 : vector<8x32xf32>
    %183 = arith.divf %181, %182 : vector<8x32xf32>
    %c16_120 = arith.constant 16 : index
    %c0_121 = arith.constant 0 : index
    %184 = vector.load %arg26[%c16_120, %c0_121] : memref<64x32xf32, #tpu.memory_space<vmem>>, vector<8x32xf32>
    %185 = arith.mulf %176, %169 : vector<8x32xf32>
    %186 = arith.addf %184, %185 : vector<8x32xf32>
    %187 = math.tanh %186 : vector<8x32xf32>
    %188 = arith.subf %128, %187 : vector<8x32xf32>
    %189 = arith.mulf %183, %188 : vector<8x32xf32>
    %190 = arith.addf %187, %189 : vector<8x32xf32>
    %c0_122 = arith.constant 0 : index
    %c0_123 = arith.constant 0 : index
    %191 = vector.load %arg14[%c0_122, %c0_123] : memref<32x32xf32, #tpu.memory_space<vmem>>, vector<32x32xf32>
    %cst_124 = arith.constant dense<0.000000e+00> : vector<8x32xf32>
    %192 = tpu.matmul %162, %191, %cst_124 {dimension_numbers = #tpu.dot_dimension_numbers<[1], [0], [0], [1], [0, 0, 1, 1], [], []>} : vector<8x32xf32>, vector<32x32xf32>, vector<8x32xf32> -> vector<8x32xf32>
    %193 = arith.addf %192, %27 : vector<8x32xf32>
    %c0_125 = arith.constant 0 : index
    %c0_126 = arith.constant 0 : index
    %194 = vector.load %arg15[%c0_125, %c0_126] : memref<32x32xf32, #tpu.memory_space<vmem>>, vector<32x32xf32>
    %cst_127 = arith.constant dense<0.000000e+00> : vector<8x32xf32>
    %195 = tpu.matmul %162, %194, %cst_127 {dimension_numbers = #tpu.dot_dimension_numbers<[1], [0], [0], [1], [0, 0, 1, 1], [], []>} : vector<8x32xf32>, vector<32x32xf32>, vector<8x32xf32> -> vector<8x32xf32>
    %196 = arith.addf %195, %30 : vector<8x32xf32>
    %c0_128 = arith.constant 0 : index
    %c0_129 = arith.constant 0 : index
    %197 = vector.load %arg16[%c0_128, %c0_129] : memref<32x32xf32, #tpu.memory_space<vmem>>, vector<32x32xf32>
    %cst_130 = arith.constant dense<0.000000e+00> : vector<8x32xf32>
    %198 = tpu.matmul %162, %197, %cst_130 {dimension_numbers = #tpu.dot_dimension_numbers<[1], [0], [0], [1], [0, 0, 1, 1], [], []>} : vector<8x32xf32>, vector<32x32xf32>, vector<8x32xf32> -> vector<8x32xf32>
    %199 = arith.addf %198, %36 : vector<8x32xf32>
    %c0_131 = arith.constant 0 : index
    %c0_132 = arith.constant 0 : index
    %200 = vector.load %arg11[%c0_131, %c0_132] : memref<32x32xf32, #tpu.memory_space<vmem>>, vector<32x32xf32>
    %cst_133 = arith.constant dense<0.000000e+00> : vector<8x32xf32>
    %201 = tpu.matmul %190, %200, %cst_133 {dimension_numbers = #tpu.dot_dimension_numbers<[1], [0], [0], [1], [0, 0, 1, 1], [], []>} : vector<8x32xf32>, vector<32x32xf32>, vector<8x32xf32> -> vector<8x32xf32>
    %c0_134 = arith.constant 0 : index
    %c0_135 = arith.constant 0 : index
    %202 = vector.load %arg12[%c0_134, %c0_135] : memref<32x32xf32, #tpu.memory_space<vmem>>, vector<32x32xf32>
    %cst_136 = arith.constant dense<0.000000e+00> : vector<8x32xf32>
    %203 = tpu.matmul %190, %202, %cst_136 {dimension_numbers = #tpu.dot_dimension_numbers<[1], [0], [0], [1], [0, 0, 1, 1], [], []>} : vector<8x32xf32>, vector<32x32xf32>, vector<8x32xf32> -> vector<8x32xf32>
    %c0_137 = arith.constant 0 : index
    %c0_138 = arith.constant 0 : index
    %204 = vector.load %arg13[%c0_137, %c0_138] : memref<32x32xf32, #tpu.memory_space<vmem>>, vector<32x32xf32>
    %cst_139 = arith.constant dense<0.000000e+00> : vector<8x32xf32>
    %205 = tpu.matmul %190, %204, %cst_139 {dimension_numbers = #tpu.dot_dimension_numbers<[1], [0], [0], [1], [0, 0, 1, 1], [], []>} : vector<8x32xf32>, vector<32x32xf32>, vector<8x32xf32> -> vector<8x32xf32>
    %206 = arith.addf %205, %33 : vector<8x32xf32>
    %207 = arith.addf %201, %193 : vector<8x32xf32>
    %208 = arith.negf %207 : vector<8x32xf32>
    %209 = math.exp %208 : vector<8x32xf32>
    %cst_140 = arith.constant 1.000000e+00 : f32
    %210 = vector.broadcast %cst_140 : f32 to vector<8x32xf32>
    %211 = arith.addf %210, %209 : vector<8x32xf32>
    %212 = arith.divf %210, %211 : vector<8x32xf32>
    %213 = arith.addf %203, %196 : vector<8x32xf32>
    %214 = arith.negf %213 : vector<8x32xf32>
    %215 = math.exp %214 : vector<8x32xf32>
    %cst_141 = arith.constant 1.000000e+00 : f32
    %216 = vector.broadcast %cst_141 : f32 to vector<8x32xf32>
    %217 = arith.addf %216, %215 : vector<8x32xf32>
    %218 = arith.divf %216, %217 : vector<8x32xf32>
    %219 = arith.mulf %212, %199 : vector<8x32xf32>
    %220 = arith.addf %206, %219 : vector<8x32xf32>
    %221 = math.tanh %220 : vector<8x32xf32>
    %222 = arith.subf %162, %221 : vector<8x32xf32>
    %223 = arith.mulf %218, %222 : vector<8x32xf32>
    %224 = arith.addf %221, %223 : vector<8x32xf32>
    %c0_142 = arith.constant 0 : index
    %c0_143 = arith.constant 0 : index
    %225 = vector.load %arg4[%c0_142, %c0_143] : memref<32x32xf32, #tpu.memory_space<vmem>>, vector<32x32xf32>
    %cst_144 = arith.constant dense<0.000000e+00> : vector<8x32xf32>
    %226 = tpu.matmul %190, %225, %cst_144 {dimension_numbers = #tpu.dot_dimension_numbers<[1], [0], [0], [1], [0, 0, 1, 1], [], []>} : vector<8x32xf32>, vector<32x32xf32>, vector<8x32xf32> -> vector<8x32xf32>
    %c0_145 = arith.constant 0 : index
    %c0_146 = arith.constant 0 : index
    %227 = vector.load %arg5[%c0_145, %c0_146] : memref<32x32xf32, #tpu.memory_space<vmem>>, vector<32x32xf32>
    %cst_147 = arith.constant dense<0.000000e+00> : vector<8x32xf32>
    %228 = tpu.matmul %190, %227, %cst_147 {dimension_numbers = #tpu.dot_dimension_numbers<[1], [0], [0], [1], [0, 0, 1, 1], [], []>} : vector<8x32xf32>, vector<32x32xf32>, vector<8x32xf32> -> vector<8x32xf32>
    %c0_148 = arith.constant 0 : index
    %c0_149 = arith.constant 0 : index
    %229 = vector.load %arg6[%c0_148, %c0_149] : memref<32x32xf32, #tpu.memory_space<vmem>>, vector<32x32xf32>
    %cst_150 = arith.constant dense<0.000000e+00> : vector<8x32xf32>
    %230 = tpu.matmul %190, %229, %cst_150 {dimension_numbers = #tpu.dot_dimension_numbers<[1], [0], [0], [1], [0, 0, 1, 1], [], []>} : vector<8x32xf32>, vector<32x32xf32>, vector<8x32xf32> -> vector<8x32xf32>
    %231 = arith.addf %230, %24 : vector<8x32xf32>
    %c24 = arith.constant 24 : index
    %c0_151 = arith.constant 0 : index
    %232 = vector.load %arg24[%c24, %c0_151] : memref<64x32xf32, #tpu.memory_space<vmem>>, vector<8x32xf32>
    %233 = arith.addf %232, %226 : vector<8x32xf32>
    %234 = arith.negf %233 : vector<8x32xf32>
    %235 = math.exp %234 : vector<8x32xf32>
    %cst_152 = arith.constant 1.000000e+00 : f32
    %236 = vector.broadcast %cst_152 : f32 to vector<8x32xf32>
    %237 = arith.addf %236, %235 : vector<8x32xf32>
    %238 = arith.divf %236, %237 : vector<8x32xf32>
    %c24_153 = arith.constant 24 : index
    %c0_154 = arith.constant 0 : index
    %239 = vector.load %arg25[%c24_153, %c0_154] : memref<64x32xf32, #tpu.memory_space<vmem>>, vector<8x32xf32>
    %240 = arith.addf %239, %228 : vector<8x32xf32>
    %241 = arith.negf %240 : vector<8x32xf32>
    %242 = math.exp %241 : vector<8x32xf32>
    %cst_155 = arith.constant 1.000000e+00 : f32
    %243 = vector.broadcast %cst_155 : f32 to vector<8x32xf32>
    %244 = arith.addf %243, %242 : vector<8x32xf32>
    %245 = arith.divf %243, %244 : vector<8x32xf32>
    %c24_156 = arith.constant 24 : index
    %c0_157 = arith.constant 0 : index
    %246 = vector.load %arg26[%c24_156, %c0_157] : memref<64x32xf32, #tpu.memory_space<vmem>>, vector<8x32xf32>
    %247 = arith.mulf %238, %231 : vector<8x32xf32>
    %248 = arith.addf %246, %247 : vector<8x32xf32>
    %249 = math.tanh %248 : vector<8x32xf32>
    %250 = arith.subf %190, %249 : vector<8x32xf32>
    %251 = arith.mulf %245, %250 : vector<8x32xf32>
    %252 = arith.addf %249, %251 : vector<8x32xf32>
    %c0_158 = arith.constant 0 : index
    %c0_159 = arith.constant 0 : index
    %253 = vector.load %arg14[%c0_158, %c0_159] : memref<32x32xf32, #tpu.memory_space<vmem>>, vector<32x32xf32>
    %cst_160 = arith.constant dense<0.000000e+00> : vector<8x32xf32>
    %254 = tpu.matmul %224, %253, %cst_160 {dimension_numbers = #tpu.dot_dimension_numbers<[1], [0], [0], [1], [0, 0, 1, 1], [], []>} : vector<8x32xf32>, vector<32x32xf32>, vector<8x32xf32> -> vector<8x32xf32>
    %255 = arith.addf %254, %27 : vector<8x32xf32>
    %c0_161 = arith.constant 0 : index
    %c0_162 = arith.constant 0 : index
    %256 = vector.load %arg15[%c0_161, %c0_162] : memref<32x32xf32, #tpu.memory_space<vmem>>, vector<32x32xf32>
    %cst_163 = arith.constant dense<0.000000e+00> : vector<8x32xf32>
    %257 = tpu.matmul %224, %256, %cst_163 {dimension_numbers = #tpu.dot_dimension_numbers<[1], [0], [0], [1], [0, 0, 1, 1], [], []>} : vector<8x32xf32>, vector<32x32xf32>, vector<8x32xf32> -> vector<8x32xf32>
    %258 = arith.addf %257, %30 : vector<8x32xf32>
    %c0_164 = arith.constant 0 : index
    %c0_165 = arith.constant 0 : index
    %259 = vector.load %arg16[%c0_164, %c0_165] : memref<32x32xf32, #tpu.memory_space<vmem>>, vector<32x32xf32>
    %cst_166 = arith.constant dense<0.000000e+00> : vector<8x32xf32>
    %260 = tpu.matmul %224, %259, %cst_166 {dimension_numbers = #tpu.dot_dimension_numbers<[1], [0], [0], [1], [0, 0, 1, 1], [], []>} : vector<8x32xf32>, vector<32x32xf32>, vector<8x32xf32> -> vector<8x32xf32>
    %261 = arith.addf %260, %36 : vector<8x32xf32>
    %c0_167 = arith.constant 0 : index
    %c0_168 = arith.constant 0 : index
    %262 = vector.load %arg11[%c0_167, %c0_168] : memref<32x32xf32, #tpu.memory_space<vmem>>, vector<32x32xf32>
    %cst_169 = arith.constant dense<0.000000e+00> : vector<8x32xf32>
    %263 = tpu.matmul %252, %262, %cst_169 {dimension_numbers = #tpu.dot_dimension_numbers<[1], [0], [0], [1], [0, 0, 1, 1], [], []>} : vector<8x32xf32>, vector<32x32xf32>, vector<8x32xf32> -> vector<8x32xf32>
    %c0_170 = arith.constant 0 : index
    %c0_171 = arith.constant 0 : index
    %264 = vector.load %arg12[%c0_170, %c0_171] : memref<32x32xf32, #tpu.memory_space<vmem>>, vector<32x32xf32>
    %cst_172 = arith.constant dense<0.000000e+00> : vector<8x32xf32>
    %265 = tpu.matmul %252, %264, %cst_172 {dimension_numbers = #tpu.dot_dimension_numbers<[1], [0], [0], [1], [0, 0, 1, 1], [], []>} : vector<8x32xf32>, vector<32x32xf32>, vector<8x32xf32> -> vector<8x32xf32>
    %c0_173 = arith.constant 0 : index
    %c0_174 = arith.constant 0 : index
    %266 = vector.load %arg13[%c0_173, %c0_174] : memref<32x32xf32, #tpu.memory_space<vmem>>, vector<32x32xf32>
    %cst_175 = arith.constant dense<0.000000e+00> : vector<8x32xf32>
    %267 = tpu.matmul %252, %266, %cst_175 {dimension_numbers = #tpu.dot_dimension_numbers<[1], [0], [0], [1], [0, 0, 1, 1], [], []>} : vector<8x32xf32>, vector<32x32xf32>, vector<8x32xf32> -> vector<8x32xf32>
    %268 = arith.addf %267, %33 : vector<8x32xf32>
    %269 = arith.addf %263, %255 : vector<8x32xf32>
    %270 = arith.negf %269 : vector<8x32xf32>
    %271 = math.exp %270 : vector<8x32xf32>
    %cst_176 = arith.constant 1.000000e+00 : f32
    %272 = vector.broadcast %cst_176 : f32 to vector<8x32xf32>
    %273 = arith.addf %272, %271 : vector<8x32xf32>
    %274 = arith.divf %272, %273 : vector<8x32xf32>
    %275 = arith.addf %265, %258 : vector<8x32xf32>
    %276 = arith.negf %275 : vector<8x32xf32>
    %277 = math.exp %276 : vector<8x32xf32>
    %cst_177 = arith.constant 1.000000e+00 : f32
    %278 = vector.broadcast %cst_177 : f32 to vector<8x32xf32>
    %279 = arith.addf %278, %277 : vector<8x32xf32>
    %280 = arith.divf %278, %279 : vector<8x32xf32>
    %281 = arith.mulf %274, %261 : vector<8x32xf32>
    %282 = arith.addf %268, %281 : vector<8x32xf32>
    %283 = math.tanh %282 : vector<8x32xf32>
    %284 = arith.subf %224, %283 : vector<8x32xf32>
    %285 = arith.mulf %280, %284 : vector<8x32xf32>
    %286 = arith.addf %283, %285 : vector<8x32xf32>
    %c0_178 = arith.constant 0 : index
    %c0_179 = arith.constant 0 : index
    %287 = vector.load %arg4[%c0_178, %c0_179] : memref<32x32xf32, #tpu.memory_space<vmem>>, vector<32x32xf32>
    %cst_180 = arith.constant dense<0.000000e+00> : vector<8x32xf32>
    %288 = tpu.matmul %252, %287, %cst_180 {dimension_numbers = #tpu.dot_dimension_numbers<[1], [0], [0], [1], [0, 0, 1, 1], [], []>} : vector<8x32xf32>, vector<32x32xf32>, vector<8x32xf32> -> vector<8x32xf32>
    %c0_181 = arith.constant 0 : index
    %c0_182 = arith.constant 0 : index
    %289 = vector.load %arg5[%c0_181, %c0_182] : memref<32x32xf32, #tpu.memory_space<vmem>>, vector<32x32xf32>
    %cst_183 = arith.constant dense<0.000000e+00> : vector<8x32xf32>
    %290 = tpu.matmul %252, %289, %cst_183 {dimension_numbers = #tpu.dot_dimension_numbers<[1], [0], [0], [1], [0, 0, 1, 1], [], []>} : vector<8x32xf32>, vector<32x32xf32>, vector<8x32xf32> -> vector<8x32xf32>
    %c0_184 = arith.constant 0 : index
    %c0_185 = arith.constant 0 : index
    %291 = vector.load %arg6[%c0_184, %c0_185] : memref<32x32xf32, #tpu.memory_space<vmem>>, vector<32x32xf32>
    %cst_186 = arith.constant dense<0.000000e+00> : vector<8x32xf32>
    %292 = tpu.matmul %252, %291, %cst_186 {dimension_numbers = #tpu.dot_dimension_numbers<[1], [0], [0], [1], [0, 0, 1, 1], [], []>} : vector<8x32xf32>, vector<32x32xf32>, vector<8x32xf32> -> vector<8x32xf32>
    %293 = arith.addf %292, %24 : vector<8x32xf32>
    %c32 = arith.constant 32 : index
    %c0_187 = arith.constant 0 : index
    %294 = vector.load %arg24[%c32, %c0_187] : memref<64x32xf32, #tpu.memory_space<vmem>>, vector<8x32xf32>
    %295 = arith.addf %294, %288 : vector<8x32xf32>
    %296 = arith.negf %295 : vector<8x32xf32>
    %297 = math.exp %296 : vector<8x32xf32>
    %cst_188 = arith.constant 1.000000e+00 : f32
    %298 = vector.broadcast %cst_188 : f32 to vector<8x32xf32>
    %299 = arith.addf %298, %297 : vector<8x32xf32>
    %300 = arith.divf %298, %299 : vector<8x32xf32>
    %c32_189 = arith.constant 32 : index
    %c0_190 = arith.constant 0 : index
    %301 = vector.load %arg25[%c32_189, %c0_190] : memref<64x32xf32, #tpu.memory_space<vmem>>, vector<8x32xf32>
    %302 = arith.addf %301, %290 : vector<8x32xf32>
    %303 = arith.negf %302 : vector<8x32xf32>
    %304 = math.exp %303 : vector<8x32xf32>
    %cst_191 = arith.constant 1.000000e+00 : f32
    %305 = vector.broadcast %cst_191 : f32 to vector<8x32xf32>
    %306 = arith.addf %305, %304 : vector<8x32xf32>
    %307 = arith.divf %305, %306 : vector<8x32xf32>
    %c32_192 = arith.constant 32 : index
    %c0_193 = arith.constant 0 : index
    %308 = vector.load %arg26[%c32_192, %c0_193] : memref<64x32xf32, #tpu.memory_space<vmem>>, vector<8x32xf32>
    %309 = arith.mulf %300, %293 : vector<8x32xf32>
    %310 = arith.addf %308, %309 : vector<8x32xf32>
    %311 = math.tanh %310 : vector<8x32xf32>
    %312 = arith.subf %252, %311 : vector<8x32xf32>
    %313 = arith.mulf %307, %312 : vector<8x32xf32>
    %314 = arith.addf %311, %313 : vector<8x32xf32>
    %c0_194 = arith.constant 0 : index
    %c0_195 = arith.constant 0 : index
    %315 = vector.load %arg14[%c0_194, %c0_195] : memref<32x32xf32, #tpu.memory_space<vmem>>, vector<32x32xf32>
    %cst_196 = arith.constant dense<0.000000e+00> : vector<8x32xf32>
    %316 = tpu.matmul %286, %315, %cst_196 {dimension_numbers = #tpu.dot_dimension_numbers<[1], [0], [0], [1], [0, 0, 1, 1], [], []>} : vector<8x32xf32>, vector<32x32xf32>, vector<8x32xf32> -> vector<8x32xf32>
    %317 = arith.addf %316, %27 : vector<8x32xf32>
    %c0_197 = arith.constant 0 : index
    %c0_198 = arith.constant 0 : index
    %318 = vector.load %arg15[%c0_197, %c0_198] : memref<32x32xf32, #tpu.memory_space<vmem>>, vector<32x32xf32>
    %cst_199 = arith.constant dense<0.000000e+00> : vector<8x32xf32>
    %319 = tpu.matmul %286, %318, %cst_199 {dimension_numbers = #tpu.dot_dimension_numbers<[1], [0], [0], [1], [0, 0, 1, 1], [], []>} : vector<8x32xf32>, vector<32x32xf32>, vector<8x32xf32> -> vector<8x32xf32>
    %320 = arith.addf %319, %30 : vector<8x32xf32>
    %c0_200 = arith.constant 0 : index
    %c0_201 = arith.constant 0 : index
    %321 = vector.load %arg16[%c0_200, %c0_201] : memref<32x32xf32, #tpu.memory_space<vmem>>, vector<32x32xf32>
    %cst_202 = arith.constant dense<0.000000e+00> : vector<8x32xf32>
    %322 = tpu.matmul %286, %321, %cst_202 {dimension_numbers = #tpu.dot_dimension_numbers<[1], [0], [0], [1], [0, 0, 1, 1], [], []>} : vector<8x32xf32>, vector<32x32xf32>, vector<8x32xf32> -> vector<8x32xf32>
    %323 = arith.addf %322, %36 : vector<8x32xf32>
    %c0_203 = arith.constant 0 : index
    %c0_204 = arith.constant 0 : index
    %324 = vector.load %arg11[%c0_203, %c0_204] : memref<32x32xf32, #tpu.memory_space<vmem>>, vector<32x32xf32>
    %cst_205 = arith.constant dense<0.000000e+00> : vector<8x32xf32>
    %325 = tpu.matmul %314, %324, %cst_205 {dimension_numbers = #tpu.dot_dimension_numbers<[1], [0], [0], [1], [0, 0, 1, 1], [], []>} : vector<8x32xf32>, vector<32x32xf32>, vector<8x32xf32> -> vector<8x32xf32>
    %c0_206 = arith.constant 0 : index
    %c0_207 = arith.constant 0 : index
    %326 = vector.load %arg12[%c0_206, %c0_207] : memref<32x32xf32, #tpu.memory_space<vmem>>, vector<32x32xf32>
    %cst_208 = arith.constant dense<0.000000e+00> : vector<8x32xf32>
    %327 = tpu.matmul %314, %326, %cst_208 {dimension_numbers = #tpu.dot_dimension_numbers<[1], [0], [0], [1], [0, 0, 1, 1], [], []>} : vector<8x32xf32>, vector<32x32xf32>, vector<8x32xf32> -> vector<8x32xf32>
    %c0_209 = arith.constant 0 : index
    %c0_210 = arith.constant 0 : index
    %328 = vector.load %arg13[%c0_209, %c0_210] : memref<32x32xf32, #tpu.memory_space<vmem>>, vector<32x32xf32>
    %cst_211 = arith.constant dense<0.000000e+00> : vector<8x32xf32>
    %329 = tpu.matmul %314, %328, %cst_211 {dimension_numbers = #tpu.dot_dimension_numbers<[1], [0], [0], [1], [0, 0, 1, 1], [], []>} : vector<8x32xf32>, vector<32x32xf32>, vector<8x32xf32> -> vector<8x32xf32>
    %330 = arith.addf %329, %33 : vector<8x32xf32>
    %331 = arith.addf %325, %317 : vector<8x32xf32>
    %332 = arith.negf %331 : vector<8x32xf32>
    %333 = math.exp %332 : vector<8x32xf32>
    %cst_212 = arith.constant 1.000000e+00 : f32
    %334 = vector.broadcast %cst_212 : f32 to vector<8x32xf32>
    %335 = arith.addf %334, %333 : vector<8x32xf32>
    %336 = arith.divf %334, %335 : vector<8x32xf32>
    %337 = arith.addf %327, %320 : vector<8x32xf32>
    %338 = arith.negf %337 : vector<8x32xf32>
    %339 = math.exp %338 : vector<8x32xf32>
    %cst_213 = arith.constant 1.000000e+00 : f32
    %340 = vector.broadcast %cst_213 : f32 to vector<8x32xf32>
    %341 = arith.addf %340, %339 : vector<8x32xf32>
    %342 = arith.divf %340, %341 : vector<8x32xf32>
    %343 = arith.mulf %336, %323 : vector<8x32xf32>
    %344 = arith.addf %330, %343 : vector<8x32xf32>
    %345 = math.tanh %344 : vector<8x32xf32>
    %346 = arith.subf %286, %345 : vector<8x32xf32>
    %347 = arith.mulf %342, %346 : vector<8x32xf32>
    %348 = arith.addf %345, %347 : vector<8x32xf32>
    %c0_214 = arith.constant 0 : index
    %c0_215 = arith.constant 0 : index
    %349 = vector.load %arg4[%c0_214, %c0_215] : memref<32x32xf32, #tpu.memory_space<vmem>>, vector<32x32xf32>
    %cst_216 = arith.constant dense<0.000000e+00> : vector<8x32xf32>
    %350 = tpu.matmul %314, %349, %cst_216 {dimension_numbers = #tpu.dot_dimension_numbers<[1], [0], [0], [1], [0, 0, 1, 1], [], []>} : vector<8x32xf32>, vector<32x32xf32>, vector<8x32xf32> -> vector<8x32xf32>
    %c0_217 = arith.constant 0 : index
    %c0_218 = arith.constant 0 : index
    %351 = vector.load %arg5[%c0_217, %c0_218] : memref<32x32xf32, #tpu.memory_space<vmem>>, vector<32x32xf32>
    %cst_219 = arith.constant dense<0.000000e+00> : vector<8x32xf32>
    %352 = tpu.matmul %314, %351, %cst_219 {dimension_numbers = #tpu.dot_dimension_numbers<[1], [0], [0], [1], [0, 0, 1, 1], [], []>} : vector<8x32xf32>, vector<32x32xf32>, vector<8x32xf32> -> vector<8x32xf32>
    %c0_220 = arith.constant 0 : index
    %c0_221 = arith.constant 0 : index
    %353 = vector.load %arg6[%c0_220, %c0_221] : memref<32x32xf32, #tpu.memory_space<vmem>>, vector<32x32xf32>
    %cst_222 = arith.constant dense<0.000000e+00> : vector<8x32xf32>
    %354 = tpu.matmul %314, %353, %cst_222 {dimension_numbers = #tpu.dot_dimension_numbers<[1], [0], [0], [1], [0, 0, 1, 1], [], []>} : vector<8x32xf32>, vector<32x32xf32>, vector<8x32xf32> -> vector<8x32xf32>
    %355 = arith.addf %354, %24 : vector<8x32xf32>
    %c40 = arith.constant 40 : index
    %c0_223 = arith.constant 0 : index
    %356 = vector.load %arg24[%c40, %c0_223] : memref<64x32xf32, #tpu.memory_space<vmem>>, vector<8x32xf32>
    %357 = arith.addf %356, %350 : vector<8x32xf32>
    %358 = arith.negf %357 : vector<8x32xf32>
    %359 = math.exp %358 : vector<8x32xf32>
    %cst_224 = arith.constant 1.000000e+00 : f32
    %360 = vector.broadcast %cst_224 : f32 to vector<8x32xf32>
    %361 = arith.addf %360, %359 : vector<8x32xf32>
    %362 = arith.divf %360, %361 : vector<8x32xf32>
    %c40_225 = arith.constant 40 : index
    %c0_226 = arith.constant 0 : index
    %363 = vector.load %arg25[%c40_225, %c0_226] : memref<64x32xf32, #tpu.memory_space<vmem>>, vector<8x32xf32>
    %364 = arith.addf %363, %352 : vector<8x32xf32>
    %365 = arith.negf %364 : vector<8x32xf32>
    %366 = math.exp %365 : vector<8x32xf32>
    %cst_227 = arith.constant 1.000000e+00 : f32
    %367 = vector.broadcast %cst_227 : f32 to vector<8x32xf32>
    %368 = arith.addf %367, %366 : vector<8x32xf32>
    %369 = arith.divf %367, %368 : vector<8x32xf32>
    %c40_228 = arith.constant 40 : index
    %c0_229 = arith.constant 0 : index
    %370 = vector.load %arg26[%c40_228, %c0_229] : memref<64x32xf32, #tpu.memory_space<vmem>>, vector<8x32xf32>
    %371 = arith.mulf %362, %355 : vector<8x32xf32>
    %372 = arith.addf %370, %371 : vector<8x32xf32>
    %373 = math.tanh %372 : vector<8x32xf32>
    %374 = arith.subf %314, %373 : vector<8x32xf32>
    %375 = arith.mulf %369, %374 : vector<8x32xf32>
    %376 = arith.addf %373, %375 : vector<8x32xf32>
    %c0_230 = arith.constant 0 : index
    %c0_231 = arith.constant 0 : index
    %377 = vector.load %arg14[%c0_230, %c0_231] : memref<32x32xf32, #tpu.memory_space<vmem>>, vector<32x32xf32>
    %cst_232 = arith.constant dense<0.000000e+00> : vector<8x32xf32>
    %378 = tpu.matmul %348, %377, %cst_232 {dimension_numbers = #tpu.dot_dimension_numbers<[1], [0], [0], [1], [0, 0, 1, 1], [], []>} : vector<8x32xf32>, vector<32x32xf32>, vector<8x32xf32> -> vector<8x32xf32>
    %379 = arith.addf %378, %27 : vector<8x32xf32>
    %c0_233 = arith.constant 0 : index
    %c0_234 = arith.constant 0 : index
    %380 = vector.load %arg15[%c0_233, %c0_234] : memref<32x32xf32, #tpu.memory_space<vmem>>, vector<32x32xf32>
    %cst_235 = arith.constant dense<0.000000e+00> : vector<8x32xf32>
    %381 = tpu.matmul %348, %380, %cst_235 {dimension_numbers = #tpu.dot_dimension_numbers<[1], [0], [0], [1], [0, 0, 1, 1], [], []>} : vector<8x32xf32>, vector<32x32xf32>, vector<8x32xf32> -> vector<8x32xf32>
    %382 = arith.addf %381, %30 : vector<8x32xf32>
    %c0_236 = arith.constant 0 : index
    %c0_237 = arith.constant 0 : index
    %383 = vector.load %arg16[%c0_236, %c0_237] : memref<32x32xf32, #tpu.memory_space<vmem>>, vector<32x32xf32>
    %cst_238 = arith.constant dense<0.000000e+00> : vector<8x32xf32>
    %384 = tpu.matmul %348, %383, %cst_238 {dimension_numbers = #tpu.dot_dimension_numbers<[1], [0], [0], [1], [0, 0, 1, 1], [], []>} : vector<8x32xf32>, vector<32x32xf32>, vector<8x32xf32> -> vector<8x32xf32>
    %385 = arith.addf %384, %36 : vector<8x32xf32>
    %c0_239 = arith.constant 0 : index
    %c0_240 = arith.constant 0 : index
    %386 = vector.load %arg11[%c0_239, %c0_240] : memref<32x32xf32, #tpu.memory_space<vmem>>, vector<32x32xf32>
    %cst_241 = arith.constant dense<0.000000e+00> : vector<8x32xf32>
    %387 = tpu.matmul %376, %386, %cst_241 {dimension_numbers = #tpu.dot_dimension_numbers<[1], [0], [0], [1], [0, 0, 1, 1], [], []>} : vector<8x32xf32>, vector<32x32xf32>, vector<8x32xf32> -> vector<8x32xf32>
    %c0_242 = arith.constant 0 : index
    %c0_243 = arith.constant 0 : index
    %388 = vector.load %arg12[%c0_242, %c0_243] : memref<32x32xf32, #tpu.memory_space<vmem>>, vector<32x32xf32>
    %cst_244 = arith.constant dense<0.000000e+00> : vector<8x32xf32>
    %389 = tpu.matmul %376, %388, %cst_244 {dimension_numbers = #tpu.dot_dimension_numbers<[1], [0], [0], [1], [0, 0, 1, 1], [], []>} : vector<8x32xf32>, vector<32x32xf32>, vector<8x32xf32> -> vector<8x32xf32>
    %c0_245 = arith.constant 0 : index
    %c0_246 = arith.constant 0 : index
    %390 = vector.load %arg13[%c0_245, %c0_246] : memref<32x32xf32, #tpu.memory_space<vmem>>, vector<32x32xf32>
    %cst_247 = arith.constant dense<0.000000e+00> : vector<8x32xf32>
    %391 = tpu.matmul %376, %390, %cst_247 {dimension_numbers = #tpu.dot_dimension_numbers<[1], [0], [0], [1], [0, 0, 1, 1], [], []>} : vector<8x32xf32>, vector<32x32xf32>, vector<8x32xf32> -> vector<8x32xf32>
    %392 = arith.addf %391, %33 : vector<8x32xf32>
    %393 = arith.addf %387, %379 : vector<8x32xf32>
    %394 = arith.negf %393 : vector<8x32xf32>
    %395 = math.exp %394 : vector<8x32xf32>
    %cst_248 = arith.constant 1.000000e+00 : f32
    %396 = vector.broadcast %cst_248 : f32 to vector<8x32xf32>
    %397 = arith.addf %396, %395 : vector<8x32xf32>
    %398 = arith.divf %396, %397 : vector<8x32xf32>
    %399 = arith.addf %389, %382 : vector<8x32xf32>
    %400 = arith.negf %399 : vector<8x32xf32>
    %401 = math.exp %400 : vector<8x32xf32>
    %cst_249 = arith.constant 1.000000e+00 : f32
    %402 = vector.broadcast %cst_249 : f32 to vector<8x32xf32>
    %403 = arith.addf %402, %401 : vector<8x32xf32>
    %404 = arith.divf %402, %403 : vector<8x32xf32>
    %405 = arith.mulf %398, %385 : vector<8x32xf32>
    %406 = arith.addf %392, %405 : vector<8x32xf32>
    %407 = math.tanh %406 : vector<8x32xf32>
    %408 = arith.subf %348, %407 : vector<8x32xf32>
    %409 = arith.mulf %404, %408 : vector<8x32xf32>
    %410 = arith.addf %407, %409 : vector<8x32xf32>
    %c0_250 = arith.constant 0 : index
    %c0_251 = arith.constant 0 : index
    %411 = vector.load %arg4[%c0_250, %c0_251] : memref<32x32xf32, #tpu.memory_space<vmem>>, vector<32x32xf32>
    %cst_252 = arith.constant dense<0.000000e+00> : vector<8x32xf32>
    %412 = tpu.matmul %376, %411, %cst_252 {dimension_numbers = #tpu.dot_dimension_numbers<[1], [0], [0], [1], [0, 0, 1, 1], [], []>} : vector<8x32xf32>, vector<32x32xf32>, vector<8x32xf32> -> vector<8x32xf32>
    %c0_253 = arith.constant 0 : index
    %c0_254 = arith.constant 0 : index
    %413 = vector.load %arg5[%c0_253, %c0_254] : memref<32x32xf32, #tpu.memory_space<vmem>>, vector<32x32xf32>
    %cst_255 = arith.constant dense<0.000000e+00> : vector<8x32xf32>
    %414 = tpu.matmul %376, %413, %cst_255 {dimension_numbers = #tpu.dot_dimension_numbers<[1], [0], [0], [1], [0, 0, 1, 1], [], []>} : vector<8x32xf32>, vector<32x32xf32>, vector<8x32xf32> -> vector<8x32xf32>
    %c0_256 = arith.constant 0 : index
    %c0_257 = arith.constant 0 : index
    %415 = vector.load %arg6[%c0_256, %c0_257] : memref<32x32xf32, #tpu.memory_space<vmem>>, vector<32x32xf32>
    %cst_258 = arith.constant dense<0.000000e+00> : vector<8x32xf32>
    %416 = tpu.matmul %376, %415, %cst_258 {dimension_numbers = #tpu.dot_dimension_numbers<[1], [0], [0], [1], [0, 0, 1, 1], [], []>} : vector<8x32xf32>, vector<32x32xf32>, vector<8x32xf32> -> vector<8x32xf32>
    %417 = arith.addf %416, %24 : vector<8x32xf32>
    %c48 = arith.constant 48 : index
    %c0_259 = arith.constant 0 : index
    %418 = vector.load %arg24[%c48, %c0_259] : memref<64x32xf32, #tpu.memory_space<vmem>>, vector<8x32xf32>
    %419 = arith.addf %418, %412 : vector<8x32xf32>
    %420 = arith.negf %419 : vector<8x32xf32>
    %421 = math.exp %420 : vector<8x32xf32>
    %cst_260 = arith.constant 1.000000e+00 : f32
    %422 = vector.broadcast %cst_260 : f32 to vector<8x32xf32>
    %423 = arith.addf %422, %421 : vector<8x32xf32>
    %424 = arith.divf %422, %423 : vector<8x32xf32>
    %c48_261 = arith.constant 48 : index
    %c0_262 = arith.constant 0 : index
    %425 = vector.load %arg25[%c48_261, %c0_262] : memref<64x32xf32, #tpu.memory_space<vmem>>, vector<8x32xf32>
    %426 = arith.addf %425, %414 : vector<8x32xf32>
    %427 = arith.negf %426 : vector<8x32xf32>
    %428 = math.exp %427 : vector<8x32xf32>
    %cst_263 = arith.constant 1.000000e+00 : f32
    %429 = vector.broadcast %cst_263 : f32 to vector<8x32xf32>
    %430 = arith.addf %429, %428 : vector<8x32xf32>
    %431 = arith.divf %429, %430 : vector<8x32xf32>
    %c48_264 = arith.constant 48 : index
    %c0_265 = arith.constant 0 : index
    %432 = vector.load %arg26[%c48_264, %c0_265] : memref<64x32xf32, #tpu.memory_space<vmem>>, vector<8x32xf32>
    %433 = arith.mulf %424, %417 : vector<8x32xf32>
    %434 = arith.addf %432, %433 : vector<8x32xf32>
    %435 = math.tanh %434 : vector<8x32xf32>
    %436 = arith.subf %376, %435 : vector<8x32xf32>
    %437 = arith.mulf %431, %436 : vector<8x32xf32>
    %438 = arith.addf %435, %437 : vector<8x32xf32>
    %c0_266 = arith.constant 0 : index
    %c0_267 = arith.constant 0 : index
    %439 = vector.load %arg14[%c0_266, %c0_267] : memref<32x32xf32, #tpu.memory_space<vmem>>, vector<32x32xf32>
    %cst_268 = arith.constant dense<0.000000e+00> : vector<8x32xf32>
    %440 = tpu.matmul %410, %439, %cst_268 {dimension_numbers = #tpu.dot_dimension_numbers<[1], [0], [0], [1], [0, 0, 1, 1], [], []>} : vector<8x32xf32>, vector<32x32xf32>, vector<8x32xf32> -> vector<8x32xf32>
    %441 = arith.addf %440, %27 : vector<8x32xf32>
    %c0_269 = arith.constant 0 : index
    %c0_270 = arith.constant 0 : index
    %442 = vector.load %arg15[%c0_269, %c0_270] : memref<32x32xf32, #tpu.memory_space<vmem>>, vector<32x32xf32>
    %cst_271 = arith.constant dense<0.000000e+00> : vector<8x32xf32>
    %443 = tpu.matmul %410, %442, %cst_271 {dimension_numbers = #tpu.dot_dimension_numbers<[1], [0], [0], [1], [0, 0, 1, 1], [], []>} : vector<8x32xf32>, vector<32x32xf32>, vector<8x32xf32> -> vector<8x32xf32>
    %444 = arith.addf %443, %30 : vector<8x32xf32>
    %c0_272 = arith.constant 0 : index
    %c0_273 = arith.constant 0 : index
    %445 = vector.load %arg16[%c0_272, %c0_273] : memref<32x32xf32, #tpu.memory_space<vmem>>, vector<32x32xf32>
    %cst_274 = arith.constant dense<0.000000e+00> : vector<8x32xf32>
    %446 = tpu.matmul %410, %445, %cst_274 {dimension_numbers = #tpu.dot_dimension_numbers<[1], [0], [0], [1], [0, 0, 1, 1], [], []>} : vector<8x32xf32>, vector<32x32xf32>, vector<8x32xf32> -> vector<8x32xf32>
    %447 = arith.addf %446, %36 : vector<8x32xf32>
    %c0_275 = arith.constant 0 : index
    %c0_276 = arith.constant 0 : index
    %448 = vector.load %arg11[%c0_275, %c0_276] : memref<32x32xf32, #tpu.memory_space<vmem>>, vector<32x32xf32>
    %cst_277 = arith.constant dense<0.000000e+00> : vector<8x32xf32>
    %449 = tpu.matmul %438, %448, %cst_277 {dimension_numbers = #tpu.dot_dimension_numbers<[1], [0], [0], [1], [0, 0, 1, 1], [], []>} : vector<8x32xf32>, vector<32x32xf32>, vector<8x32xf32> -> vector<8x32xf32>
    %c0_278 = arith.constant 0 : index
    %c0_279 = arith.constant 0 : index
    %450 = vector.load %arg12[%c0_278, %c0_279] : memref<32x32xf32, #tpu.memory_space<vmem>>, vector<32x32xf32>
    %cst_280 = arith.constant dense<0.000000e+00> : vector<8x32xf32>
    %451 = tpu.matmul %438, %450, %cst_280 {dimension_numbers = #tpu.dot_dimension_numbers<[1], [0], [0], [1], [0, 0, 1, 1], [], []>} : vector<8x32xf32>, vector<32x32xf32>, vector<8x32xf32> -> vector<8x32xf32>
    %c0_281 = arith.constant 0 : index
    %c0_282 = arith.constant 0 : index
    %452 = vector.load %arg13[%c0_281, %c0_282] : memref<32x32xf32, #tpu.memory_space<vmem>>, vector<32x32xf32>
    %cst_283 = arith.constant dense<0.000000e+00> : vector<8x32xf32>
    %453 = tpu.matmul %438, %452, %cst_283 {dimension_numbers = #tpu.dot_dimension_numbers<[1], [0], [0], [1], [0, 0, 1, 1], [], []>} : vector<8x32xf32>, vector<32x32xf32>, vector<8x32xf32> -> vector<8x32xf32>
    %454 = arith.addf %453, %33 : vector<8x32xf32>
    %455 = arith.addf %449, %441 : vector<8x32xf32>
    %456 = arith.negf %455 : vector<8x32xf32>
    %457 = math.exp %456 : vector<8x32xf32>
    %cst_284 = arith.constant 1.000000e+00 : f32
    %458 = vector.broadcast %cst_284 : f32 to vector<8x32xf32>
    %459 = arith.addf %458, %457 : vector<8x32xf32>
    %460 = arith.divf %458, %459 : vector<8x32xf32>
    %461 = arith.addf %451, %444 : vector<8x32xf32>
    %462 = arith.negf %461 : vector<8x32xf32>
    %463 = math.exp %462 : vector<8x32xf32>
    %cst_285 = arith.constant 1.000000e+00 : f32
    %464 = vector.broadcast %cst_285 : f32 to vector<8x32xf32>
    %465 = arith.addf %464, %463 : vector<8x32xf32>
    %466 = arith.divf %464, %465 : vector<8x32xf32>
    %467 = arith.mulf %460, %447 : vector<8x32xf32>
    %468 = arith.addf %454, %467 : vector<8x32xf32>
    %469 = math.tanh %468 : vector<8x32xf32>
    %470 = arith.subf %410, %469 : vector<8x32xf32>
    %471 = arith.mulf %466, %470 : vector<8x32xf32>
    %472 = arith.addf %469, %471 : vector<8x32xf32>
    %c0_286 = arith.constant 0 : index
    %c0_287 = arith.constant 0 : index
    %473 = vector.load %arg4[%c0_286, %c0_287] : memref<32x32xf32, #tpu.memory_space<vmem>>, vector<32x32xf32>
    %cst_288 = arith.constant dense<0.000000e+00> : vector<8x32xf32>
    %474 = tpu.matmul %438, %473, %cst_288 {dimension_numbers = #tpu.dot_dimension_numbers<[1], [0], [0], [1], [0, 0, 1, 1], [], []>} : vector<8x32xf32>, vector<32x32xf32>, vector<8x32xf32> -> vector<8x32xf32>
    %c0_289 = arith.constant 0 : index
    %c0_290 = arith.constant 0 : index
    %475 = vector.load %arg5[%c0_289, %c0_290] : memref<32x32xf32, #tpu.memory_space<vmem>>, vector<32x32xf32>
    %cst_291 = arith.constant dense<0.000000e+00> : vector<8x32xf32>
    %476 = tpu.matmul %438, %475, %cst_291 {dimension_numbers = #tpu.dot_dimension_numbers<[1], [0], [0], [1], [0, 0, 1, 1], [], []>} : vector<8x32xf32>, vector<32x32xf32>, vector<8x32xf32> -> vector<8x32xf32>
    %c0_292 = arith.constant 0 : index
    %c0_293 = arith.constant 0 : index
    %477 = vector.load %arg6[%c0_292, %c0_293] : memref<32x32xf32, #tpu.memory_space<vmem>>, vector<32x32xf32>
    %cst_294 = arith.constant dense<0.000000e+00> : vector<8x32xf32>
    %478 = tpu.matmul %438, %477, %cst_294 {dimension_numbers = #tpu.dot_dimension_numbers<[1], [0], [0], [1], [0, 0, 1, 1], [], []>} : vector<8x32xf32>, vector<32x32xf32>, vector<8x32xf32> -> vector<8x32xf32>
    %479 = arith.addf %478, %24 : vector<8x32xf32>
    %c56 = arith.constant 56 : index
    %c0_295 = arith.constant 0 : index
    %480 = vector.load %arg24[%c56, %c0_295] : memref<64x32xf32, #tpu.memory_space<vmem>>, vector<8x32xf32>
    %481 = arith.addf %480, %474 : vector<8x32xf32>
    %482 = arith.negf %481 : vector<8x32xf32>
    %483 = math.exp %482 : vector<8x32xf32>
    %cst_296 = arith.constant 1.000000e+00 : f32
    %484 = vector.broadcast %cst_296 : f32 to vector<8x32xf32>
    %485 = arith.addf %484, %483 : vector<8x32xf32>
    %486 = arith.divf %484, %485 : vector<8x32xf32>
    %c56_297 = arith.constant 56 : index
    %c0_298 = arith.constant 0 : index
    %487 = vector.load %arg25[%c56_297, %c0_298] : memref<64x32xf32, #tpu.memory_space<vmem>>, vector<8x32xf32>
    %488 = arith.addf %487, %476 : vector<8x32xf32>
    %489 = arith.negf %488 : vector<8x32xf32>
    %490 = math.exp %489 : vector<8x32xf32>
    %cst_299 = arith.constant 1.000000e+00 : f32
    %491 = vector.broadcast %cst_299 : f32 to vector<8x32xf32>
    %492 = arith.addf %491, %490 : vector<8x32xf32>
    %493 = arith.divf %491, %492 : vector<8x32xf32>
    %c56_300 = arith.constant 56 : index
    %c0_301 = arith.constant 0 : index
    %494 = vector.load %arg26[%c56_300, %c0_301] : memref<64x32xf32, #tpu.memory_space<vmem>>, vector<8x32xf32>
    %495 = arith.mulf %486, %479 : vector<8x32xf32>
    %496 = arith.addf %494, %495 : vector<8x32xf32>
    %497 = math.tanh %496 : vector<8x32xf32>
    %498 = arith.subf %438, %497 : vector<8x32xf32>
    %499 = arith.mulf %493, %498 : vector<8x32xf32>
    %500 = arith.addf %497, %499 : vector<8x32xf32>
    %c0_302 = arith.constant 0 : index
    %c0_303 = arith.constant 0 : index
    %501 = vector.load %arg14[%c0_302, %c0_303] : memref<32x32xf32, #tpu.memory_space<vmem>>, vector<32x32xf32>
    %cst_304 = arith.constant dense<0.000000e+00> : vector<8x32xf32>
    %502 = tpu.matmul %472, %501, %cst_304 {dimension_numbers = #tpu.dot_dimension_numbers<[1], [0], [0], [1], [0, 0, 1, 1], [], []>} : vector<8x32xf32>, vector<32x32xf32>, vector<8x32xf32> -> vector<8x32xf32>
    %503 = arith.addf %502, %27 : vector<8x32xf32>
    %c0_305 = arith.constant 0 : index
    %c0_306 = arith.constant 0 : index
    %504 = vector.load %arg15[%c0_305, %c0_306] : memref<32x32xf32, #tpu.memory_space<vmem>>, vector<32x32xf32>
    %cst_307 = arith.constant dense<0.000000e+00> : vector<8x32xf32>
    %505 = tpu.matmul %472, %504, %cst_307 {dimension_numbers = #tpu.dot_dimension_numbers<[1], [0], [0], [1], [0, 0, 1, 1], [], []>} : vector<8x32xf32>, vector<32x32xf32>, vector<8x32xf32> -> vector<8x32xf32>
    %506 = arith.addf %505, %30 : vector<8x32xf32>
    %c0_308 = arith.constant 0 : index
    %c0_309 = arith.constant 0 : index
    %507 = vector.load %arg16[%c0_308, %c0_309] : memref<32x32xf32, #tpu.memory_space<vmem>>, vector<32x32xf32>
    %cst_310 = arith.constant dense<0.000000e+00> : vector<8x32xf32>
    %508 = tpu.matmul %472, %507, %cst_310 {dimension_numbers = #tpu.dot_dimension_numbers<[1], [0], [0], [1], [0, 0, 1, 1], [], []>} : vector<8x32xf32>, vector<32x32xf32>, vector<8x32xf32> -> vector<8x32xf32>
    %509 = arith.addf %508, %36 : vector<8x32xf32>
    %c0_311 = arith.constant 0 : index
    %c0_312 = arith.constant 0 : index
    %510 = vector.load %arg11[%c0_311, %c0_312] : memref<32x32xf32, #tpu.memory_space<vmem>>, vector<32x32xf32>
    %cst_313 = arith.constant dense<0.000000e+00> : vector<8x32xf32>
    %511 = tpu.matmul %500, %510, %cst_313 {dimension_numbers = #tpu.dot_dimension_numbers<[1], [0], [0], [1], [0, 0, 1, 1], [], []>} : vector<8x32xf32>, vector<32x32xf32>, vector<8x32xf32> -> vector<8x32xf32>
    %c0_314 = arith.constant 0 : index
    %c0_315 = arith.constant 0 : index
    %512 = vector.load %arg12[%c0_314, %c0_315] : memref<32x32xf32, #tpu.memory_space<vmem>>, vector<32x32xf32>
    %cst_316 = arith.constant dense<0.000000e+00> : vector<8x32xf32>
    %513 = tpu.matmul %500, %512, %cst_316 {dimension_numbers = #tpu.dot_dimension_numbers<[1], [0], [0], [1], [0, 0, 1, 1], [], []>} : vector<8x32xf32>, vector<32x32xf32>, vector<8x32xf32> -> vector<8x32xf32>
    %c0_317 = arith.constant 0 : index
    %c0_318 = arith.constant 0 : index
    %514 = vector.load %arg13[%c0_317, %c0_318] : memref<32x32xf32, #tpu.memory_space<vmem>>, vector<32x32xf32>
    %cst_319 = arith.constant dense<0.000000e+00> : vector<8x32xf32>
    %515 = tpu.matmul %500, %514, %cst_319 {dimension_numbers = #tpu.dot_dimension_numbers<[1], [0], [0], [1], [0, 0, 1, 1], [], []>} : vector<8x32xf32>, vector<32x32xf32>, vector<8x32xf32> -> vector<8x32xf32>
    %516 = arith.addf %515, %33 : vector<8x32xf32>
    %517 = arith.addf %511, %503 : vector<8x32xf32>
    %518 = arith.negf %517 : vector<8x32xf32>
    %519 = math.exp %518 : vector<8x32xf32>
    %cst_320 = arith.constant 1.000000e+00 : f32
    %520 = vector.broadcast %cst_320 : f32 to vector<8x32xf32>
    %521 = arith.addf %520, %519 : vector<8x32xf32>
    %522 = arith.divf %520, %521 : vector<8x32xf32>
    %523 = arith.addf %513, %506 : vector<8x32xf32>
    %524 = arith.negf %523 : vector<8x32xf32>
    %525 = math.exp %524 : vector<8x32xf32>
    %cst_321 = arith.constant 1.000000e+00 : f32
    %526 = vector.broadcast %cst_321 : f32 to vector<8x32xf32>
    %527 = arith.addf %526, %525 : vector<8x32xf32>
    %528 = arith.divf %526, %527 : vector<8x32xf32>
    %529 = arith.mulf %522, %509 : vector<8x32xf32>
    %530 = arith.addf %516, %529 : vector<8x32xf32>
    %531 = math.tanh %530 : vector<8x32xf32>
    %532 = arith.subf %472, %531 : vector<8x32xf32>
    %533 = arith.mulf %528, %532 : vector<8x32xf32>
    %534 = arith.addf %531, %533 : vector<8x32xf32>
    %c0_322 = arith.constant 0 : index
    %c0_323 = arith.constant 0 : index
    %535 = vector.load %arg21[%c0_322, %c0_323] : memref<1x32xf32, #tpu.memory_space<vmem>>, vector<1x32xf32>
    %536 = vector.shape_cast %535 : vector<1x32xf32> to vector<1x32xf32>
    %537 = vector.broadcast %536 : vector<1x32xf32> to vector<8x32xf32>
    %538 = arith.mulf %534, %537 : vector<8x32xf32>
    %cst_324 = arith.constant dense<0.000000e+00> : vector<8xf32>
    %539 = vector.multi_reduction <add>, %538, %cst_324 [1] : vector<8x32xf32> to vector<8xf32>
    %540 = vector.shape_cast %539 : vector<8xf32> to vector<8x1xf32>
    %c0_325 = arith.constant 0 : index
    %c0_326 = arith.constant 0 : index
    %541 = vector.load %arg22[%c0_325, %c0_326] : memref<1x1xf32, #tpu.memory_space<vmem>>, vector<1x1xf32>
    %542 = vector.broadcast %541 : vector<1x1xf32> to vector<8x1xf32>
    %543 = arith.addf %540, %542 : vector<8x1xf32>
    %c0_327 = arith.constant 0 : index
    %c0_328 = arith.constant 0 : index
    %544 = vector.load %arg23[%c0_327, %c0_328] : memref<8x1xf32, #tpu.memory_space<vmem>>, vector<8x1xf32>
    tpu.vector_store %arg23[%c0_327, %c0_328], %543 {strides = array<i32>} : memref<8x1xf32, #tpu.memory_space<vmem>>, vector<8x1xf32>,
    return
  }
}

</mosaic_0001>

<bundles_post_ra>
// kernel: gru_forward_pallas.1
= control target key start
LH: loop header
LB: loop body
LE: loop exit
PB: predicated region body
PF: predicated region fallthrough
CT: control target
= control target key end

     0   :  { %s9716_s0 = inlined_call_operand.vmem [shape: f32[64,8], index: 0, kind: input, shape index: {}]   ;;  %s9717_s1 = inlined_call_operand.vmem [shape: f32[8,32], index: 1, kind: input, shape index: {}]   ;;  %s9718_s2 = inlined_call_operand.hbm [shape: f32[8,32], index: 2, kind: input, shape index: {}]   ;;  %s9719_s3 = inlined_call_operand.hbm [shape: f32[8,32], index: 3, kind: input, shape index: {}]   ;;  %s9720_s4 = inlined_call_operand.vmem [shape: f32[32,32], index: 4, kind: input, shape index: {}]   ;;  %s9721_s5 = inlined_call_operand.vmem [shape: f32[32,32], index: 5, kind: input, shape index: {}]   ;;  %s9722_s6 = inlined_call_operand.vmem [shape: f32[32,32], index: 6, kind: input, shape index: {}]   ;;  %s9723_s7 = inlined_call_operand.hbm [shape: f32[1,32], index: 7, kind: input, shape index: {}]   ;;  %s9724_s8 = inlined_call_operand.hbm [shape: f32[1,32], index: 8, kind: input, shape index: {}]   ;;  %s9725_s9 = inlined_call_operand.hbm [shape: f32[1,32], index: 9, kind: input, shape index: {}]   ;;  %s9726_s10 = inlined_call_operand.hbm [shape: f32[1,32], index: 10, kind: input, shape index: {}]   ;;  %s9727_s11 = inlined_call_operand.vmem [shape: f32[32,32], index: 11, kind: input, shape index: {}]   ;;  %s9728_s12 = inlined_call_operand.vmem [shape: f32[32,32], index: 12, kind: input, shape index: {}]   ;;  %s9729_s13 = inlined_call_operand.hbm [shape: f32[32,32], index: 13, kind: input, shape index: {}]   ;;  %s9730_s14 = inlined_call_operand.hbm [shape: f32[32,32], index: 14, kind: input, shape index: {}]   ;;  %s9731_s15 = inlined_call_operand.hbm [shape: f32[32,32], index: 15, kind: input, shape index: {}]   ;;  %s9732_s16 = inlined_call_operand.hbm [shape: f32[32,32], index: 16, kind: input, shape index: {}]   ;;  %s9733_s17 = inlined_call_operand.hbm [shape: f32[1,32], index: 17, kind: input, shape index: {}]   ;;  %s9734_s18 = inlined_call_operand.hbm [shape: f32[1,32], index: 18, kind: input, shape index: {}]   ;;  %s9735_s19 = inlined_call_operand.hbm [shape: f32[1,32], index: 19, kind: input, shape index: {}]   ;;  %s9736_s20 = inlined_call_operand.hbm [shape: f32[1,32], index: 20, kind: input, shape index: {}]   ;;  %s9737_s21 = inlined_call_operand.hbm [shape: f32[1,32], index: 21, kind: input, shape index: {}]   ;;  %s9738_s22 = inlined_call_operand.<no memory space> [shape: f32[1,1], index: 22, kind: input, shape index: {}]   ;;  %s9739_s23 = inlined_call_operand.vmem [shape: f32[8,1], index: 23, kind: output, shape index: {}]  }
   0x1   :  { %9747 = sst [smem:[#allocation37_spill]] %s9716_s0  ;;  %v28_v0 = vstv %s9738_s22 }
   0x2   :  { %9748 = sst [smem:[#allocation38_spill]] %s9717_s1  ;;  %29 = vst [vmem:[#allocation5] sm:$0x1] %v28_v0 }
   0x3   :  { %9749 = sst [smem:[#allocation39_spill]] %s9718_s2 }
   0x4   :  { %9750 = sst [smem:[#allocation40_spill]] %s9719_s3 }
   0x5   :  { %9751 = sst [smem:[#allocation41_spill]] %s9720_s4 }
   0x6   :  { %9752 = sst [smem:[#allocation42_spill]] %s9721_s5 }
   0x7   :  { %9753 = sst [smem:[#allocation43_spill]] %s9722_s6 }
   0x8   :  { %9754 = sst [smem:[#allocation44_spill]] %s9723_s7 }
   0x9   :  { %30 = vsyncpa [#allocation7], 0 }
   0xa   :  { %31 = vsyncpa [#allocation9], 0 }
   0xb   :  { %32 = vsyncpa [#allocation12], 0 }
   0xc   :  { %33 = vsyncpa [#allocation15], 0 }
   0xd   :  { %34 = vsyncpa [#allocation18], 0 }
   0xe   :  { %35 = vsyncpa [#allocation21], 0 }
   0xf   :  { %36 = vsyncpa [#allocation24], 0 }
  0x10   :  { %37 = vsyncpa [#allocation27], 0  ;;  %s8538_s24 = smov [#allocation8]   ;;  %s8539_s5 = smov [#allocation11]  }
  0x11   :  { %s58_s25 = sshll.u32 %s8538_s24, 4  ;;  %s84_s1 = sshll.u32 %s8539_s5, 4  ;;  %s59_s25 = int_to_ptr.vmem [resolvable:$true] %s58_s25  ;;  %s85_s1 = int_to_ptr.vmem [resolvable:$true] %s84_s1 }
  0x12   :  { %s9755_s6 = sld [smem:[#allocation40_spill]] }
  0x18   :  { %s8192_s27 = scalar_lea.hbm %s9755_s6, 128 }
  0x19   :  { %p8193_p0 = scmp.ne.s32.totalorder %s9755_s6, %s8192_s27  ;;  %p8196_p1 = scmp.lt.u32.totalorder %s8192_s27, %s9755_s6 }
  0x1b   :  { %p8198_p2 = pnand %p8196_p1, %p8193_p0 }
  0x1d   :  { %8201 = shalt.err (!%p8198_p2)
}
  0x1e   :  { %s8202_s3 = scalar_lea.vmem %s59_s25, 128  ;;  %p8207_p4 = scmp.lt.s32.totalorder %s59_s25, %s59_s25 }
  0x1f   :  { %p8203_p3 = scmp.ne.s32.totalorder %s59_s25, %s8202_s3  ;;  %p8208_p5 = scmp.lt.s32.totalorder %s8202_s3, %s8202_s3 }
  0x21   :  { %p8209_p6 = por %p8208_p5, %p8207_p4 }
  0x23   :  { %p8210_p7 = pnand %p8209_p6, %p8203_p3 }
  0x25   :  { %8213 = shalt.err (!%p8210_p7)
}
  0x26   :  { %61 = dma.hbm_to_vmem [thread:$0]  %s9755_s6, 128, %s59_s25, [#allocation9]  }
  0x27   :  { %s8214_s5 = scalar_lea.hbm %s9724_s8, 16 }
  0x28   :  { %p8215_p8 = scmp.ne.s32.totalorder %s9724_s8, %s8214_s5  ;;  %p8218_p9 = scmp.lt.u32.totalorder %s8214_s5, %s9724_s8 }
  0x2a   :  { %p8220_p10 = pnand %p8218_p9, %p8215_p8 }
  0x2c   :  { %8223 = shalt.err (!%p8220_p10)
}
  0x2d   :  { %s8224_s7 = scalar_lea.vmem %s85_s1, 16  ;;  %s8228_s28 = scalar_lea.vmem %s85_s1, 32 }
  0x2e   :  { %p8225_p11 = scmp.ne.s32.totalorder %s85_s1, %s8224_s7  ;;  %p8229_p12 = scmp.lt.s32.totalorder %s85_s1, %s85_s1 }
  0x2f   :  { %p8230_p13 = scmp.lt.s32.totalorder %s8228_s28, %s8224_s7 }
  0x31   :  { %p8231_p0 = por %p8230_p13, %p8229_p12 }
  0x33   :  { %p8232_p1 = pnand %p8231_p0, %p8225_p11 }
  0x35   :  { %8235 = shalt.err (!%p8232_p1)
}
  0x36   :  { %87 = dma.hbm_to_vmem [thread:$0]  %s9724_s8, 16, %s85_s1, [#allocation12]  }
  0x37   :  { %s8540_s29 = smov [#allocation14]   ;;  %s8236_s30 = scalar_lea.hbm %s9726_s10, 16 }
  0x38   :  { %s104_s3 = sshll.u32 %s8540_s29, 4  ;;  %p8237_p2 = scmp.ne.s32.totalorder %s9726_s10, %s8236_s30  ;;  %s105_s3 = int_to_ptr.vmem [resolvable:$true] %s104_s3 }
  0x39   :  { %p8240_p3 = scmp.lt.u32.totalorder %s8236_s30, %s9726_s10 }
  0x3b   :  { %p8242_p4 = pnand %p8240_p3, %p8237_p2 }
  0x3d   :  { %8245 = shalt.err (!%p8242_p4)
}
  0x3e   :  { %s8246_s27 = scalar_lea.vmem %s105_s3, 16  ;;  %s8250_s8 = scalar_lea.vmem %s105_s3, 32 }
  0x3f   :  { %p8247_p5 = scmp.ne.s32.totalorder %s105_s3, %s8246_s27  ;;  %p8251_p6 = scmp.lt.s32.totalorder %s105_s3, %s105_s3 }
  0x40   :  { %p8252_p7 = scmp.lt.s32.totalorder %s8250_s8, %s8246_s27 }
  0x42   :  { %p8253_p8 = por %p8252_p7, %p8251_p6 }
  0x44   :  { %p8254_p9 = pnand %p8253_p8, %p8247_p5 }
  0x46   :  { %8257 = shalt.err (!%p8254_p9)
}
  0x47   :  { %107 = dma.hbm_to_vmem [thread:$0]  %s9726_s10, 16, %s105_s3, [#allocation15]  }
  0x48   :  { %s8541_s7 = smov [#allocation17]   ;;  %s8542_s25 = smov [#allocation20]  }
  0x49   :  { %s129_s28 = sshll.u32 %s8541_s7, 4  ;;  %s153_s6 = sshll.u32 %s8542_s25, 4  ;;  %s130_s28 = int_to_ptr.vmem [resolvable:$true] %s129_s28  ;;  %s154_s6 = int_to_ptr.vmem [resolvable:$true] %s153_s6 }
  0x4a   :  { %s8258_s4 = scalar_lea.hbm %s9730_s14, 512 }
  0x4b   :  { %p8259_p10 = scmp.ne.s32.totalorder %s9730_s14, %s8258_s4  ;;  %p8262_p11 = scmp.lt.u32.totalorder %s8258_s4, %s9730_s14 }
  0x4d   :  { %p8264_p12 = pnand %p8262_p11, %p8259_p10 }
  0x4f   :  { %8267 = shalt.err (!%p8264_p12)
}
  0x50   :  { %s8268_s10 = scalar_lea.vmem %s130_s28, 512  ;;  %p8273_p0 = scmp.lt.s32.totalorder %s130_s28, %s130_s28 }
  0x51   :  { %p8269_p13 = scmp.ne.s32.totalorder %s130_s28, %s8268_s10  ;;  %p8274_p1 = scmp.lt.s32.totalorder %s8268_s10, %s8268_s10 }
  0x53   :  { %p8275_p2 = por %p8274_p1, %p8273_p0 }
  0x55   :  { %p8276_p3 = pnand %p8275_p2, %p8269_p13 }
  0x57   :  { %8279 = shalt.err (!%p8276_p3)
}
  0x58   :  { %s8543_s3 = smov 128   ;;  %s8544_s2 = smov 8  }
  0x59   :  { %135 = dma.hbm_to_vmem [thread:$0]  %s9730_s14, 512, %s130_s28, [#allocation18], %s8543_s3, %s8543_s3, %s8544_s2  }
  0x5a   :  { %s8280_s7 = scalar_lea.hbm %s9732_s16, 512 }
  0x5b   :  { %p8281_p4 = scmp.ne.s32.totalorder %s9732_s16, %s8280_s7  ;;  %p8284_p5 = scmp.lt.u32.totalorder %s8280_s7, %s9732_s16 }
  0x5d   :  { %p8286_p6 = pnand %p8284_p5, %p8281_p4 }
  0x5f   :  { %8289 = shalt.err (!%p8286_p6)
}
  0x60   :  { %s8290_s30 = scalar_lea.vmem %s154_s6, 512  ;;  %p8295_p8 = scmp.lt.s32.totalorder %s154_s6, %s154_s6 }
  0x61   :  { %p8291_p7 = scmp.ne.s32.totalorder %s154_s6, %s8290_s30  ;;  %p8296_p9 = scmp.lt.s32.totalorder %s8290_s30, %s8290_s30 }
  0x63   :  { %p8297_p10 = por %p8296_p9, %p8295_p8 }
  0x65   :  { %p8298_p11 = pnand %p8297_p10, %p8291_p7 }
  0x67   :  { %8301 = shalt.err (!%p8298_p11)
}
  0x68   :  { %159 = dma.hbm_to_vmem [thread:$0]  %s9732_s16, 512, %s154_s6, [#allocation21], %s8543_s3, %s8543_s3, %s8544_s2  }
  0x69   :  { %s8545_s24 = smov [#allocation23]   ;;  %s8546_s26 = smov [#allocation26]  }
  0x6a   :  { %s176_s5 = sshll.u32 %s8545_s24, 4  ;;  %s196_s10 = sshll.u32 %s8546_s26, 4  ;;  %s177_s5 = int_to_ptr.vmem [resolvable:$true] %s176_s5  ;;  %s197_s10 = int_to_ptr.vmem [resolvable:$true] %s196_s10 }
  0x6b   :  { %s8302_s1 = scalar_lea.hbm %s9734_s18, 16 }
  0x6c   :  { %p8303_p12 = scmp.ne.s32.totalorder %s9734_s18, %s8302_s1  ;;  %p8306_p13 = scmp.lt.u32.totalorder %s8302_s1, %s9734_s18 }
  0x6e   :  { %p8308_p0 = pnand %p8306_p13, %p8303_p12 }
  0x70   :  { %8311 = shalt.err (!%p8308_p0)
}
  0x71   :  { %s8312_s16 = scalar_lea.vmem %s177_s5, 16  ;;  %s8316_s6 = scalar_lea.vmem %s177_s5, 32 }
  0x72   :  { %p8313_p1 = scmp.ne.s32.totalorder %s177_s5, %s8312_s16  ;;  %p8317_p2 = scmp.lt.s32.totalorder %s177_s5, %s177_s5 }
  0x73   :  { %p8318_p3 = scmp.lt.s32.totalorder %s8316_s6, %s8312_s16 }
  0x75   :  { %p8319_p4 = por %p8318_p3, %p8317_p2 }
  0x77   :  { %p8320_p5 = pnand %p8319_p4, %p8313_p1 }
  0x79   :  { %8323 = shalt.err (!%p8320_p5)
}
  0x7a   :  { %179 = dma.hbm_to_vmem [thread:$0]  %s9734_s18, 16, %s177_s5, [#allocation24]  }
  0x7b   :  { %s8324_s28 = scalar_lea.hbm %s9736_s20, 16 }
  0x7c   :  { %p8325_p6 = scmp.ne.s32.totalorder %s9736_s20, %s8324_s28  ;;  %p8328_p7 = scmp.lt.u32.totalorder %s8324_s28, %s9736_s20 }
  0x7e   :  { %p8330_p8 = pnand %p8328_p7, %p8325_p6 }
  0x80   :  { %8333 = shalt.err (!%p8330_p8)
}
  0x81   :  { %s8334_s1 = scalar_lea.vmem %s197_s10, 16  ;;  %s8338_s22 = scalar_lea.vmem %s197_s10, 32 }
  0x82   :  { %p8335_p9 = scmp.ne.s32.totalorder %s197_s10, %s8334_s1  ;;  %p8339_p10 = scmp.lt.s32.totalorder %s197_s10, %s197_s10 }
  0x83   :  { %p8340_p11 = scmp.lt.s32.totalorder %s8338_s22, %s8334_s1 }
  0x85   :  { %p8341_p12 = por %p8340_p11, %p8339_p10 }
  0x87   :  { %p8342_p13 = pnand %p8341_p12, %p8335_p9 }
  0x89   :  { %8345 = shalt.err (!%p8342_p13)
}
  0x8a   :  { %199 = dma.hbm_to_vmem [thread:$0]  %s9736_s20, 16, %s197_s10, [#allocation27]  }
  0x8b   :  { %s8547_s7 = smov [#allocation6]   ;;  %s8548_s29 = smov [#allocation10]  }
  0x8c   :  { %s48_s25 = sshll.u32 %s8547_s7, 4  ;;  %s74_s16 = sshll.u32 %s8548_s29, 4  ;;  %s49_s25 = int_to_ptr.vmem [resolvable:$true] %s48_s25  ;;  %s75_s16 = int_to_ptr.vmem [resolvable:$true] %s74_s16 }
  0x8d   :  { %s9756_s4 = sld [smem:[#allocation39_spill]] }
  0x93   :  { %s8346_s30 = scalar_lea.hbm %s9756_s4, 128 }
  0x94   :  { %p8347_p0 = scmp.ne.s32.totalorder %s9756_s4, %s8346_s30  ;;  %p8350_p1 = scmp.lt.u32.totalorder %s8346_s30, %s9756_s4 }
  0x96   :  { %p8352_p2 = pnand %p8350_p1, %p8347_p0 }
  0x98   :  { %8355 = shalt.err (!%p8352_p2)
}
  0x99   :  { %s8356_s20 = scalar_lea.vmem %s49_s25, 128  ;;  %p8361_p4 = scmp.lt.s32.totalorder %s49_s25, %s49_s25 }
  0x9a   :  { %p8357_p3 = scmp.ne.s32.totalorder %s49_s25, %s8356_s20  ;;  %p8362_p5 = scmp.lt.s32.totalorder %s8356_s20, %s8356_s20 }
  0x9c   :  { %p8363_p6 = por %p8362_p5, %p8361_p4 }
  0x9e   :  { %p8364_p7 = pnand %p8363_p6, %p8357_p3 }
  0xa0   :  { %8367 = shalt.err (!%p8364_p7)
}
  0xa1   :  { %51 = dma.hbm_to_vmem [thread:$0]  %s9756_s4, 128, %s49_s25, [#allocation7]  }
  0xa2   :  { %s9757_s22 = sld [smem:[#allocation44_spill]] }
  0xa8   :  { %s8368_s18 = scalar_lea.hbm %s9757_s22, 16 }
  0xa9   :  { %p8369_p8 = scmp.ne.s32.totalorder %s9757_s22, %s8368_s18  ;;  %p8372_p9 = scmp.lt.u32.totalorder %s8368_s18, %s9757_s22 }
  0xab   :  { %p8374_p10 = pnand %p8372_p9, %p8369_p8 }
  0xad   :  { %8377 = shalt.err (!%p8374_p10)
}
  0xae   :  { %s8378_s0 = scalar_lea.vmem %s75_s16, 16  ;;  %s8382_s30 = scalar_lea.vmem %s75_s16, 32 }
  0xaf   :  { %p8379_p11 = scmp.ne.s32.totalorder %s75_s16, %s8378_s0  ;;  %p8383_p12 = scmp.lt.s32.totalorder %s75_s16, %s75_s16 }
  0xb0   :  { %p8384_p13 = scmp.lt.s32.totalorder %s8382_s30, %s8378_s0 }
  0xb2   :  { %p8385_p0 = por %p8384_p13, %p8383_p12 }
  0xb4   :  { %p8386_p1 = pnand %p8385_p0, %p8379_p11 }
  0xb6   :  { %8389 = shalt.err (!%p8386_p1)
}
  0xb7   :  { %77 = dma.hbm_to_vmem [thread:$0]  %s9757_s22, 16, %s75_s16, [#allocation9]  }
  0xb8   :  { %s8549_s14 = smov [#allocation13]   ;;  %s8550_s24 = smov [#allocation16]  }
  0xb9   :  { %s94_s28 = sshll.u32 %s8549_s14, 4  ;;  %s117_s26 = sshll.u32 %s8550_s24, 4  ;;  %s95_s28 = int_to_ptr.vmem [resolvable:$true] %s94_s28  ;;  %s118_s26 = int_to_ptr.vmem [resolvable:$true] %s117_s26 }
  0xba   :  { %s8390_s27 = scalar_lea.hbm %s9725_s9, 16 }
  0xbb   :  { %p8391_p2 = scmp.ne.s32.totalorder %s9725_s9, %s8390_s27  ;;  %p8394_p3 = scmp.lt.u32.totalorder %s8390_s27, %s9725_s9 }
  0xbd   :  { %p8396_p4 = pnand %p8394_p3, %p8391_p2 }
  0xbf   :  { %8399 = shalt.err (!%p8396_p4)
}
  0xc0   :  { %s8400_s16 = scalar_lea.vmem %s95_s28, 16  ;;  %s8404_s22 = scalar_lea.vmem %s95_s28, 32 }
  0xc1   :  { %p8401_p5 = scmp.ne.s32.totalorder %s95_s28, %s8400_s16  ;;  %p8405_p6 = scmp.lt.s32.totalorder %s95_s28, %s95_s28 }
  0xc2   :  { %p8406_p7 = scmp.lt.s32.totalorder %s8404_s22, %s8400_s16 }
  0xc4   :  { %p8407_p8 = por %p8406_p7, %p8405_p6 }
  0xc6   :  { %p8408_p9 = pnand %p8407_p8, %p8401_p5 }
  0xc8   :  { %8411 = shalt.err (!%p8408_p9)
}
  0xc9   :  { %97 = dma.hbm_to_vmem [thread:$0]  %s9725_s9, 16, %s95_s28, [#allocation12]  }
  0xca   :  { %s8412_s30 = scalar_lea.hbm %s9729_s13, 512 }
  0xcb   :  { %p8413_p10 = scmp.ne.s32.totalorder %s9729_s13, %s8412_s30  ;;  %p8416_p11 = scmp.lt.u32.totalorder %s8412_s30, %s9729_s13 }
  0xcd   :  { %p8418_p12 = pnand %p8416_p11, %p8413_p10 }
  0xcf   :  { %8421 = shalt.err (!%p8418_p12)
}
  0xd0   :  { %s8422_s20 = scalar_lea.vmem %s118_s26, 512  ;;  %p8427_p0 = scmp.lt.s32.totalorder %s118_s26, %s118_s26 }
  0xd1   :  { %p8423_p13 = scmp.ne.s32.totalorder %s118_s26, %s8422_s20  ;;  %p8428_p1 = scmp.lt.s32.totalorder %s8422_s20, %s8422_s20 }
  0xd3   :  { %p8429_p2 = por %p8428_p1, %p8427_p0 }
  0xd5   :  { %p8430_p3 = pnand %p8429_p2, %p8423_p13 }
  0xd7   :  { %8433 = shalt.err (!%p8430_p3)
}
  0xd8   :  { %123 = dma.hbm_to_vmem [thread:$0]  %s9729_s13, 512, %s118_s26, [#allocation15], %s8543_s3, %s8543_s3, %s8544_s2  }
  0xd9   :  { %s8551_s10 = smov [#allocation19]   ;;  %s8552_s8 = smov [#allocation22]  }
  0xda   :  { %s141_s27 = sshll.u32 %s8551_s10, 4  ;;  %s166_s1 = sshll.u32 %s8552_s8, 4  ;;  %s142_s27 = int_to_ptr.vmem [resolvable:$true] %s141_s27  ;;  %s167_s1 = int_to_ptr.vmem [resolvable:$true] %s166_s1 }
  0xdb   :  { %s8434_s16 = scalar_lea.hbm %s9731_s15, 512 }
  0xdc   :  { %p8435_p4 = scmp.ne.s32.totalorder %s9731_s15, %s8434_s16  ;;  %p8438_p5 = scmp.lt.u32.totalorder %s8434_s16, %s9731_s15 }
  0xde   :  { %p8440_p6 = pnand %p8438_p5, %p8435_p4 }
  0xe0   :  { %8443 = shalt.err (!%p8440_p6)
}
  0xe1   :  { %s8444_s13 = scalar_lea.vmem %s142_s27, 512  ;;  %p8449_p8 = scmp.lt.s32.totalorder %s142_s27, %s142_s27 }
  0xe2   :  { %p8445_p7 = scmp.ne.s32.totalorder %s142_s27, %s8444_s13  ;;  %p8450_p9 = scmp.lt.s32.totalorder %s8444_s13, %s8444_s13 }
  0xe4   :  { %p8451_p10 = por %p8450_p9, %p8449_p8 }
  0xe6   :  { %p8452_p11 = pnand %p8451_p10, %p8445_p7 }
  0xe8   :  { %8455 = shalt.err (!%p8452_p11)
}
  0xe9   :  { %147 = dma.hbm_to_vmem [thread:$0]  %s9731_s15, 512, %s142_s27, [#allocation18], %s8543_s3, %s8543_s3, %s8544_s2  }
  0xea   :  { %s8456_s4 = scalar_lea.hbm %s9733_s17, 16 }
  0xeb   :  { %p8457_p12 = scmp.ne.s32.totalorder %s9733_s17, %s8456_s4  ;;  %p8460_p13 = scmp.lt.u32.totalorder %s8456_s4, %s9733_s17 }
  0xed   :  { %p8462_p0 = pnand %p8460_p13, %p8457_p12 }
  0xef   :  { %8465 = shalt.err (!%p8462_p0)
}
  0xf0   :  { %s8466_s28 = scalar_lea.vmem %s167_s1, 16  ;;  %s8470_s10 = scalar_lea.vmem %s167_s1, 32 }
  0xf1   :  { %p8467_p1 = scmp.ne.s32.totalorder %s167_s1, %s8466_s28  ;;  %p8471_p2 = scmp.lt.s32.totalorder %s167_s1, %s167_s1 }
  0xf2   :  { %p8472_p3 = scmp.lt.s32.totalorder %s8470_s10, %s8466_s28 }
  0xf4   :  { %p8473_p4 = por %p8472_p3, %p8471_p2 }
  0xf6   :  { %p8474_p5 = pnand %p8473_p4, %p8467_p1 }
  0xf8   :  { %8477 = shalt.err (!%p8474_p5)
}
  0xf9   :  { %169 = dma.hbm_to_vmem [thread:$0]  %s9733_s17, 16, %s167_s1, [#allocation21]  }
  0xfa   :  { %s8553_s2 = smov [#allocation25]   ;;  %s8554_s8 = smov [#allocation28]  }
  0xfb   :  { %s186_s27 = sshll.u32 %s8553_s2, 4  ;;  %s206_s18 = sshll.u32 %s8554_s8, 4  ;;  %s187_s27 = int_to_ptr.vmem [resolvable:$true] %s186_s27  ;;  %s207_s18 = int_to_ptr.vmem [resolvable:$true] %s206_s18 }
  0xfc   :  { %s8478_s22 = scalar_lea.hbm %s9735_s19, 16 }
  0xfd   :  { %p8479_p6 = scmp.ne.s32.totalorder %s9735_s19, %s8478_s22  ;;  %p8482_p7 = scmp.lt.u32.totalorder %s8478_s22, %s9735_s19 }
  0xff   :  { %p8484_p8 = pnand %p8482_p7, %p8479_p6 }
 0x101   :  { %8487 = shalt.err (!%p8484_p8)
}
 0x102   :  { %s8488_s17 = scalar_lea.vmem %s187_s27, 16  ;;  %s8492_s1 = scalar_lea.vmem %s187_s27, 32 }
 0x103   :  { %p8489_p9 = scmp.ne.s32.totalorder %s187_s27, %s8488_s17  ;;  %p8493_p10 = scmp.lt.s32.totalorder %s187_s27, %s187_s27 }
 0x104   :  { %p8494_p11 = scmp.lt.s32.totalorder %s8492_s1, %s8488_s17 }
 0x106   :  { %p8495_p12 = por %p8494_p11, %p8493_p10 }
 0x108   :  { %p8496_p13 = pnand %p8495_p12, %p8489_p9 }
 0x10a   :  { %8499 = shalt.err (!%p8496_p13)
}
 0x10b   :  { %189 = dma.hbm_to_vmem [thread:$0]  %s9735_s19, 16, %s187_s27, [#allocation24]  }
 0x10c   :  { %s8500_s4 = scalar_lea.hbm %s9737_s21, 16 }
 0x10d   :  { %p8501_p0 = scmp.ne.s32.totalorder %s9737_s21, %s8500_s4  ;;  %p8504_p1 = scmp.lt.u32.totalorder %s8500_s4, %s9737_s21 }
 0x10f   :  { %p8506_p2 = pnand %p8504_p1, %p8501_p0 }
 0x111   :  { %8509 = shalt.err (!%p8506_p2)
}
 0x112   :  { %s8510_s28 = scalar_lea.vmem %s207_s18, 16  ;;  %s8514_s10 = scalar_lea.vmem %s207_s18, 32 }
 0x113   :  { %p8511_p3 = scmp.ne.s32.totalorder %s207_s18, %s8510_s28  ;;  %p8515_p4 = scmp.lt.s32.totalorder %s207_s18, %s207_s18 }
 0x114   :  { %p8516_p5 = scmp.lt.s32.totalorder %s8514_s10, %s8510_s28 }
 0x116   :  { %p8517_p6 = por %p8516_p5, %p8515_p4 }
 0x118   :  { %p8518_p7 = pnand %p8517_p6, %p8511_p3 }
 0x11a   :  { %8521 = shalt.err (!%p8518_p7)
}
 0x11b   :  { %209 = dma.hbm_to_vmem [thread:$0]  %s9737_s21, 16, %s207_s18, [#allocation27]  }
 0x11c   :  { %8522 = dma.done.wait [#allocation7], 128  }
 0x11d   :  { %8523 = vsyncadd [#allocation7], 4294967168 }
 0x11e   :  { %8524 = dma.done.wait [#allocation9], 144  }
 0x11f   :  { %8525 = vsyncadd [#allocation9], 4294967152 }
 0x120   :  { %8526 = dma.done.wait [#allocation12], 32  }
 0x121   :  { %8527 = vsyncadd [#allocation12], 4294967264 }
 0x122   :  { %8528 = dma.done.wait [#allocation15], 528  }
 0x123   :  { %8529 = vsyncadd [#allocation15], 4294966768 }
 0x124   :  { %8530 = dma.done.wait [#allocation18], 1024  }
 0x125   :  { %8531 = vsyncadd [#allocation18], 4294966272 }
 0x126   :  { %8532 = dma.done.wait [#allocation21], 528  }
 0x127   :  { %8533 = vsyncadd [#allocation21], 4294966768 }
 0x128   :  { %8534 = dma.done.wait [#allocation24], 32  }
 0x129   :  { %8535 = vsyncadd [#allocation24], 4294967264 }
 0x12a   :  { %8536 = dma.done.wait [#allocation27], 32  }
 0x12b   :  { %8537 = vsyncadd [#allocation27], 4294967264  ;;  %vm273_vm0 = vcmask 64512   ;;  %v412_v1 = vld [vmem:[#allocation6] sm:$0xff]  ;;  %s9758_s2 = sld [smem:[#allocation37_spill]]  ;;  %s9759_s16 = sld [smem:[#allocation41_spill]] }
 0x12c   :  { %6707 = vmatprep.subr.mxu1 %v412_v1  ;;  %s9760_s13 = sld [smem:[#allocation38_spill]]  ;;  %v8555_v9 = vmov 0.0|0.0   ;;  %v533_v14 = vld [vmem:[#allocation8] sm:$0xff]  ;;  %s9761_s8 = sld [smem:[#allocation42_spill]]  ;;  %vm8556_vm1 = vmmov 0   ;;  %v8557_v21 = vmov 0.0  }
 0x12d   :  { %6708 = vmatpush3.msra.mxu1 %v412_v1  ;;  %s9762_s22 = sld [smem:[#allocation43_spill]]  ;;  %v937_v32 = vld [vmem:[#allocation17] sm:$0xff]  ;;  %v938_v33 = vld [vmem:[#allocation17 + $0x8] sm:$0xff]  ;;  %v939_v35 = vld [vmem:[#allocation17 + $0x10] sm:$0xff]  ;;  %vm403_vm2 = vcmask 261120   ;;  %vm6160_vm3 = vcmask 7168  }
 0x12e   :  { %7527 = vmatprep.subr.bf16.mxu1 %v8555_v9  ;;  %v9004_v34 = vpack.c.bf16 %v938_v33, %v937_v32  ;;  %v940_v36 = vld [vmem:[#allocation17 + $0x18] sm:$0xff]  ;;  %v1011_v38 = vld [vmem:[#allocation19] sm:$0xff]  ;;  %v1012_v39 = vld [vmem:[#allocation19 + $0x8] sm:$0xff] }
 0x12f   :  { %v9008_v37 = vpack.c.bf16 %v940_v36, %v939_v35  ;;  %v1085_v40 = vld [vmem:[#allocation20] sm:$0xff]  ;;  %v9012_v41 = vpack.c.bf16 %v1012_v39, %v1011_v38  ;;  %v1086_v42 = vld [vmem:[#allocation20 + $0x8] sm:$0xff]  ;;  %v1013_v44 = vld [vmem:[#allocation19 + $0x10] sm:$0xff] }
 0x130   :  { %v9015_v43 = vpack.c.bf16 %v1086_v42, %v1085_v40  ;;  %v1014_v45 = vld [vmem:[#allocation19 + $0x18] sm:$0xff]  ;;  %v1087_v46 = vld [vmem:[#allocation20 + $0x10] sm:$0xff]  ;;  %v1167_v50 = vld [vmem:[#allocation16] sm:$0xff] }
 0x131   :  { %v257_v2 = vld [vmem:[%s9758_s2] sm:$0xff]  ;;  %v8879_v3 = vld [vmem:[%s9758_s2 + $0x8] sm:$0xff]  ;;  %v259_v8 = vld [vmem:[%s9758_s2 + $0x10] sm:$0xff]  ;;  %v9023_v47 = vpack.c.bf16 %v1014_v45, %v1013_v44 }
 0x132   :  { %6709 = vmatprep.mubr.msk.f32.mxu1 %vm273_vm0, %v257_v2  ;;  %v689_v4 = vld [vmem:[%s9759_s16] sm:$0xff]  ;;  %v690_v5 = vld [vmem:[%s9759_s16 + $0x8] sm:$0xff]  ;;  %v691_v10 = vld [vmem:[%s9759_s16 + $0x10] sm:$0xff]  ;;  %6695 = vmatprep.mubr.msk.f32.mxu0 %vm273_vm0, %v257_v2 }
 0x133   :  { %v265_v6 = vld [vmem:[%s9760_s13] sm:$0xff]  ;;  %v8891_v7 = vpack.c.bf16 %v690_v5, %v689_v4  ;;  %6710 = vmatmul.mubr.msk.f32.vlgmr.msra.gmra.mrb[0].mxu1 %vm273_vm0, %v8879_v3  ;;  %v692_v11 = vld [vmem:[%s9759_s16 + $0x18] sm:$0xff]  ;;  %v262_v16 = vld [vmem:[%s9758_s2 + $0x28] sm:$0xff] }
 0x134   :  { %6693 = vmatprep.subr.mxu0 %v265_v6  ;;  %6712 = vmatprep.mubr.msk.f32.mxu1 %vm273_vm0, %v259_v8  ;;  %v260_v12 = vld [vmem:[%s9758_s2 + $0x18] sm:$0xff]  ;;  %v8910_v13 = vpack.c.bf16 %v692_v11, %v691_v10  ;;  %v261_v15 = vld [vmem:[%s9758_s2 + $0x20] sm:$0xff]  ;;  %v263_v17 = vld [vmem:[%s9758_s2 + $0x30] sm:$0xff] }
 0x135   :  { %7529 = vmatpush3.bf16.msra.mxu1 %v8891_v7  ;;  %6694 = vmatpush3.msra.mxu0 %v265_v6  ;;  %v264_v18 = vld [vmem:[%s9758_s2 + $0x38] sm:$0xff]  ;;  %v766_v19 = vld [vmem:[%s9761_s8] sm:$0xff]  ;;  %v767_v20 = vld [vmem:[%s9761_s8 + $0x8] sm:$0xff] }
 0x136   :  { %6696 = vmatmul.mubr.msk.f32.vlgmr.msra.gmra.mrb[0].mxu0 %vm273_vm0, %v8879_v3  ;;  %7530 = vmatprep.subr.bf16.mxu1 %v8555_v9  ;;  %v8949_v22 = vpack.c.bf16 %v767_v20, %v766_v19  ;;  %v840_v23 = vld [vmem:[%s9762_s22] sm:$0xff]  ;;  %v841_v24 = vld [vmem:[%s9762_s22 + $0x8] sm:$0xff]  ;;  %v768_v25 = vld [vmem:[%s9761_s8 + $0x10] sm:$0xff] }
 0x137   :  { %6713 = vmatmul.mubr.msk.f32.gmra.mrb[2].mxu1 %vm273_vm0, %v260_v12  ;;  %6721 = vmatprep.subr.mxu0 %v533_v14  ;;  %v769_v26 = vld [vmem:[%s9761_s8 + $0x18] sm:$0xff]  ;;  %v8966_v27 = vpack.c.bf16 %v841_v24, %v840_v23  ;;  %v842_v29 = vld [vmem:[%s9762_s22 + $0x10] sm:$0xff]  ;;  %v1168_v51 = vld [vmem:[#allocation16 + $0x8] sm:$0xff] }
 0x138   :  { %6715 = vmatprep.mubr.msk.f32.mxu1 %vm273_vm0, %v261_v15  ;;  %6722 = vmatpush3.msra.mxu0 %v533_v14  ;;  %v8969_v28 = vpack.c.bf16 %v769_v26, %v768_v25  ;;  %v843_v30 = vld [vmem:[%s9762_s22 + $0x18] sm:$0xff]  ;;  %v1159_v52 = vld [vmem:[%s9727_s11] sm:$0xff]  ;;  %v9034_v53 = vpack.c.bf16 %v1168_v51, %v1167_v50  ;;  %v1160_v54 = vld [vmem:[%s9727_s11 + $0x8] sm:$0xff] }
 0x139   :  { %7532 = vmatpush3.bf16.msra.mxu1 %v8910_v13  ;;  %6698 = vmatprep.mubr.msk.f32.mxu0 %vm273_vm0, %v259_v8  ;;  %v8986_v31 = vpack.c.bf16 %v843_v30, %v842_v29  ;;  %v1088_v48 = vld [vmem:[#allocation20 + $0x18] sm:$0xff]  ;;  %v9040_v55 = vpack.c.bf16 %v1160_v54, %v1159_v52  ;;  %v1169_v56 = vld [vmem:[#allocation16 + $0x10] sm:$0xff] }
 0x13a   :  { %6699 = vmatmul.mubr.msk.f32.gmra.mrb[2].mxu0 %vm273_vm0, %v260_v12  ;;  %7533 = vmatprep.subr.bf16.mxu1 %v8555_v9  ;;  %v9025_v49 = vpack.c.bf16 %v1088_v48, %v1087_v46  ;;  %v1170_v57 = vld [vmem:[#allocation16 + $0x18] sm:$0xff] }
 0x13b   :  { %6716 = vmatmul.mubr.msk.f32.gmra.mrb[4].mxu1 %vm273_vm0, %v262_v16  ;;  %6701 = vmatprep.mubr.msk.f32.mxu0 %vm273_vm0, %v261_v15  ;;  %v1161_v58 = vld [vmem:[%s9727_s11 + $0x10] sm:$0xff]  ;;  %v9050_v59 = vpack.c.bf16 %v1170_v57, %v1169_v56  ;;  %v1162_v60 = vld [vmem:[%s9727_s11 + $0x18] sm:$0xff] }
 0x13c   :  { %6718 = vmatprep.mubr.msk.f32.mxu1 %vm273_vm0, %v263_v17  ;;  %7539 = vmatprep.subr.bf16.mxu0 %v8555_v9  ;;  %v9057_v61 = vpack.c.bf16 %v1162_v60, %v1161_v58  ;;  %v6183_v62 = vld [vmem:[#allocation11] ss:$0 sm:$0xff]  ;;  %v6192_v50 = vld [vmem:[#allocation13] ss:$0 sm:$0xff] }
 0x13e   :  { %6702 = vmatmul.mubr.msk.f32.gmra.mrb[4].mxu0 %vm273_vm0, %v262_v16 }
 0x13f   :  { %6719 = vmatmul.mubr.msk.f32.gmra.mrb[6].mxu1 %vm273_vm0, %v264_v18  ;;  %6704 = vmatprep.mubr.msk.f32.mxu0 %vm273_vm0, %v263_v17 }
 0x140   :  { %6743 = vmatprep.mubr.msk.f32.mxu1 %vm8556_vm1, %v8557_v21 }
 0x142   :  { %6705 = vmatmul.mubr.msk.f32.gmra.mrb[6].mxu0 %vm273_vm0, %v264_v18 }
 0x143   :  { %6744 = vmatmul.mubr.f32.vlgmr.msra.gmra.mrb[8].mxu1 %v8557_v21  ;;  %6723 = vmatprep.mubr.msk.f32.mxu0 %vm273_vm0, %v257_v2  ;;  %v6174_v2 = vld [vmem:[#allocation10] ss:$0 sm:$0xff] }
 0x144   :  { %7535 = vmatpush3.bf16.msra.mxu1 %v8949_v22  ;;  %6754 = vmatprep.mubr.msk.f32.mxu1 %vm8556_vm1, %v8557_v21 }
 0x145   :  { %7536 = vmatprep.subr.bf16.mxu1 %v8555_v9 }
 0x146   :  { %6724 = vmatmul.mubr.msk.f32.vlgmr.msra.gmra.mrb[8].mxu0 %vm273_vm0, %v8879_v3 }
 0x147   :  { %7541 = vmatpush3.bf16.msra.mxu0 %v8966_v27  ;;  %6726 = vmatprep.mubr.msk.f32.mxu0 %vm273_vm0, %v259_v8 }
 0x148   :  { %7538 = vmatpush3.bf16.msra.mxu1 %v8969_v28  ;;  %7542 = vmatprep.subr.bf16.mxu0 %v8555_v9 }
 0x149   :  { %7545 = vmatprep.subr.bf16.mxu1 %v8555_v9 }
 0x14a   :  { %6727 = vmatmul.mubr.msk.f32.gmra.mrb[10].mxu0 %vm273_vm0, %v260_v12 }
 0x14b   :  { %6755 = vmatmul.mubr.f32.vlgmr.msra.gmra.mrb[10].mxu1 %v8557_v21  ;;  %6729 = vmatprep.mubr.msk.f32.mxu0 %vm273_vm0, %v261_v15 }
 0x14c   :  { %7544 = vmatpush3.bf16.msra.mxu0 %v8986_v31  ;;  %6776 = vmatprep.mubr.msk.f32.mxu1 %vm8556_vm1, %v8557_v21 }
 0x14d   :  { %7551 = vmatprep.subr.bf16.mxu0 %v8555_v9  ;;  %7547 = vmatpush3.bf16.msra.mxu1 %v9004_v34 }
 0x14e   :  { %6730 = vmatmul.mubr.msk.f32.gmra.mrb[12].mxu0 %vm273_vm0, %v262_v16  ;;  %7548 = vmatprep.subr.bf16.mxu1 %v8555_v9 }
 0x14f   :  { %6732 = vmatprep.mubr.msk.f32.mxu0 %vm273_vm0, %v263_v17 }
 0x151   :  { %7550 = vmatpush3.bf16.msra.mxu1 %v9008_v37 }
 0x152   :  { %6733 = vmatmul.mubr.msk.f32.gmra.mrb[14].mxu0 %vm273_vm0, %v264_v18  ;;  %7557 = vmatprep.subr.bf16.mxu1 %v8555_v9 }
 0x153   :  { %6765 = vmatprep.mubr.msk.f32.mxu0 %vm8556_vm1, %v8557_v21 }
 0x154   :  { %6777 = vmatmul.mubr.f32.vlgmr.msra.gmra.mrb[12].mxu1 %v8557_v21 }
 0x155   :  { %6798 = vmatprep.mubr.msk.f32.mxu1 %vm8556_vm1, %v8557_v21  ;;  %7559 = vmatpush3.bf16.msra.mxu1 %v9015_v43 }
 0x156   :  { %6766 = vmatmul.mubr.f32.vlgmr.msra.gmra.mrb[16].mxu0 %v8557_v21  ;;  %7560 = vmatprep.subr.bf16.mxu1 %v8555_v9 }
 0x157   :  { %6787 = vmatprep.mubr.msk.f32.mxu0 %vm8556_vm1, %v8557_v21  ;;  %7553 = vmatpush3.bf16.msra.mxu0 %v9012_v41 }
 0x158   :  { %7554 = vmatprep.subr.bf16.mxu0 %v8555_v9 }
 0x159   :  { %7562 = vmatpush3.bf16.msra.mxu1 %v9025_v49 }
 0x15a   :  { %7569 = vmatprep.subr.bf16.mxu1 %v8555_v9 }
 0x15b   :  { %7556 = vmatpush3.bf16.msra.mxu0 %v9023_v47 }
 0x15c   :  { %7563 = vmatprep.subr.bf16.mxu0 %v8555_v9  ;;  %6799 = vmatmul.mubr.f32.vlgmr.msra.gmra.mrb[14].mxu1 %v8557_v21 }
 0x15d   :  { %7571 = vmatpush3.bf16.msra.mxu1 %v9040_v55  ;;  %6820 = vmatprep.mubr.msk.f32.mxu1 %vm8556_vm1, %v8557_v21 }
 0x15e   :  { %6788 = vmatmul.mubr.f32.vlgmr.msra.gmra.mrb[18].mxu0 %v8557_v21  ;;  %7572 = vmatprep.subr.bf16.mxu1 %v8555_v9 }
 0x15f   :  { %7565 = vmatpush3.bf16.msra.mxu0 %v9034_v53  ;;  %6809 = vmatprep.mubr.msk.f32.mxu0 %vm8556_vm1, %v8557_v21 }
 0x160   :  { %7566 = vmatprep.subr.bf16.mxu0 %v8555_v9 }
 0x161   :  { %7574 = vmatpush3.bf16.msra.mxu1 %v9057_v61 }
 0x162   :  { %7581 = vmatprep.subr.bf16.mxu1 %v8555_v9 }
 0x163   :  { %7568 = vmatpush3.bf16.msra.mxu0 %v9050_v59 }
 0x164   :  { %7575 = vmatprep.subr.bf16.mxu0 %v8555_v9 }
 0x206   :  { %v6711_v63 = vpop.f32.mrb[0].mxu1 }
 0x207   :  { %v492_v0 = vadd.f32 %v6711_v63, %v6183_v62  ;;  %v486_v1 = vpop.f32.mrb[1].mxu1 }
 0x208   :  { %v487_v3 = vadd.f32 %v6183_v62, %v486_v1 }
 0x209   :  { %526 = vst.msk [vmem:[#allocation3 + $0x8] sm:$0xff] %vm403_vm2, %v492_v0  ;;  %v6697_v4 = vpop.f32.mrb[0].mxu0 }
 0x20a   :  { %525 = vst.msk [vmem:[#allocation3] sm:$0xff] %vm403_vm2, %v487_v3  ;;  %v6714_v5 = vpop.f32.mrb[2].mxu1  ;;  %v370_v6 = vadd.f32 %v6697_v4, %v6174_v2  ;;  %v364_v8 = vpop.f32.mrb[1].mxu0 }
 0x20b   :  { %v502_v10 = vadd.f32 %v6714_v5, %v6183_v62  ;;  %v496_v11 = vpop.f32.mrb[3].mxu1  ;;  %v365_v12 = vadd.f32 %v6174_v2, %v364_v8 }
 0x20c   :  { %405 = vst.msk [vmem:[#allocation2 + $0x8] sm:$0xff] %vm403_vm2, %v370_v6  ;;  %v497_v14 = vadd.f32 %v6183_v62, %v496_v11 }
 0x20d   :  { %528 = vst.msk [vmem:[#allocation3 + $0x18] sm:$0xff] %vm403_vm2, %v502_v10  ;;  %404 = vst.msk [vmem:[#allocation2] sm:$0xff] %vm403_vm2, %v365_v12  ;;  %v6700_v15 = vpop.f32.mrb[2].mxu0 }
 0x20e   :  { %527 = vst.msk [vmem:[#allocation3 + $0x10] sm:$0xff] %vm403_vm2, %v497_v14  ;;  %v6717_v16 = vpop.f32.mrb[4].mxu1  ;;  %v380_v17 = vadd.f32 %v6700_v15, %v6174_v2  ;;  %v374_v18 = vpop.f32.mrb[3].mxu0 }
 0x20f   :  { %v512_v19 = vadd.f32 %v6717_v16, %v6183_v62  ;;  %v506_v20 = vpop.f32.mrb[5].mxu1  ;;  %v375_v23 = vadd.f32 %v6174_v2, %v374_v18 }
 0x210   :  { %v507_v24 = vadd.f32 %v6183_v62, %v506_v20  ;;  %407 = vst.msk [vmem:[#allocation2 + $0x18] sm:$0xff] %vm403_vm2, %v380_v17  ;;  %v9089_v20 = vld [vmem:[#allocation14] ss:$0 sm:$0xff] }
 0x211   :  { %530 = vst.msk [vmem:[#allocation3 + $0x28] sm:$0xff] %vm403_vm2, %v512_v19  ;;  %406 = vst.msk [vmem:[#allocation2 + $0x10] sm:$0xff] %vm403_vm2, %v375_v23  ;;  %v6703_v25 = vpop.f32.mrb[4].mxu0 }
 0x212   :  { %529 = vst.msk [vmem:[#allocation3 + $0x20] sm:$0xff] %vm403_vm2, %v507_v24  ;;  %v6720_v26 = vpop.f32.mrb[6].mxu1  ;;  %v390_v29 = vadd.f32 %v6703_v25, %v6174_v2  ;;  %v384_v30 = vpop.f32.mrb[5].mxu0 }
 0x213   :  { %v522_v32 = vadd.f32 %v6720_v26, %v6183_v62  ;;  %v516_v33 = vpop.f32.mrb[7].mxu1  ;;  %v385_v35 = vadd.f32 %v6174_v2, %v384_v30 }
 0x214   :  { %v517_v36 = vadd.f32 %v6183_v62, %v516_v33  ;;  %v914_v38 = vld [vmem:[#allocation2] sm:$0xff]  ;;  %409 = vst.msk [vmem:[#allocation2 + $0x28] sm:$0xff] %vm403_vm2, %v390_v29 }
 0x215   :  { %532 = vst.msk [vmem:[#allocation3 + $0x38] sm:$0xff] %vm403_vm2, %v522_v32  ;;  %408 = vst.msk [vmem:[#allocation2 + $0x20] sm:$0xff] %vm403_vm2, %v385_v35  ;;  %v6706_v39 = vpop.f32.mrb[6].mxu0  ;;  %v922_v62 = vld [vmem:[#allocation3] sm:$0xff] }
 0x216   :  { %531 = vst.msk [vmem:[#allocation3 + $0x30] sm:$0xff] %vm403_vm2, %v517_v36  ;;  %v762_v40 = vpop.f32.mrb[8].mxu1  ;;  %v400_v42 = vadd.f32 %v6706_v39, %v6174_v2  ;;  %v394_v44 = vpop.f32.mrb[7].mxu0  ;;  %v1163_v36 = vld [vmem:[%s9728_s12] sm:$0xff] }
 0x217   :  { %v915_v45 = vadd.f32 %v914_v38, %v762_v40  ;;  %v6745_v46 = vpop.f32.mrb[9].mxu1  ;;  %v395_v48 = vadd.f32 %v6174_v2, %v394_v44  ;;  %v1164_v38 = vld [vmem:[%s9728_s12 + $0x8] sm:$0xff] }
 0x218   :  { %411 = vst.msk [vmem:[#allocation2 + $0x38] sm:$0xff] %vm403_vm2, %v400_v42  ;;  %v9098_v42 = vpack.c.bf16 %v1164_v38, %v1163_v36  ;;  %v1166_v46 = vld [vmem:[%s9728_s12 + $0x18] sm:$0xff] }
 0x219   :  { %v6206_v51 = vmul.f32 -1.442695, %v915_v45  ;;  %410 = vst.msk [vmem:[#allocation2 + $0x30] sm:$0xff] %vm403_vm2, %v395_v48  ;;  %v6725_v52 = vpop.f32.mrb[8].mxu0  ;;  %v1165_v45 = vld [vmem:[%s9728_s12 + $0x10] sm:$0xff] }
 0x21a   :  { %v613_v54 = vadd.f32 %v6725_v52, %v6192_v50  ;;  %v607_v56 = vpop.f32.mrb[9].mxu0  ;;  %v9114_v48 = vpack.c.bf16 %v1166_v46, %v1165_v45  ;;  %v9158_v52 = vld [vmem:[#allocation22] ss:$0 sm:$0xff] }
 0x21b   :  { %8027 = vpow2.f32 %v6206_v51  ;;  %v608_v57 = vadd.f32 %v6192_v50, %v607_v56 }
 0x21c   :  { %647 = vst.msk [vmem:[#allocation4 + $0x8] sm:$0xff] %vm403_vm2, %v613_v54 }
 0x21d   :  { %646 = vst.msk [vmem:[#allocation4] sm:$0xff] %vm403_vm2, %v608_v57  ;;  %v6728_v58 = vpop.f32.mrb[10].mxu0 }
 0x21e   :  { %v836_v60 = vpop.f32.mrb[10].mxu1  ;;  %v623_v63 = vadd.f32 %v6728_v58, %v6192_v50  ;;  %v617_v0 = vpop.f32.mrb[11].mxu0 }
 0x21f   :  { %v923_v1 = vadd.f32 %v922_v62, %v836_v60  ;;  %v618_v2 = vadd.f32 %v6192_v50, %v617_v0  ;;  %v6756_v3 = vpop.f32.mrb[11].mxu1 }
 0x220   :  { %649 = vst.msk [vmem:[#allocation4 + $0x18] sm:$0xff] %vm403_vm2, %v623_v63  ;;  %v9161_v63 = vld [vmem:[#allocation23] ss:$0 sm:$0xff] }
 0x221   :  { %648 = vst.msk [vmem:[#allocation4 + $0x10] sm:$0xff] %vm403_vm2, %v618_v2  ;;  %v6731_v4 = vpop.f32.mrb[12].mxu0  ;;  %v6207_v8 = vmul.f32 -1.442695, %v923_v1  ;;  %v1612_v2 = vld [vmem:[#allocation2 + $0x8] sm:$0xff] }
 0x222   :  { %v633_v5 = vadd.f32 %v6731_v4, %v6192_v50  ;;  %v627_v6 = vpop.f32.mrb[13].mxu0 }
 0x223   :  { %v628_v10 = vadd.f32 %v6192_v50, %v627_v6  ;;  %8029 = vpow2.f32 %v6207_v8 }
 0x224   :  { %651 = vst.msk [vmem:[#allocation4 + $0x28] sm:$0xff] %vm403_vm2, %v633_v5  ;;  %v930_v29 = vld [vmem:[#allocation4] sm:$0xff] }
 0x225   :  { %v8028_v11 = vpop.eup %8027  ;;  %650 = vst.msk [vmem:[#allocation4 + $0x20] sm:$0xff] %vm403_vm2, %v628_v10  ;;  %v6734_v12 = vpop.f32.mrb[14].mxu0 }
 0x226   :  { %v919_v14 = vadd.f32 1.0, %v8028_v11  ;;  %v643_v15 = vadd.f32 %v6734_v12, %v6192_v50  ;;  %v637_v16 = vpop.f32.mrb[15].mxu0 }
 0x227   :  { %v638_v17 = vadd.f32 %v6192_v50, %v637_v16  ;;  %v1620_v16 = vld [vmem:[#allocation3 + $0x8] sm:$0xff] }
 0x228   :  { %8031 = vrcp.f32 %v919_v14  ;;  %653 = vst.msk [vmem:[#allocation4 + $0x38] sm:$0xff] %vm403_vm2, %v643_v15 }
 0x229   :  { %652 = vst.msk [vmem:[#allocation4 + $0x30] sm:$0xff] %vm403_vm2, %v638_v17  ;;  %v910_v18 = vpop.f32.mrb[16].mxu0 }
 0x22a   :  { %v6767_v19 = vpop.f32.mrb[17].mxu0  ;;  %v911_v23 = vadd.f32 %v9089_v20, %v910_v18 }
 0x22d   :  { %v8030_v24 = vpop.eup %8029 }
 0x22e   :  { %v927_v30 = vadd.f32 1.0, %v8030_v24 }
 0x22f   :  { %v1155_v50 = vpop.f32.mrb[14].mxu1 }
 0x230   :  { %v6800_v51 = vpop.f32.mrb[15].mxu1 }
 0x232   :  { %v8032_v25 = vpop.eup %8031 }
 0x233   :  { %v931_v26 = vmul.f32 %v8032_v25, %v911_v23  ;;  %v9164_v25 = vld [vmem:[#allocation26] ss:$0 sm:$0xff] }
 0x235   :  { %v932_v32 = vadd.f32 %v931_v26, %v930_v29  ;;  %v9166_v29 = vld [vmem:[#allocation25] ss:$0 sm:$0xff] }
 0x237   :  { %8033 = vtanh.f32 %v932_v32  ;;  %v1156_v32 = vadd.f32 %v9164_v25, %v1155_v50 }
 0x238   :  { %8035 = vrcp.f32 %v927_v30 }
 0x241   :  { %v8034_v33 = vpop.eup %8033 }
 0x242   :  { %v934_v35 = vsub.f32 0.0, %v8034_v33  ;;  %v8036_v39 = vpop.eup %8035 }
 0x244   :  { %v935_v40 = vmul.f32 %v8036_v39, %v934_v35 }
 0x246   :  { %v9100_v44 = vadd.f32 %v8034_v33, %v935_v40 }
 0x248   :  { %6810 = vmatmul.mubr.msk.f32.vlgmr.msra.gmra.mrb[20].mxu0 %vm403_vm2, %v9100_v44  ;;  %6821 = vmatmul.mubr.msk.f32.vlgmr.msra.gmra.mrb[12].mxu1 %vm403_vm2, %v9100_v44 }
 0x249   :  { %7577 = vmatpush3.bf16.msra.mxu0 %v9098_v42  ;;  %7583 = vmatpush3.bf16.msra.mxu1 %v8891_v7 }
 0x24a   :  { %7578 = vmatprep.subr.bf16.mxu0 %v8555_v9  ;;  %7584 = vmatprep.subr.bf16.mxu1 %v8555_v9 }
 0x24b   :  { %6831 = vmatprep.mubr.msk.f32.mxu0 %vm8556_vm1, %v8557_v21  ;;  %6842 = vmatprep.mubr.msk.f32.mxu1 %vm8556_vm1, %v8557_v21 }
 0x24d   :  { %7580 = vmatpush3.bf16.msra.mxu0 %v9114_v48  ;;  %7586 = vmatpush3.bf16.msra.mxu1 %v8910_v13 }
 0x24e   :  { %7587 = vmatprep.subr.bf16.mxu0 %v8555_v9  ;;  %7593 = vmatprep.subr.bf16.mxu1 %v8555_v9 }
 0x250   :  { %6832 = vmatmul.mubr.msk.f32.vlgmr.msra.gmra.mrb[18].mxu0 %vm403_vm2, %v9100_v44  ;;  %6843 = vmatmul.mubr.msk.f32.vlgmr.msra.gmra.mrb[16].mxu1 %vm403_vm2, %v9100_v44 }
 0x251   :  { %7589 = vmatpush3.bf16.msra.mxu0 %v8949_v22  ;;  %7595 = vmatpush3.bf16.msra.mxu1 %v8966_v27 }
 0x252   :  { %7590 = vmatprep.subr.bf16.mxu0 %v8555_v9  ;;  %7596 = vmatprep.subr.bf16.mxu1 %v8555_v9 }
 0x253   :  { %6853 = vmatprep.mubr.msk.f32.mxu0 %vm8556_vm1, %v8557_v21  ;;  %6864 = vmatprep.mubr.msk.f32.mxu1 %vm8556_vm1, %v8557_v21 }
 0x255   :  { %7592 = vmatpush3.bf16.msra.mxu0 %v8969_v28  ;;  %7598 = vmatpush3.bf16.msra.mxu1 %v8986_v31 }
 0x256   :  { %7599 = vmatprep.subr.bf16.mxu0 %v8555_v9  ;;  %7605 = vmatprep.subr.bf16.mxu1 %v8555_v9 }
 0x258   :  { %6854 = vmatmul.mubr.msk.f32.vlgmr.msra.gmra.mrb[22].mxu0 %vm403_vm2, %v9100_v44  ;;  %6865 = vmatmul.mubr.msk.f32.vlgmr.msra.gmra.mrb[18].mxu1 %vm403_vm2, %v9100_v44 }
 0x259   :  { %7601 = vmatpush3.bf16.msra.mxu0 %v9004_v34  ;;  %7607 = vmatpush3.bf16.msra.mxu1 %v9012_v41 }
 0x25a   :  { %7602 = vmatprep.subr.bf16.mxu0 %v8555_v9  ;;  %7608 = vmatprep.subr.bf16.mxu1 %v8555_v9 }
 0x25b   :  { %6875 = vmatprep.mubr.msk.f32.mxu0 %vm8556_vm1, %v8557_v21  ;;  %6886 = vmatprep.mubr.msk.f32.mxu1 %vm8556_vm1, %v8557_v21 }
 0x25d   :  { %7604 = vmatpush3.bf16.msra.mxu0 %v9008_v37  ;;  %7610 = vmatpush3.bf16.msra.mxu1 %v9023_v47 }
 0x25e   :  { %7611 = vmatprep.subr.bf16.mxu0 %v8555_v9  ;;  %7617 = vmatprep.subr.bf16.mxu1 %v8555_v9 }
 0x31b   :  { %v1240_v54 = vpop.f32.mrb[20].mxu0  ;;  %v1310_v56 = vpop.f32.mrb[12].mxu1 }
 0x31c   :  { %v7959_v57 = vadd.f32 %v9158_v52, %v1310_v56  ;;  %v6811_v58 = vpop.f32.mrb[21].mxu0  ;;  %v6822_v60 = vpop.f32.mrb[13].mxu1  ;;  %v1241_v35 = vadd.f32 %v9166_v29, %v1240_v54  ;;  %v1628_v56 = vld [vmem:[#allocation4 + $0x8] sm:$0xff] }
 0x31e   :  { %v6210_v62 = vmul.f32 -1.442695, %v7959_v57 }
 0x320   :  { %8037 = vpow2.f32 %v6210_v62 }
 0x323   :  { %v1386_v0 = vpop.f32.mrb[18].mxu0  ;;  %v1468_v1 = vpop.f32.mrb[16].mxu1 }
 0x324   :  { %v7960_v3 = vadd.f32 %v9161_v63, %v1386_v0  ;;  %v1613_v4 = vadd.f32 %v1612_v2, %v1468_v1  ;;  %v6833_v5 = vpop.f32.mrb[19].mxu0  ;;  %v6844_v6 = vpop.f32.mrb[17].mxu1 }
 0x326   :  { %v6216_v8 = vmul.f32 -1.442695, %v1613_v4  ;;  %v6212_v10 = vmul.f32 -1.442695, %v7960_v3 }
 0x328   :  { %8039 = vpow2.f32 %v6216_v8 }
 0x329   :  { %8041 = vpow2.f32 %v6212_v10 }
 0x32a   :  { %v8038_v11 = vpop.eup %8037 }
 0x32b   :  { %v1317_v12 = vadd.f32 1.0, %v8038_v11  ;;  %v1538_v14 = vpop.f32.mrb[22].mxu0  ;;  %v1608_v15 = vpop.f32.mrb[18].mxu1 }
 0x32c   :  { %v6855_v17 = vpop.f32.mrb[23].mxu0  ;;  %v6866_v18 = vpop.f32.mrb[19].mxu1  ;;  %v1621_v19 = vadd.f32 %v1620_v16, %v1538_v14  ;;  %v1609_v45 = vadd.f32 %v9089_v20, %v1608_v15 }
 0x32d   :  { %8043 = vrcp.f32 %v1317_v12 }
 0x32e   :  { %v6217_v23 = vmul.f32 -1.442695, %v1621_v19  ;;  %v2289_v19 = vld [vmem:[#allocation2 + $0x10] sm:$0xff] }
 0x330   :  { %8045 = vpow2.f32 %v6217_v23 }
 0x332   :  { %v8040_v24 = vpop.eup %8039 }
 0x333   :  { %v1617_v26 = vadd.f32 1.0, %v8040_v24  ;;  %v8042_v30 = vpop.eup %8041 }
 0x334   :  { %v1393_v39 = vadd.f32 1.0, %v8042_v30 }
 0x335   :  { %8047 = vrcp.f32 %v1617_v26 }
 0x337   :  { %v8044_v33 = vpop.eup %8043 }
 0x338   :  { %v1396_v36 = vmul.f32 %v8044_v33, %v1156_v32 }
 0x33a   :  { %v1397_v38 = vadd.f32 %v1396_v36, %v1241_v35  ;;  %v8046_v40 = vpop.eup %8045 }
 0x33b   :  { %v1625_v57 = vadd.f32 1.0, %v8046_v40 }
 0x33c   :  { %8049 = vtanh.f32 %v1397_v38 }
 0x33d   :  { %8051 = vrcp.f32 %v1393_v39  ;;  %v2297_v39 = vld [vmem:[#allocation3 + $0x10] sm:$0xff] }
 0x33f   :  { %v8048_v46 = vpop.eup %8047 }
 0x340   :  { %v1629_v51 = vmul.f32 %v8048_v46, %v1609_v45 }
 0x342   :  { %v1630_v58 = vadd.f32 %v1629_v51, %v1628_v56 }
 0x344   :  { %8053 = vtanh.f32 %v1630_v58 }
 0x345   :  { %8055 = vrcp.f32 %v1625_v57 }
 0x346   :  { %v8050_v60 = vpop.eup %8049 }
 0x347   :  { %v1399_v50 = vsub.f32 0.0, %v8050_v60  ;;  %v8052_v62 = vpop.eup %8051 }
 0x349   :  { %v1400_v0 = vmul.f32 %v8052_v62, %v1399_v50 }
 0x34b   :  { %v9171_v54 = vadd.f32 %v8050_v60, %v1400_v0 }
 0x34d   :  { %6876 = vmatmul.mubr.msk.f32.vlgmr.msra.gmra.mrb[24].mxu0 %vm403_vm2, %v9171_v54  ;;  %6887 = vmatmul.mubr.msk.f32.vlgmr.msra.gmra.mrb[20].mxu1 %vm403_vm2, %v9171_v54 }
 0x34e   :  { %7613 = vmatpush3.bf16.msra.mxu0 %v9015_v43  ;;  %7619 = vmatpush3.bf16.msra.mxu1 %v9034_v53  ;;  %v8054_v1 = vpop.eup %8053 }
 0x34f   :  { %7614 = vmatprep.subr.bf16.mxu0 %v8555_v9  ;;  %7620 = vmatprep.subr.bf16.mxu1 %v8555_v9  ;;  %v1632_v2 = vsub.f32 %v9100_v44, %v8054_v1  ;;  %v8056_v3 = vpop.eup %8055 }
 0x350   :  { %6897 = vmatprep.mubr.msk.f32.mxu0 %vm8556_vm1, %v8557_v21  ;;  %6908 = vmatprep.mubr.msk.f32.mxu1 %vm8556_vm1, %v8557_v21 }
 0x351   :  { %v1633_v4 = vmul.f32 %v8056_v3, %v1632_v2 }
 0x352   :  { %7616 = vmatpush3.bf16.msra.mxu0 %v9025_v49  ;;  %7622 = vmatpush3.bf16.msra.mxu1 %v9050_v59 }
 0x353   :  { %7623 = vmatprep.subr.bf16.mxu0 %v8555_v9  ;;  %7629 = vmatprep.subr.bf16.mxu1 %v8555_v9  ;;  %v9190_v5 = vadd.f32 %v8054_v1, %v1633_v4 }
 0x355   :  { %6898 = vmatmul.mubr.msk.f32.vlgmr.msra.gmra.mrb[26].mxu0 %vm403_vm2, %v9171_v54  ;;  %6909 = vmatmul.mubr.msk.f32.vlgmr.msra.gmra.mrb[22].mxu1 %vm403_vm2, %v9190_v5 }
 0x356   :  { %7625 = vmatpush3.bf16.msra.mxu0 %v9040_v55  ;;  %7631 = vmatpush3.bf16.msra.mxu1 %v9098_v42 }
 0x357   :  { %7626 = vmatprep.subr.bf16.mxu0 %v8555_v9  ;;  %7632 = vmatprep.subr.bf16.mxu1 %v8555_v9 }
 0x358   :  { %6919 = vmatprep.mubr.msk.f32.mxu0 %vm8556_vm1, %v8557_v21  ;;  %6930 = vmatprep.mubr.msk.f32.mxu1 %vm8556_vm1, %v8557_v21 }
 0x35a   :  { %7628 = vmatpush3.bf16.msra.mxu0 %v9057_v61  ;;  %7634 = vmatpush3.bf16.msra.mxu1 %v9114_v48 }
 0x35b   :  { %7635 = vmatprep.subr.bf16.mxu0 %v8555_v9  ;;  %7641 = vmatprep.subr.bf16.mxu1 %v8555_v9 }
 0x35d   :  { %6920 = vmatmul.mubr.msk.f32.vlgmr.msra.gmra.mrb[24].mxu0 %vm403_vm2, %v9190_v5  ;;  %6931 = vmatmul.mubr.msk.f32.vlgmr.msra.gmra.mrb[20].mxu1 %vm403_vm2, %v9190_v5 }
 0x35e   :  { %7637 = vmatpush3.bf16.msra.mxu0 %v8891_v7  ;;  %7643 = vmatpush3.bf16.msra.mxu1 %v8949_v22 }
 0x35f   :  { %7638 = vmatprep.subr.bf16.mxu0 %v8555_v9  ;;  %7644 = vmatprep.subr.bf16.mxu1 %v8555_v9 }
 0x360   :  { %6941 = vmatprep.mubr.msk.f32.mxu0 %vm8556_vm1, %v8557_v21  ;;  %6952 = vmatprep.mubr.msk.f32.mxu1 %vm8556_vm1, %v8557_v21 }
 0x362   :  { %7640 = vmatpush3.bf16.msra.mxu0 %v8910_v13  ;;  %7646 = vmatpush3.bf16.msra.mxu1 %v8969_v28 }
 0x363   :  { %7647 = vmatprep.subr.bf16.mxu0 %v8555_v9  ;;  %7653 = vmatprep.subr.bf16.mxu1 %v8555_v9 }
 0x365   :  { %6942 = vmatmul.mubr.msk.f32.vlgmr.msra.gmra.mrb[28].mxu0 %vm403_vm2, %v9190_v5  ;;  %6953 = vmatmul.mubr.msk.f32.vlgmr.msra.gmra.mrb[24].mxu1 %vm403_vm2, %v9190_v5 }
 0x366   :  { %7649 = vmatpush3.bf16.msra.mxu0 %v8966_v27  ;;  %6963 = vmatprep.mubr.msk.f32.mxu0 %vm8556_vm1, %v8557_v21 }
 0x367   :  { %7650 = vmatprep.subr.bf16.mxu0 %v8555_v9  ;;  %7655 = vmatpush3.bf16.msra.mxu1 %v9004_v34 }
 0x368   :  { %6974 = vmatprep.mubr.msk.f32.mxu1 %vm8556_vm1, %v8557_v21  ;;  %7656 = vmatprep.subr.bf16.mxu1 %v8555_v9 }
 0x36a   :  { %7652 = vmatpush3.bf16.msra.mxu0 %v8986_v31 }
 0x36b   :  { %7659 = vmatprep.subr.bf16.mxu0 %v8555_v9  ;;  %7658 = vmatpush3.bf16.msra.mxu1 %v9008_v37 }
 0x36c   :  { %7665 = vmatprep.subr.bf16.mxu1 %v8555_v9 }
 0x36d   :  { %6964 = vmatmul.mubr.msk.f32.vlgmr.msra.gmra.mrb[30].mxu0 %vm403_vm2, %v9190_v5 }
 0x36e   :  { %7661 = vmatpush3.bf16.msra.mxu0 %v9012_v41  ;;  %6985 = vmatprep.mubr.msk.f32.mxu0 %vm8556_vm1, %v8557_v21 }
 0x36f   :  { %7662 = vmatprep.subr.bf16.mxu0 %v8555_v9 }
 0x372   :  { %7664 = vmatpush3.bf16.msra.mxu0 %v9023_v47 }
 0x373   :  { %7671 = vmatprep.subr.bf16.mxu0 %v8555_v9 }
 0x428   :  { %v1844_v44 = vpop.f32.mrb[26].mxu0  ;;  %v1917_v6 = vpop.f32.mrb[22].mxu1 }
 0x429   :  { %v6899_v8 = vpop.f32.mrb[27].mxu0  ;;  %v6910_v10 = vpop.f32.mrb[23].mxu1  ;;  %v1845_v60 = vadd.f32 %v9164_v25, %v1844_v44  ;;  %v1918_v62 = vadd.f32 %v9166_v29, %v1917_v6 }
 0x430   :  { %v1987_v11 = vpop.f32.mrb[24].mxu0  ;;  %v2063_v14 = vpop.f32.mrb[20].mxu1 }
 0x431   :  { %v7961_v12 = vadd.f32 %v9158_v52, %v1987_v11  ;;  %v6921_v15 = vpop.f32.mrb[25].mxu0  ;;  %v6932_v16 = vpop.f32.mrb[21].mxu1  ;;  %v7962_v23 = vadd.f32 %v9161_v63, %v2063_v14  ;;  %v2305_v11 = vld [vmem:[#allocation4 + $0x10] sm:$0xff] }
 0x433   :  { %v6223_v17 = vmul.f32 -1.442695, %v7961_v12  ;;  %v6225_v35 = vmul.f32 -1.442695, %v7962_v23 }
 0x435   :  { %8057 = vpow2.f32 %v6223_v17 }
 0x438   :  { %v2145_v18 = vpop.f32.mrb[28].mxu0  ;;  %v2215_v26 = vpop.f32.mrb[24].mxu1 }
 0x439   :  { %v2290_v24 = vadd.f32 %v2289_v19, %v2145_v18  ;;  %v6943_v30 = vpop.f32.mrb[29].mxu0  ;;  %v6954_v32 = vpop.f32.mrb[25].mxu1  ;;  %v2298_v45 = vadd.f32 %v2297_v39, %v2215_v26 }
 0x43b   :  { %v6229_v33 = vmul.f32 -1.442695, %v2290_v24  ;;  %v6230_v51 = vmul.f32 -1.442695, %v2298_v45 }
 0x43d   :  { %8059 = vpow2.f32 %v6229_v33 }
 0x43e   :  { %8061 = vpow2.f32 %v6225_v35 }
 0x43f   :  { %v8058_v36 = vpop.eup %8057 }
 0x440   :  { %v1994_v38 = vadd.f32 1.0, %v8058_v36  ;;  %v2285_v40 = vpop.f32.mrb[30].mxu0 }
 0x441   :  { %v6965_v46 = vpop.f32.mrb[31].mxu0  ;;  %v2286_v4 = vadd.f32 %v9089_v20, %v2285_v40 }
 0x442   :  { %8063 = vrcp.f32 %v1994_v38  ;;  %v2966_v46 = vld [vmem:[#allocation2 + $0x18] sm:$0xff] }
 0x443   :  { %8065 = vpow2.f32 %v6230_v51 }
 0x447   :  { %v8060_v56 = vpop.eup %8059 }
 0x448   :  { %v2294_v57 = vadd.f32 1.0, %v8060_v56  ;;  %v8062_v58 = vpop.eup %8061 }
 0x449   :  { %v2070_v2 = vadd.f32 1.0, %v8062_v58 }
 0x44a   :  { %8067 = vrcp.f32 %v2294_v57 }
 0x44c   :  { %v8064_v50 = vpop.eup %8063 }
 0x44d   :  { %v2073_v0 = vmul.f32 %v8064_v50, %v1845_v60  ;;  %v8066_v3 = vpop.eup %8065 }
 0x44e   :  { %v2302_v12 = vadd.f32 1.0, %v8066_v3 }
 0x44f   :  { %v2074_v1 = vadd.f32 %v2073_v0, %v1918_v62 }
 0x451   :  { %8069 = vtanh.f32 %v2074_v1 }
 0x452   :  { %8071 = vrcp.f32 %v2070_v2  ;;  %v2974_v2 = vld [vmem:[#allocation3 + $0x18] sm:$0xff] }
 0x454   :  { %v8068_v8 = vpop.eup %8067 }
 0x455   :  { %v2306_v10 = vmul.f32 %v8068_v8, %v2286_v4 }
 0x457   :  { %v2307_v14 = vadd.f32 %v2306_v10, %v2305_v11 }
 0x459   :  { %8073 = vtanh.f32 %v2307_v14 }
 0x45a   :  { %8075 = vrcp.f32 %v2302_v12 }
 0x45b   :  { %v8070_v15 = vpop.eup %8069 }
 0x45c   :  { %v2076_v44 = vsub.f32 %v9171_v54, %v8070_v15  ;;  %v8072_v16 = vpop.eup %8071 }
 0x45e   :  { %v2077_v6 = vmul.f32 %v8072_v16, %v2076_v44 }
 0x460   :  { %v9254_v17 = vadd.f32 %v8070_v15, %v2077_v6 }
 0x462   :  { %6975 = vmatmul.mubr.msk.f32.vlgmr.msra.gmra.mrb[26].mxu1 %vm403_vm2, %v9254_v17  ;;  %6986 = vmatmul.mubr.msk.f32.vlgmr.msra.gmra.mrb[32].mxu0 %vm403_vm2, %v9254_v17 }
 0x463   :  { %v8074_v18 = vpop.eup %8073  ;;  %7667 = vmatpush3.bf16.msra.mxu1 %v9015_v43  ;;  %7673 = vmatpush3.bf16.msra.mxu0 %v9034_v53 }
 0x464   :  { %v2309_v19 = vsub.f32 %v9190_v5, %v8074_v18  ;;  %7668 = vmatprep.subr.bf16.mxu1 %v8555_v9  ;;  %7674 = vmatprep.subr.bf16.mxu0 %v8555_v9  ;;  %v8076_v54 = vpop.eup %8075 }
 0x465   :  { %6996 = vmatprep.mubr.msk.f32.mxu1 %vm8556_vm1, %v8557_v21  ;;  %7007 = vmatprep.mubr.msk.f32.mxu0 %vm8556_vm1, %v8557_v21 }
 0x466   :  { %v2310_v23 = vmul.f32 %v8076_v54, %v2309_v19 }
 0x467   :  { %7670 = vmatpush3.bf16.msra.mxu1 %v9025_v49  ;;  %7676 = vmatpush3.bf16.msra.mxu0 %v9050_v59 }
 0x468   :  { %v9271_v24 = vadd.f32 %v8074_v18, %v2310_v23  ;;  %7677 = vmatprep.subr.bf16.mxu1 %v8555_v9  ;;  %7683 = vmatprep.subr.bf16.mxu0 %v8555_v9 }
 0x46a   :  { %6997 = vmatmul.mubr.msk.f32.vlgmr.msra.gmra.mrb[28].mxu1 %vm403_vm2, %v9254_v17  ;;  %7008 = vmatmul.mubr.msk.f32.vlgmr.msra.gmra.mrb[34].mxu0 %vm403_vm2, %v9271_v24 }
 0x46b   :  { %7679 = vmatpush3.bf16.msra.mxu1 %v9040_v55  ;;  %7685 = vmatpush3.bf16.msra.mxu0 %v9098_v42 }
 0x46c   :  { %7680 = vmatprep.subr.bf16.mxu1 %v8555_v9  ;;  %7686 = vmatprep.subr.bf16.mxu0 %v8555_v9 }
 0x46d   :  { %7018 = vmatprep.mubr.msk.f32.mxu1 %vm8556_vm1, %v8557_v21  ;;  %7029 = vmatprep.mubr.msk.f32.mxu0 %vm8556_vm1, %v8557_v21 }
 0x46f   :  { %7682 = vmatpush3.bf16.msra.mxu1 %v9057_v61  ;;  %7688 = vmatpush3.bf16.msra.mxu0 %v9114_v48 }
 0x470   :  { %7689 = vmatprep.subr.bf16.mxu1 %v8555_v9  ;;  %7695 = vmatprep.subr.bf16.mxu0 %v8555_v9 }
 0x472   :  { %7019 = vmatmul.mubr.msk.f32.vlgmr.msra.gmra.mrb[26].mxu1 %vm403_vm2, %v9271_v24  ;;  %7030 = vmatmul.mubr.msk.f32.vlgmr.msra.gmra.mrb[32].mxu0 %vm403_vm2, %v9271_v24 }
 0x473   :  { %7691 = vmatpush3.bf16.msra.mxu1 %v8891_v7  ;;  %7697 = vmatpush3.bf16.msra.mxu0 %v8949_v22 }
 0x474   :  { %7692 = vmatprep.subr.bf16.mxu1 %v8555_v9  ;;  %7698 = vmatprep.subr.bf16.mxu0 %v8555_v9 }
 0x475   :  { %7040 = vmatprep.mubr.msk.f32.mxu1 %vm8556_vm1, %v8557_v21  ;;  %7051 = vmatprep.mubr.msk.f32.mxu0 %vm8556_vm1, %v8557_v21 }
 0x477   :  { %7694 = vmatpush3.bf16.msra.mxu1 %v8910_v13  ;;  %7700 = vmatpush3.bf16.msra.mxu0 %v8969_v28 }
 0x478   :  { %7701 = vmatprep.subr.bf16.mxu1 %v8555_v9  ;;  %7707 = vmatprep.subr.bf16.mxu0 %v8555_v9 }
 0x47a   :  { %7041 = vmatmul.mubr.msk.f32.vlgmr.msra.gmra.mrb[30].mxu1 %vm403_vm2, %v9271_v24  ;;  %7052 = vmatmul.mubr.msk.f32.vlgmr.msra.gmra.mrb[36].mxu0 %vm403_vm2, %v9271_v24 }
 0x47b   :  { %7703 = vmatpush3.bf16.msra.mxu1 %v8966_v27  ;;  %7062 = vmatprep.mubr.msk.f32.mxu1 %vm8556_vm1, %v8557_v21 }
 0x47c   :  { %7704 = vmatprep.subr.bf16.mxu1 %v8555_v9  ;;  %7709 = vmatpush3.bf16.msra.mxu0 %v9004_v34 }
 0x47d   :  { %7710 = vmatprep.subr.bf16.mxu0 %v8555_v9  ;;  %7073 = vmatprep.mubr.msk.f32.mxu0 %vm8556_vm1, %v8557_v21 }
 0x47f   :  { %7706 = vmatpush3.bf16.msra.mxu1 %v8986_v31 }
 0x480   :  { %7713 = vmatprep.subr.bf16.mxu1 %v8555_v9  ;;  %7712 = vmatpush3.bf16.msra.mxu0 %v9008_v37 }
 0x481   :  { %7719 = vmatprep.subr.bf16.mxu0 %v8555_v9 }
 0x482   :  { %7063 = vmatmul.mubr.msk.f32.vlgmr.msra.gmra.mrb[32].mxu1 %vm403_vm2, %v9271_v24 }
 0x483   :  { %7715 = vmatpush3.bf16.msra.mxu1 %v9012_v41  ;;  %7084 = vmatprep.mubr.msk.f32.mxu1 %vm8556_vm1, %v8557_v21 }
 0x484   :  { %7716 = vmatprep.subr.bf16.mxu1 %v8555_v9 }
 0x487   :  { %7718 = vmatpush3.bf16.msra.mxu1 %v9023_v47 }
 0x488   :  { %7725 = vmatprep.subr.bf16.mxu1 %v8555_v9 }
 0x53d   :  { %v2521_v5 = vpop.f32.mrb[28].mxu1  ;;  %v2594_v26 = vpop.f32.mrb[34].mxu0 }
 0x53e   :  { %v6998_v30 = vpop.f32.mrb[29].mxu1  ;;  %v7009_v32 = vpop.f32.mrb[35].mxu0  ;;  %v2522_v15 = vadd.f32 %v9164_v25, %v2521_v5  ;;  %v2595_v16 = vadd.f32 %v9166_v29, %v2594_v26 }
 0x545   :  { %v2664_v33 = vpop.f32.mrb[26].mxu1  ;;  %v2740_v35 = vpop.f32.mrb[32].mxu0 }
 0x546   :  { %v7963_v36 = vadd.f32 %v9158_v52, %v2664_v33  ;;  %v7020_v38 = vpop.f32.mrb[27].mxu1  ;;  %v7031_v39 = vpop.f32.mrb[33].mxu0  ;;  %v7964_v56 = vadd.f32 %v9161_v63, %v2740_v35  ;;  %v2982_v33 = vld [vmem:[#allocation4 + $0x18] sm:$0xff] }
 0x548   :  { %v6236_v40 = vmul.f32 -1.442695, %v7963_v36  ;;  %v6238_v62 = vmul.f32 -1.442695, %v7964_v56 }
 0x54a   :  { %8077 = vpow2.f32 %v6236_v40 }
 0x54d   :  { %v2822_v45 = vpop.f32.mrb[30].mxu1  ;;  %v2892_v51 = vpop.f32.mrb[36].mxu0 }
 0x54e   :  { %v2967_v57 = vadd.f32 %v2966_v46, %v2822_v45  ;;  %v7042_v58 = vpop.f32.mrb[31].mxu1  ;;  %v7053_v60 = vpop.f32.mrb[37].mxu0  ;;  %v2975_v4 = vadd.f32 %v2974_v2, %v2892_v51 }
 0x550   :  { %v6242_v50 = vmul.f32 -1.442695, %v2967_v57  ;;  %v6243_v10 = vmul.f32 -1.442695, %v2975_v4 }
 0x552   :  { %8079 = vpow2.f32 %v6242_v50 }
 0x553   :  { %8081 = vpow2.f32 %v6238_v62 }
 0x554   :  { %v8078_v0 = vpop.eup %8077 }
 0x555   :  { %v2671_v1 = vadd.f32 1.0, %v8078_v0  ;;  %v2962_v3 = vpop.f32.mrb[32].mxu1 }
 0x556   :  { %v7064_v8 = vpop.f32.mrb[33].mxu1  ;;  %v2963_v23 = vadd.f32 %v9089_v20, %v2962_v3 }
 0x557   :  { %8083 = vrcp.f32 %v2671_v1  ;;  %v3643_v8 = vld [vmem:[#allocation2 + $0x20] sm:$0xff] }
 0x558   :  { %8085 = vpow2.f32 %v6243_v10 }
 0x55c   :  { %v8080_v11 = vpop.eup %8079 }
 0x55d   :  { %v2971_v12 = vadd.f32 1.0, %v8080_v11  ;;  %v8082_v14 = vpop.eup %8081 }
 0x55e   :  { %v2747_v19 = vadd.f32 1.0, %v8082_v14 }
 0x55f   :  { %8087 = vrcp.f32 %v2971_v12 }
 0x561   :  { %v8084_v44 = vpop.eup %8083 }
 0x562   :  { %v2750_v6 = vmul.f32 %v8084_v44, %v2522_v15  ;;  %v8086_v54 = vpop.eup %8085 }
 0x563   :  { %v2979_v35 = vadd.f32 1.0, %v8086_v54 }
 0x564   :  { %v2751_v18 = vadd.f32 %v2750_v6, %v2595_v16 }
 0x566   :  { %8089 = vtanh.f32 %v2751_v18 }
 0x567   :  { %8091 = vrcp.f32 %v2747_v19  ;;  %v3651_v19 = vld [vmem:[#allocation3 + $0x20] sm:$0xff] }
 0x569   :  { %v8088_v30 = vpop.eup %8087 }
 0x56a   :  { %v2983_v32 = vmul.f32 %v8088_v30, %v2963_v23 }
 0x56c   :  { %v2984_v36 = vadd.f32 %v2983_v32, %v2982_v33 }
 0x56e   :  { %8093 = vtanh.f32 %v2984_v36 }
 0x56f   :  { %8095 = vrcp.f32 %v2979_v35 }
 0x570   :  { %v8090_v38 = vpop.eup %8089 }
 0x571   :  { %v2753_v5 = vsub.f32 %v9254_v17, %v8090_v38  ;;  %v8092_v39 = vpop.eup %8091 }
 0x573   :  { %v2754_v26 = vmul.f32 %v8092_v39, %v2753_v5 }
 0x575   :  { %v9337_v40 = vadd.f32 %v8090_v38, %v2754_v26 }
 0x577   :  { %7074 = vmatmul.mubr.msk.f32.vlgmr.msra.gmra.mrb[38].mxu0 %vm403_vm2, %v9337_v40  ;;  %7085 = vmatmul.mubr.msk.f32.vlgmr.msra.gmra.mrb[34].mxu1 %vm403_vm2, %v9337_v40 }
 0x578   :  { %v8094_v45 = vpop.eup %8093  ;;  %7721 = vmatpush3.bf16.msra.mxu0 %v9015_v43  ;;  %7727 = vmatpush3.bf16.msra.mxu1 %v9034_v53 }
 0x579   :  { %v2986_v46 = vsub.f32 %v9271_v24, %v8094_v45  ;;  %7722 = vmatprep.subr.bf16.mxu0 %v8555_v9  ;;  %7728 = vmatprep.subr.bf16.mxu1 %v8555_v9  ;;  %v8096_v17 = vpop.eup %8095 }
 0x57a   :  { %7095 = vmatprep.mubr.msk.f32.mxu0 %vm8556_vm1, %v8557_v21  ;;  %7106 = vmatprep.mubr.msk.f32.mxu1 %vm8556_vm1, %v8557_v21 }
 0x57b   :  { %v2987_v51 = vmul.f32 %v8096_v17, %v2986_v46 }
 0x57c   :  { %7724 = vmatpush3.bf16.msra.mxu0 %v9025_v49  ;;  %7730 = vmatpush3.bf16.msra.mxu1 %v9050_v59 }
 0x57d   :  { %v9354_v56 = vadd.f32 %v8094_v45, %v2987_v51  ;;  %7731 = vmatprep.subr.bf16.mxu0 %v8555_v9  ;;  %7737 = vmatprep.subr.bf16.mxu1 %v8555_v9 }
 0x57f   :  { %7096 = vmatmul.mubr.msk.f32.vlgmr.msra.gmra.mrb[40].mxu0 %vm403_vm2, %v9337_v40  ;;  %7107 = vmatmul.mubr.msk.f32.vlgmr.msra.gmra.mrb[36].mxu1 %vm403_vm2, %v9354_v56 }
 0x580   :  { %7733 = vmatpush3.bf16.msra.mxu0 %v9040_v55  ;;  %7739 = vmatpush3.bf16.msra.mxu1 %v9098_v42 }
 0x581   :  { %7734 = vmatprep.subr.bf16.mxu0 %v8555_v9  ;;  %7740 = vmatprep.subr.bf16.mxu1 %v8555_v9 }
 0x582   :  { %7117 = vmatprep.mubr.msk.f32.mxu0 %vm8556_vm1, %v8557_v21  ;;  %7128 = vmatprep.mubr.msk.f32.mxu1 %vm8556_vm1, %v8557_v21 }
 0x584   :  { %7736 = vmatpush3.bf16.msra.mxu0 %v9057_v61  ;;  %7742 = vmatpush3.bf16.msra.mxu1 %v9114_v48 }
 0x585   :  { %7743 = vmatprep.subr.bf16.mxu0 %v8555_v9  ;;  %7749 = vmatprep.subr.bf16.mxu1 %v8555_v9 }
 0x587   :  { %7118 = vmatmul.mubr.msk.f32.vlgmr.msra.gmra.mrb[38].mxu0 %vm403_vm2, %v9354_v56  ;;  %7129 = vmatmul.mubr.msk.f32.vlgmr.msra.gmra.mrb[34].mxu1 %vm403_vm2, %v9354_v56 }
 0x588   :  { %7745 = vmatpush3.bf16.msra.mxu0 %v8891_v7  ;;  %7751 = vmatpush3.bf16.msra.mxu1 %v8949_v22 }
 0x589   :  { %7746 = vmatprep.subr.bf16.mxu0 %v8555_v9  ;;  %7752 = vmatprep.subr.bf16.mxu1 %v8555_v9 }
 0x58a   :  { %7139 = vmatprep.mubr.msk.f32.mxu0 %vm8556_vm1, %v8557_v21  ;;  %7150 = vmatprep.mubr.msk.f32.mxu1 %vm8556_vm1, %v8557_v21 }
 0x58c   :  { %7748 = vmatpush3.bf16.msra.mxu0 %v8910_v13  ;;  %7754 = vmatpush3.bf16.msra.mxu1 %v8969_v28 }
 0x58d   :  { %7755 = vmatprep.subr.bf16.mxu0 %v8555_v9  ;;  %7761 = vmatprep.subr.bf16.mxu1 %v8555_v9 }
 0x58f   :  { %7140 = vmatmul.mubr.msk.f32.vlgmr.msra.gmra.mrb[42].mxu0 %vm403_vm2, %v9354_v56  ;;  %7151 = vmatmul.mubr.msk.f32.vlgmr.msra.gmra.mrb[38].mxu1 %vm403_vm2, %v9354_v56 }
 0x590   :  { %7757 = vmatpush3.bf16.msra.mxu0 %v8966_v27  ;;  %7161 = vmatprep.mubr.msk.f32.mxu0 %vm8556_vm1, %v8557_v21 }
 0x591   :  { %7758 = vmatprep.subr.bf16.mxu0 %v8555_v9  ;;  %7763 = vmatpush3.bf16.msra.mxu1 %v9004_v34 }
 0x592   :  { %7764 = vmatprep.subr.bf16.mxu1 %v8555_v9  ;;  %7172 = vmatprep.mubr.msk.f32.mxu1 %vm8556_vm1, %v8557_v21 }
 0x594   :  { %7760 = vmatpush3.bf16.msra.mxu0 %v8986_v31 }
 0x595   :  { %7767 = vmatprep.subr.bf16.mxu0 %v8555_v9  ;;  %7766 = vmatpush3.bf16.msra.mxu1 %v9008_v37 }
 0x596   :  { %7773 = vmatprep.subr.bf16.mxu1 %v8555_v9 }
 0x597   :  { %7162 = vmatmul.mubr.msk.f32.vlgmr.msra.gmra.mrb[44].mxu0 %vm403_vm2, %v9354_v56 }
 0x598   :  { %7769 = vmatpush3.bf16.msra.mxu0 %v9012_v41  ;;  %7183 = vmatprep.mubr.msk.f32.mxu0 %vm8556_vm1, %v8557_v21 }
 0x599   :  { %7770 = vmatprep.subr.bf16.mxu0 %v8555_v9 }
 0x59c   :  { %7772 = vmatpush3.bf16.msra.mxu0 %v9023_v47 }
 0x59d   :  { %7779 = vmatprep.subr.bf16.mxu0 %v8555_v9 }
 0x652   :  { %v3198_v24 = vpop.f32.mrb[40].mxu0  ;;  %v3271_v57 = vpop.f32.mrb[36].mxu1 }
 0x653   :  { %v7097_v58 = vpop.f32.mrb[41].mxu0  ;;  %v7108_v60 = vpop.f32.mrb[37].mxu1  ;;  %v3199_v38 = vadd.f32 %v9164_v25, %v3198_v24  ;;  %v3272_v39 = vadd.f32 %v9166_v29, %v3271_v57 }
 0x65a   :  { %v3341_v50 = vpop.f32.mrb[38].mxu0  ;;  %v3417_v62 = vpop.f32.mrb[34].mxu1 }
 0x65b   :  { %v7965_v0 = vadd.f32 %v9158_v52, %v3341_v50  ;;  %v7119_v1 = vpop.f32.mrb[39].mxu0  ;;  %v7130_v2 = vpop.f32.mrb[35].mxu1  ;;  %v7966_v11 = vadd.f32 %v9161_v63, %v3417_v62  ;;  %v3659_v50 = vld [vmem:[#allocation4 + $0x20] sm:$0xff] }
 0x65d   :  { %v6249_v3 = vmul.f32 -1.442695, %v7965_v0  ;;  %v6251_v16 = vmul.f32 -1.442695, %v7966_v11 }
 0x65f   :  { %8097 = vpow2.f32 %v6249_v3 }
 0x662   :  { %v3499_v4 = vpop.f32.mrb[42].mxu0  ;;  %v3569_v10 = vpop.f32.mrb[38].mxu1 }
 0x663   :  { %v3644_v12 = vadd.f32 %v3643_v8, %v3499_v4  ;;  %v7141_v14 = vpop.f32.mrb[43].mxu0  ;;  %v7152_v15 = vpop.f32.mrb[39].mxu1  ;;  %v3652_v23 = vadd.f32 %v3651_v19, %v3569_v10 }
 0x665   :  { %v6255_v44 = vmul.f32 -1.442695, %v3644_v12  ;;  %v6256_v32 = vmul.f32 -1.442695, %v3652_v23  ;;  %v4320_v23 = vld [vmem:[#allocation2 + $0x28] sm:$0xff] }
 0x667   :  { %8099 = vpow2.f32 %v6255_v44 }
 0x668   :  { %8101 = vpow2.f32 %v6251_v16 }
 0x669   :  { %v8098_v6 = vpop.eup %8097 }
 0x66a   :  { %v3348_v18 = vadd.f32 1.0, %v8098_v6  ;;  %v3639_v54 = vpop.f32.mrb[44].mxu0 }
 0x66b   :  { %v7163_v30 = vpop.f32.mrb[45].mxu0  ;;  %v3640_v51 = vadd.f32 %v9089_v20, %v3639_v54 }
 0x66c   :  { %8103 = vrcp.f32 %v3348_v18 }
 0x66d   :  { %8105 = vpow2.f32 %v6256_v32 }
 0x671   :  { %v8100_v33 = vpop.eup %8099 }
 0x672   :  { %v3648_v35 = vadd.f32 1.0, %v8100_v33  ;;  %v8102_v36 = vpop.eup %8101 }
 0x673   :  { %v3424_v46 = vadd.f32 1.0, %v8102_v36 }
 0x674   :  { %8107 = vrcp.f32 %v3648_v35 }
 0x676   :  { %v8104_v5 = vpop.eup %8103 }
 0x677   :  { %v3427_v26 = vmul.f32 %v8104_v5, %v3199_v38  ;;  %v8106_v17 = vpop.eup %8105 }
 0x678   :  { %v3656_v62 = vadd.f32 1.0, %v8106_v17 }
 0x679   :  { %v3428_v45 = vadd.f32 %v3427_v26, %v3272_v39 }
 0x67b   :  { %8109 = vtanh.f32 %v3428_v45  ;;  %v4328_v45 = vld [vmem:[#allocation3 + $0x28] sm:$0xff] }
 0x67c   :  { %8111 = vrcp.f32 %v3424_v46 }
 0x67e   :  { %v8108_v58 = vpop.eup %8107 }
 0x67f   :  { %v3660_v60 = vmul.f32 %v8108_v58, %v3640_v51 }
 0x681   :  { %v3661_v0 = vadd.f32 %v3660_v60, %v3659_v50 }
 0x683   :  { %8113 = vtanh.f32 %v3661_v0 }
 0x684   :  { %8115 = vrcp.f32 %v3656_v62 }
 0x685   :  { %v8110_v1 = vpop.eup %8109 }
 0x686   :  { %v3430_v24 = vsub.f32 %v9337_v40, %v8110_v1  ;;  %v8112_v2 = vpop.eup %8111 }
 0x688   :  { %v3431_v57 = vmul.f32 %v8112_v2, %v3430_v24 }
 0x68a   :  { %v9420_v3 = vadd.f32 %v8110_v1, %v3431_v57 }
 0x68c   :  { %7173 = vmatmul.mubr.msk.f32.vlgmr.msra.gmra.mrb[40].mxu1 %vm403_vm2, %v9420_v3  ;;  %7184 = vmatmul.mubr.msk.f32.vlgmr.msra.gmra.mrb[46].mxu0 %vm403_vm2, %v9420_v3 }
 0x68d   :  { %v8114_v20 = vpop.eup %8113  ;;  %7775 = vmatpush3.bf16.msra.mxu1 %v9015_v43  ;;  %7781 = vmatpush3.bf16.msra.mxu0 %v9034_v53 }
 0x68e   :  { %v3663_v4 = vsub.f32 %v9354_v56, %v8114_v20  ;;  %7776 = vmatprep.subr.bf16.mxu1 %v8555_v9  ;;  %7782 = vmatprep.subr.bf16.mxu0 %v8555_v9  ;;  %v8116_v40 = vpop.eup %8115 }
 0x68f   :  { %7194 = vmatprep.mubr.msk.f32.mxu1 %vm8556_vm1, %v8557_v21  ;;  %7205 = vmatprep.mubr.msk.f32.mxu0 %vm8556_vm1, %v8557_v21 }
 0x690   :  { %v3664_v8 = vmul.f32 %v8116_v40, %v3663_v4 }
 0x691   :  { %7778 = vmatpush3.bf16.msra.mxu1 %v9025_v49  ;;  %7784 = vmatpush3.bf16.msra.mxu0 %v9050_v59 }
 0x692   :  { %v9437_v10 = vadd.f32 %v8114_v20, %v3664_v8  ;;  %7785 = vmatprep.subr.bf16.mxu1 %v8555_v9  ;;  %7791 = vmatprep.subr.bf16.mxu0 %v8555_v9  ;;  %v9501_v20 = vld [vmem:[#allocation14] ss:$0 sm:$0xff] }
 0x694   :  { %7195 = vmatmul.mubr.msk.f32.vlgmr.msra.gmra.mrb[42].mxu1 %vm403_vm2, %v9420_v3  ;;  %7206 = vmatmul.mubr.msk.f32.vlgmr.msra.gmra.mrb[48].mxu0 %vm403_vm2, %v9437_v10 }
 0x695   :  { %7787 = vmatpush3.bf16.msra.mxu1 %v9040_v55  ;;  %7793 = vmatpush3.bf16.msra.mxu0 %v9098_v42 }
 0x696   :  { %7788 = vmatprep.subr.bf16.mxu1 %v8555_v9  ;;  %7794 = vmatprep.subr.bf16.mxu0 %v8555_v9 }
 0x697   :  { %7216 = vmatprep.mubr.msk.f32.mxu1 %vm8556_vm1, %v8557_v21  ;;  %7227 = vmatprep.mubr.msk.f32.mxu0 %vm8556_vm1, %v8557_v21 }
 0x699   :  { %7790 = vmatpush3.bf16.msra.mxu1 %v9057_v61  ;;  %7796 = vmatpush3.bf16.msra.mxu0 %v9114_v48 }
 0x69a   :  { %7797 = vmatprep.subr.bf16.mxu1 %v8555_v9  ;;  %7803 = vmatprep.subr.bf16.mxu0 %v8555_v9 }
 0x69c   :  { %7217 = vmatmul.mubr.msk.f32.vlgmr.msra.gmra.mrb[40].mxu1 %vm403_vm2, %v9437_v10  ;;  %7228 = vmatmul.mubr.msk.f32.vlgmr.msra.gmra.mrb[46].mxu0 %vm403_vm2, %v9437_v10 }
 0x69d   :  { %7799 = vmatpush3.bf16.msra.mxu1 %v8891_v7  ;;  %7805 = vmatpush3.bf16.msra.mxu0 %v8949_v22 }
 0x69e   :  { %7800 = vmatprep.subr.bf16.mxu1 %v8555_v9  ;;  %7806 = vmatprep.subr.bf16.mxu0 %v8555_v9 }
 0x69f   :  { %7238 = vmatprep.mubr.msk.f32.mxu1 %vm8556_vm1, %v8557_v21  ;;  %7249 = vmatprep.mubr.msk.f32.mxu0 %vm8556_vm1, %v8557_v21 }
 0x6a1   :  { %7802 = vmatpush3.bf16.msra.mxu1 %v8910_v13  ;;  %7808 = vmatpush3.bf16.msra.mxu0 %v8969_v28 }
 0x6a2   :  { %7809 = vmatprep.subr.bf16.mxu1 %v8555_v9  ;;  %7815 = vmatprep.subr.bf16.mxu0 %v8555_v9 }
 0x6a4   :  { %7239 = vmatmul.mubr.msk.f32.vlgmr.msra.gmra.mrb[44].mxu1 %vm403_vm2, %v9437_v10  ;;  %7250 = vmatmul.mubr.msk.f32.vlgmr.msra.gmra.mrb[50].mxu0 %vm403_vm2, %v9437_v10 }
 0x6a5   :  { %7811 = vmatpush3.bf16.msra.mxu1 %v8966_v27  ;;  %7260 = vmatprep.mubr.msk.f32.mxu1 %vm8556_vm1, %v8557_v21 }
 0x6a6   :  { %7812 = vmatprep.subr.bf16.mxu1 %v8555_v9  ;;  %7817 = vmatpush3.bf16.msra.mxu0 %v9004_v34 }
 0x6a7   :  { %7818 = vmatprep.subr.bf16.mxu0 %v8555_v9  ;;  %7271 = vmatprep.mubr.msk.f32.mxu0 %vm8556_vm1, %v8557_v21 }
 0x6a9   :  { %7814 = vmatpush3.bf16.msra.mxu1 %v8986_v31 }
 0x6aa   :  { %7821 = vmatprep.subr.bf16.mxu1 %v8555_v9  ;;  %7820 = vmatpush3.bf16.msra.mxu0 %v9008_v37 }
 0x6ab   :  { %7827 = vmatprep.subr.bf16.mxu0 %v8555_v9 }
 0x6ac   :  { %7261 = vmatmul.mubr.msk.f32.vlgmr.msra.gmra.mrb[46].mxu1 %vm403_vm2, %v9437_v10 }
 0x6ad   :  { %7823 = vmatpush3.bf16.msra.mxu1 %v9012_v41  ;;  %7282 = vmatprep.mubr.msk.f32.mxu1 %vm8556_vm1, %v8557_v21 }
 0x6ae   :  { %7824 = vmatprep.subr.bf16.mxu1 %v8555_v9 }
 0x6b1   :  { %7826 = vmatpush3.bf16.msra.mxu1 %v9023_v47 }
 0x6b2   :  { %7833 = vmatprep.subr.bf16.mxu1 %v8555_v9 }
 0x767   :  { %v3875_v56 = vpop.f32.mrb[42].mxu1  ;;  %v3948_v11 = vpop.f32.mrb[48].mxu0 }
 0x768   :  { %v7196_v12 = vpop.f32.mrb[43].mxu1  ;;  %v7207_v14 = vpop.f32.mrb[49].mxu0  ;;  %v3876_v50 = vadd.f32 %v9164_v25, %v3875_v56  ;;  %v3949_v0 = vadd.f32 %v9166_v29, %v3948_v11 }
 0x769   :  { %v4336_v12 = vld [vmem:[#allocation4 + $0x28] sm:$0xff] }
 0x76f   :  { %v4018_v15 = vpop.f32.mrb[40].mxu1  ;;  %v4094_v44 = vpop.f32.mrb[46].mxu0 }
 0x770   :  { %v7967_v16 = vadd.f32 %v9158_v52, %v4018_v15  ;;  %v7218_v6 = vpop.f32.mrb[41].mxu1  ;;  %v7229_v18 = vpop.f32.mrb[47].mxu0  ;;  %v7968_v32 = vadd.f32 %v9161_v63, %v4094_v44 }
 0x772   :  { %v6262_v19 = vmul.f32 -1.442695, %v7967_v16  ;;  %v6264_v5 = vmul.f32 -1.442695, %v7968_v32 }
 0x774   :  { %8117 = vpow2.f32 %v6262_v19 }
 0x777   :  { %v4176_v54 = vpop.f32.mrb[44].mxu1  ;;  %v4246_v30 = vpop.f32.mrb[50].mxu0 }
 0x778   :  { %v4321_v33 = vadd.f32 %v4320_v23, %v4176_v54  ;;  %v7240_v35 = vpop.f32.mrb[45].mxu1  ;;  %v7251_v36 = vpop.f32.mrb[51].mxu0  ;;  %v4329_v52 = vadd.f32 %v4328_v45, %v4246_v30  ;;  %v4997_v45 = vld [vmem:[#allocation2 + $0x30] sm:$0xff] }
 0x779   :  { %v9582_v35 = vld [vmem:[#allocation22] ss:$0 sm:$0xff] }
 0x77a   :  { %v6268_v38 = vmul.f32 -1.442695, %v4321_v33  ;;  %v6269_v51 = vmul.f32 -1.442695, %v4329_v52  ;;  %v9585_v52 = vld [vmem:[#allocation23] ss:$0 sm:$0xff] }
 0x77c   :  { %8119 = vpow2.f32 %v6268_v38 }
 0x77d   :  { %8121 = vpow2.f32 %v6264_v5 }
 0x77e   :  { %v8118_v39 = vpop.eup %8117 }
 0x77f   :  { %v4025_v26 = vadd.f32 1.0, %v8118_v39  ;;  %v4316_v46 = vpop.f32.mrb[46].mxu1 }
 0x780   :  { %v7262_v17 = vpop.f32.mrb[47].mxu1  ;;  %v4317_v4 = vadd.f32 %v9501_v20, %v4316_v46 }
 0x781   :  { %8123 = vrcp.f32 %v4025_v26 }
 0x782   :  { %8125 = vpow2.f32 %v6269_v51 }
 0x786   :  { %v8120_v58 = vpop.eup %8119 }
 0x787   :  { %v4325_v60 = vadd.f32 1.0, %v8120_v58  ;;  %v8122_v63 = vpop.eup %8121 }
 0x788   :  { %v4101_v2 = vadd.f32 1.0, %v8122_v63 }
 0x789   :  { %8127 = vrcp.f32 %v4325_v60 }
 0x78b   :  { %v8124_v62 = vpop.eup %8123 }
 0x78c   :  { %v4104_v1 = vmul.f32 %v8124_v62, %v3876_v50  ;;  %v8126_v57 = vpop.eup %8125 }
 0x78d   :  { %v4333_v14 = vadd.f32 1.0, %v8126_v57 }
 0x78e   :  { %v4105_v24 = vadd.f32 %v4104_v1, %v3949_v0  ;;  %v5005_v1 = vld [vmem:[#allocation3 + $0x30] sm:$0xff] }
 0x790   :  { %8129 = vtanh.f32 %v4105_v24 }
 0x791   :  { %8131 = vrcp.f32 %v4101_v2 }
 0x793   :  { %v8128_v40 = vpop.eup %8127 }
 0x794   :  { %v4337_v8 = vmul.f32 %v8128_v40, %v4317_v4 }
 0x796   :  { %v4338_v15 = vadd.f32 %v4337_v8, %v4336_v12 }
 0x798   :  { %8133 = vtanh.f32 %v4338_v15 }
 0x799   :  { %8135 = vrcp.f32 %v4333_v14  ;;  %v9588_v14 = vld [vmem:[#allocation26] ss:$0 sm:$0xff] }
 0x79a   :  { %v8130_v25 = vpop.eup %8129 }
 0x79b   :  { %v4107_v29 = vsub.f32 %v9420_v3, %v8130_v25  ;;  %v8132_v56 = vpop.eup %8131 }
 0x79d   :  { %v4108_v11 = vmul.f32 %v8132_v56, %v4107_v29  ;;  %v9591_v29 = vld [vmem:[#allocation25] ss:$0 sm:$0xff] }
 0x79f   :  { %v9505_v44 = vadd.f32 %v8130_v25, %v4108_v11 }
 0x7a1   :  { %7272 = vmatmul.mubr.msk.f32.vlgmr.msra.gmra.mrb[52].mxu0 %vm403_vm2, %v9505_v44  ;;  %7283 = vmatmul.mubr.msk.f32.vlgmr.msra.gmra.mrb[48].mxu1 %vm403_vm2, %v9505_v44 }
 0x7a2   :  { %v8134_v16 = vpop.eup %8133  ;;  %7829 = vmatpush3.bf16.msra.mxu0 %v9015_v43  ;;  %7835 = vmatpush3.bf16.msra.mxu1 %v9034_v53 }
 0x7a3   :  { %v4340_v6 = vsub.f32 %v9437_v10, %v8134_v16  ;;  %7830 = vmatprep.subr.bf16.mxu0 %v8555_v9  ;;  %7836 = vmatprep.subr.bf16.mxu1 %v8555_v9  ;;  %v8136_v3 = vpop.eup %8135 }
 0x7a4   :  { %7293 = vmatprep.mubr.msk.f32.mxu0 %vm8556_vm1, %v8557_v21  ;;  %7304 = vmatprep.mubr.msk.f32.mxu1 %vm8556_vm1, %v8557_v21 }
 0x7a5   :  { %v4341_v18 = vmul.f32 %v8136_v3, %v4340_v6 }
 0x7a6   :  { %7832 = vmatpush3.bf16.msra.mxu0 %v9025_v49  ;;  %7838 = vmatpush3.bf16.msra.mxu1 %v9050_v59 }
 0x7a7   :  { %v9522_v19 = vadd.f32 %v8134_v16, %v4341_v18  ;;  %7839 = vmatprep.subr.bf16.mxu0 %v8555_v9  ;;  %7845 = vmatprep.subr.bf16.mxu1 %v8555_v9 }
 0x7a9   :  { %7294 = vmatmul.mubr.msk.f32.vlgmr.msra.gmra.mrb[54].mxu0 %vm403_vm2, %v9505_v44  ;;  %7305 = vmatmul.mubr.msk.f32.vlgmr.msra.gmra.mrb[50].mxu1 %vm403_vm2, %v9522_v19 }
 0x7aa   :  { %7841 = vmatpush3.bf16.msra.mxu0 %v9040_v55  ;;  %7847 = vmatpush3.bf16.msra.mxu1 %v9098_v42 }
 0x7ab   :  { %7842 = vmatprep.subr.bf16.mxu0 %v8555_v9  ;;  %7848 = vmatprep.subr.bf16.mxu1 %v8555_v9 }
 0x7ac   :  { %7315 = vmatprep.mubr.msk.f32.mxu0 %vm8556_vm1, %v8557_v21  ;;  %7326 = vmatprep.mubr.msk.f32.mxu1 %vm8556_vm1, %v8557_v21 }
 0x7ae   :  { %7844 = vmatpush3.bf16.msra.mxu0 %v9057_v61  ;;  %7850 = vmatpush3.bf16.msra.mxu1 %v9114_v48 }
 0x7af   :  { %7851 = vmatprep.subr.bf16.mxu0 %v8555_v9  ;;  %7857 = vmatprep.subr.bf16.mxu1 %v8555_v9 }
 0x7b1   :  { %7316 = vmatmul.mubr.msk.f32.vlgmr.msra.gmra.mrb[52].mxu0 %vm403_vm2, %v9522_v19  ;;  %7327 = vmatmul.mubr.msk.f32.vlgmr.msra.gmra.mrb[48].mxu1 %vm403_vm2, %v9522_v19 }
 0x7b2   :  { %7853 = vmatpush3.bf16.msra.mxu0 %v8891_v7  ;;  %7859 = vmatpush3.bf16.msra.mxu1 %v8949_v22 }
 0x7b3   :  { %7854 = vmatprep.subr.bf16.mxu0 %v8555_v9  ;;  %7860 = vmatprep.subr.bf16.mxu1 %v8555_v9 }
 0x7b4   :  { %7337 = vmatprep.mubr.msk.f32.mxu0 %vm8556_vm1, %v8557_v21  ;;  %7348 = vmatprep.mubr.msk.f32.mxu1 %vm8556_vm1, %v8557_v21 }
 0x7b6   :  { %7856 = vmatpush3.bf16.msra.mxu0 %v8910_v13  ;;  %7862 = vmatpush3.bf16.msra.mxu1 %v8969_v28 }
 0x7b7   :  { %7863 = vmatprep.subr.bf16.mxu0 %v8555_v9  ;;  %7869 = vmatprep.subr.bf16.mxu1 %v8555_v9 }
 0x7b9   :  { %7338 = vmatmul.mubr.msk.f32.vlgmr.msra.gmra.mrb[56].mxu0 %vm403_vm2, %v9522_v19  ;;  %7349 = vmatmul.mubr.msk.f32.vlgmr.msra.gmra.mrb[52].mxu1 %vm403_vm2, %v9522_v19 }
 0x7ba   :  { %7865 = vmatpush3.bf16.msra.mxu0 %v8966_v27  ;;  %7359 = vmatprep.mubr.msk.f32.mxu0 %vm8556_vm1, %v8557_v21 }
 0x7bb   :  { %7866 = vmatprep.subr.bf16.mxu0 %v8555_v9  ;;  %7871 = vmatpush3.bf16.msra.mxu1 %v9004_v34 }
 0x7bc   :  { %7872 = vmatprep.subr.bf16.mxu1 %v8555_v9  ;;  %7370 = vmatprep.mubr.msk.f32.mxu1 %vm8556_vm1, %v8557_v21 }
 0x7be   :  { %7868 = vmatpush3.bf16.msra.mxu0 %v8986_v31 }
 0x7bf   :  { %7875 = vmatprep.subr.bf16.mxu0 %v8555_v9  ;;  %7874 = vmatpush3.bf16.msra.mxu1 %v9008_v37 }
 0x7c0   :  { %7881 = vmatprep.subr.bf16.mxu1 %v8555_v9 }
 0x7c1   :  { %7360 = vmatmul.mubr.msk.f32.vlgmr.msra.gmra.mrb[58].mxu0 %vm403_vm2, %v9522_v19 }
 0x7c2   :  { %7877 = vmatpush3.bf16.msra.mxu0 %v9012_v41  ;;  %7381 = vmatprep.mubr.msk.f32.mxu0 %vm8556_vm1, %v8557_v21 }
 0x7c3   :  { %7878 = vmatprep.subr.bf16.mxu0 %v8555_v9 }
 0x7c6   :  { %7880 = vmatpush3.bf16.msra.mxu0 %v9023_v47 }
 0x7c7   :  { %7887 = vmatprep.subr.bf16.mxu0 %v8555_v9 }
 0x87c   :  { %v4552_v10 = vpop.f32.mrb[54].mxu0  ;;  %v4625_v54 = vpop.f32.mrb[50].mxu1 }
 0x87d   :  { %v7295_v23 = vpop.f32.mrb[55].mxu0  ;;  %v7306_v30 = vpop.f32.mrb[51].mxu1  ;;  %v4553_v15 = vadd.f32 %v9588_v14, %v4552_v10  ;;  %v4626_v56 = vadd.f32 %v9591_v29, %v4625_v54 }
 0x884   :  { %v4695_v32 = vpop.f32.mrb[52].mxu0  ;;  %v4771_v33 = vpop.f32.mrb[48].mxu1 }
 0x885   :  { %v7969_v36 = vadd.f32 %v9582_v35, %v4695_v32  ;;  %v7317_v38 = vpop.f32.mrb[53].mxu0  ;;  %v7328_v5 = vpop.f32.mrb[49].mxu1  ;;  %v7970_v17 = vadd.f32 %v9585_v52, %v4771_v33  ;;  %v5013_v32 = vld [vmem:[#allocation4 + $0x30] sm:$0xff] }
 0x887   :  { %v6275_v39 = vmul.f32 -1.442695, %v7969_v36  ;;  %v6277_v50 = vmul.f32 -1.442695, %v7970_v17 }
 0x889   :  { %8137 = vpow2.f32 %v6275_v39 }
 0x88c   :  { %v4853_v26 = vpop.f32.mrb[56].mxu0  ;;  %v4923_v46 = vpop.f32.mrb[52].mxu1 }
 0x88d   :  { %v4998_v51 = vadd.f32 %v4997_v45, %v4853_v26  ;;  %v7339_v58 = vpop.f32.mrb[57].mxu0  ;;  %v7350_v60 = vpop.f32.mrb[53].mxu1  ;;  %v5006_v2 = vadd.f32 %v5005_v1, %v4923_v46 }
 0x88e   :  { %v5674_v58 = vld [vmem:[#allocation2 + $0x38] sm:$0xff] }
 0x88f   :  { %v6281_v63 = vmul.f32 -1.442695, %v4998_v51  ;;  %v6282_v4 = vmul.f32 -1.442695, %v5006_v2 }
 0x891   :  { %8139 = vpow2.f32 %v6281_v63 }
 0x892   :  { %8141 = vpow2.f32 %v6277_v50 }
 0x893   :  { %v8138_v62 = vpop.eup %8137 }
 0x894   :  { %v4702_v0 = vadd.f32 1.0, %v8138_v62  ;;  %v4993_v24 = vpop.f32.mrb[58].mxu0 }
 0x895   :  { %v7361_v57 = vpop.f32.mrb[59].mxu0  ;;  %v4994_v18 = vadd.f32 %v9501_v20, %v4993_v24 }
 0x896   :  { %8143 = vrcp.f32 %v4702_v0  ;;  %v5682_v57 = vld [vmem:[#allocation3 + $0x38] sm:$0xff] }
 0x897   :  { %8145 = vpow2.f32 %v6282_v4 }
 0x89b   :  { %v8140_v40 = vpop.eup %8139 }
 0x89c   :  { %v5002_v8 = vadd.f32 1.0, %v8140_v40  ;;  %v8142_v12 = vpop.eup %8141 }
 0x89d   :  { %v4778_v6 = vadd.f32 1.0, %v8142_v12 }
 0x89e   :  { %8147 = vrcp.f32 %v5002_v8 }
 0x8a0   :  { %v8144_v25 = vpop.eup %8143 }
 0x8a1   :  { %v4781_v11 = vmul.f32 %v8144_v25, %v4553_v15  ;;  %v8146_v3 = vpop.eup %8145 }
 0x8a2   :  { %v5010_v33 = vadd.f32 1.0, %v8146_v3 }
 0x8a3   :  { %v4782_v16 = vadd.f32 %v4781_v11, %v4626_v56 }
 0x8a5   :  { %8149 = vtanh.f32 %v4782_v16 }
 0x8a6   :  { %8151 = vrcp.f32 %v4778_v6 }
 0x8a8   :  { %v8148_v23 = vpop.eup %8147 }
 0x8a9   :  { %v5014_v30 = vmul.f32 %v8148_v23, %v4994_v18 }
 0x8ab   :  { %v5015_v36 = vadd.f32 %v5014_v30, %v5013_v32 }
 0x8ad   :  { %8153 = vtanh.f32 %v5015_v36 }
 0x8ae   :  { %8155 = vrcp.f32 %v5010_v33 }
 0x8af   :  { %v8150_v10 = vpop.eup %8149 }
 0x8b0   :  { %v4784_v38 = vsub.f32 %v9505_v44, %v8150_v10  ;;  %v8152_v5 = vpop.eup %8151 }
 0x8b2   :  { %v4785_v54 = vmul.f32 %v8152_v5, %v4784_v38 }
 0x8b4   :  { %v9596_v39 = vadd.f32 %v8150_v10, %v4785_v54  ;;  %v5690_v10 = vld [vmem:[#allocation4 + $0x38] sm:$0xff] }
 0x8b6   :  { %7371 = vmatmul.mubr.msk.f32.vlgmr.msra.gmra.mrb[54].mxu1 %vm403_vm2, %v9596_v39  ;;  %7382 = vmatmul.mubr.msk.f32.vlgmr.msra.gmra.mrb[60].mxu0 %vm403_vm2, %v9596_v39 }
 0x8b7   :  { %v8154_v26 = vpop.eup %8153  ;;  %7883 = vmatpush3.bf16.msra.mxu1 %v9015_v43  ;;  %7889 = vmatpush3.bf16.msra.mxu0 %v9034_v53 }
 0x8b8   :  { %v5017_v45 = vsub.f32 %v9522_v19, %v8154_v26  ;;  %7884 = vmatprep.subr.bf16.mxu1 %v8555_v9  ;;  %7890 = vmatprep.subr.bf16.mxu0 %v8555_v9  ;;  %v8156_v44 = vpop.eup %8155 }
 0x8b9   :  { %7392 = vmatprep.mubr.msk.f32.mxu1 %vm8556_vm1, %v8557_v21  ;;  %7403 = vmatprep.mubr.msk.f32.mxu0 %vm8556_vm1, %v8557_v21 }
 0x8ba   :  { %v5018_v46 = vmul.f32 %v8156_v44, %v5017_v45 }
 0x8bb   :  { %7886 = vmatpush3.bf16.msra.mxu1 %v9025_v49  ;;  %7892 = vmatpush3.bf16.msra.mxu0 %v9050_v59 }
 0x8bc   :  { %v9613_v17 = vadd.f32 %v8154_v26, %v5018_v46  ;;  %7893 = vmatprep.subr.bf16.mxu1 %v8555_v9  ;;  %7899 = vmatprep.subr.bf16.mxu0 %v8555_v9 }
 0x8be   :  { %7393 = vmatmul.mubr.msk.f32.vlgmr.msra.gmra.mrb[56].mxu1 %vm403_vm2, %v9596_v39  ;;  %7404 = vmatmul.mubr.msk.f32.vlgmr.msra.gmra.mrb[62].mxu0 %vm403_vm2, %v9613_v17 }
 0x8bf   :  { %7895 = vmatpush3.bf16.msra.mxu1 %v9040_v55  ;;  %7901 = vmatpush3.bf16.msra.mxu0 %v9098_v42 }
 0x8c0   :  { %7896 = vmatprep.subr.bf16.mxu1 %v8555_v9  ;;  %7902 = vmatprep.subr.bf16.mxu0 %v8555_v9 }
 0x8c1   :  { %7414 = vmatprep.mubr.msk.f32.mxu1 %vm8556_vm1, %v8557_v21  ;;  %7425 = vmatprep.mubr.msk.f32.mxu0 %vm8556_vm1, %v8557_v21 }
 0x8c3   :  { %7898 = vmatpush3.bf16.msra.mxu1 %v9057_v61  ;;  %7904 = vmatpush3.bf16.msra.mxu0 %v9114_v48 }
 0x8c4   :  { %7905 = vmatprep.subr.bf16.mxu1 %v8555_v9  ;;  %7911 = vmatprep.subr.bf16.mxu0 %v8555_v9 }
 0x8c6   :  { %7415 = vmatmul.mubr.msk.f32.vlgmr.msra.gmra.mrb[54].mxu1 %vm403_vm2, %v9613_v17  ;;  %7426 = vmatmul.mubr.msk.f32.vlgmr.msra.gmra.mrb[60].mxu0 %vm403_vm2, %v9613_v17 }
 0x8c7   :  { %7907 = vmatpush3.bf16.msra.mxu1 %v8891_v7  ;;  %7913 = vmatpush3.bf16.msra.mxu0 %v8949_v22 }
 0x8c8   :  { %7908 = vmatprep.subr.bf16.mxu1 %v8555_v9  ;;  %7914 = vmatprep.subr.bf16.mxu0 %v8555_v9 }
 0x8c9   :  { %7436 = vmatprep.mubr.msk.f32.mxu1 %vm8556_vm1, %v8557_v21  ;;  %7447 = vmatprep.mubr.msk.f32.mxu0 %vm8556_vm1, %v8557_v21 }
 0x8cb   :  { %7910 = vmatpush3.bf16.msra.mxu1 %v8910_v13  ;;  %7916 = vmatpush3.bf16.msra.mxu0 %v8969_v28 }
 0x8cc   :  { %7917 = vmatprep.subr.bf16.mxu1 %v8555_v9  ;;  %7923 = vmatprep.subr.bf16.mxu0 %v8555_v9 }
 0x8ce   :  { %7437 = vmatmul.mubr.msk.f32.vlgmr.msra.gmra.mrb[58].mxu1 %vm403_vm2, %v9613_v17  ;;  %7448 = vmatmul.mubr.msk.f32.vlgmr.msra.gmra.mrb[64].mxu0 %vm403_vm2, %v9613_v17 }
 0x8cf   :  { %7919 = vmatpush3.bf16.msra.mxu1 %v8966_v27  ;;  %7458 = vmatprep.mubr.msk.f32.mxu1 %vm8556_vm1, %v8557_v21 }
 0x8d0   :  { %7920 = vmatprep.subr.bf16.mxu1 %v8555_v9  ;;  %7925 = vmatpush3.bf16.msra.mxu0 %v9004_v34 }
 0x8d1   :  { %7926 = vmatprep.subr.bf16.mxu0 %v8555_v9  ;;  %7469 = vmatprep.mubr.msk.f32.mxu0 %vm8556_vm1, %v8557_v21 }
 0x8d3   :  { %7922 = vmatpush3.bf16.msra.mxu1 %v8986_v31 }
 0x8d4   :  { %7929 = vmatprep.subr.bf16.mxu1 %v8555_v9  ;;  %7928 = vmatpush3.bf16.msra.mxu0 %v9008_v37 }
 0x8d5   :  { %7935 = vmatprep.subr.bf16.mxu0 %v8555_v9 }
 0x8d6   :  { %7459 = vmatmul.mubr.msk.f32.vlgmr.msra.gmra.mrb[60].mxu1 %vm403_vm2, %v9613_v17 }
 0x8d7   :  { %7931 = vmatpush3.bf16.msra.mxu1 %v9012_v41  ;;  %7480 = vmatprep.mubr.msk.f32.mxu1 %vm8556_vm1, %v8557_v21 }
 0x8d8   :  { %7932 = vmatprep.subr.bf16.mxu1 %v8555_v9 }
 0x8db   :  { %7934 = vmatpush3.bf16.msra.mxu1 %v9023_v47 }
 0x8dc   :  { %7941 = vmatprep.subr.bf16.mxu1 %v8555_v9 }
 0x991   :  { %v5229_v7 = vpop.f32.mrb[56].mxu1  ;;  %v5302_v13 = vpop.f32.mrb[62].mxu0 }
 0x992   :  { %v7394_v22 = vpop.f32.mrb[57].mxu1  ;;  %v7405_v27 = vpop.f32.mrb[63].mxu0  ;;  %v5230_v11 = vadd.f32 %v9588_v14, %v5229_v7  ;;  %v5303_v6 = vadd.f32 %v9591_v29, %v5302_v13 }
 0x999   :  { %v5372_v28 = vpop.f32.mrb[54].mxu1  ;;  %v5448_v31 = vpop.f32.mrb[60].mxu0 }
 0x99a   :  { %v7971_v34 = vadd.f32 %v9582_v35, %v5372_v28  ;;  %v7416_v37 = vpop.f32.mrb[55].mxu1  ;;  %v7427_v19 = vpop.f32.mrb[61].mxu0  ;;  %v7972_v63 = vadd.f32 %v9585_v52, %v5448_v31 }
 0x99c   :  { %v6288_v41 = vmul.f32 -1.442695, %v7971_v34  ;;  %v6290_v1 = vmul.f32 -1.442695, %v7972_v63 }
 0x99e   :  { %8157 = vpow2.f32 %v6288_v41 }
 0x9a1   :  { %v5530_v51 = vpop.f32.mrb[58].mxu1  ;;  %v5600_v60 = vpop.f32.mrb[64].mxu0 }
 0x9a2   :  { %v5675_v47 = vadd.f32 %v5674_v58, %v5530_v51  ;;  %v7438_v50 = vpop.f32.mrb[59].mxu1  ;;  %v7449_v62 = vpop.f32.mrb[65].mxu0  ;;  %v5683_v40 = vadd.f32 %v5682_v57, %v5600_v60 }
 0x9a3   :  { %v6304_v50 = vld [vmem:[#allocation28] ss:$0 sm:$0xff] }
 0x9a4   :  { %v6294_v0 = vmul.f32 -1.442695, %v5675_v47  ;;  %v6295_v12 = vmul.f32 -1.442695, %v5683_v40 }
 0x9a6   :  { %8159 = vpow2.f32 %v6294_v0 }
 0x9a7   :  { %8161 = vpow2.f32 %v6290_v1 }
 0x9a8   :  { %v8158_v24 = vpop.eup %8157 }
 0x9a9   :  { %v5379_v2 = vadd.f32 1.0, %v8158_v24  ;;  %v5670_v4 = vpop.f32.mrb[60].mxu1  ;;  %v6305_v24 = vld [vmem:[#allocation5] ss:$0 sm:$0xff] }
 0x9aa   :  { %v7460_v8 = vpop.f32.mrb[61].mxu1  ;;  %v5671_v32 = vadd.f32 %v9501_v20, %v5670_v4 }
 0x9ab   :  { %8163 = vrcp.f32 %v5379_v2 }
 0x9ac   :  { %8165 = vpow2.f32 %v6295_v12 }
 0x9b0   :  { %v8160_v15 = vpop.eup %8159 }
 0x9b1   :  { %v5679_v25 = vadd.f32 1.0, %v8160_v15  ;;  %v8162_v56 = vpop.eup %8161 }
 0x9b2   :  { %v5455_v23 = vadd.f32 1.0, %v8162_v56 }
 0x9b3   :  { %8167 = vrcp.f32 %v5679_v25 }
 0x9b5   :  { %v8164_v16 = vpop.eup %8163 }
 0x9b6   :  { %v5458_v3 = vmul.f32 %v8164_v16, %v5230_v11  ;;  %v8166_v30 = vpop.eup %8165 }
 0x9b7   :  { %v5687_v38 = vadd.f32 1.0, %v8166_v30 }
 0x9b8   :  { %v5459_v18 = vadd.f32 %v5458_v3, %v5303_v6 }
 0x9ba   :  { %8169 = vtanh.f32 %v5459_v18 }
 0x9bb   :  { %8171 = vrcp.f32 %v5455_v23 }
 0x9bd   :  { %v8168_v33 = vpop.eup %8167 }
 0x9be   :  { %v5691_v36 = vmul.f32 %v8168_v33, %v5671_v32 }
 0x9c0   :  { %v5692_v5 = vadd.f32 %v5691_v36, %v5690_v10 }
 0x9c2   :  { %8173 = vtanh.f32 %v5692_v5 }
 0x9c3   :  { %8175 = vrcp.f32 %v5687_v38 }
 0x9c4   :  { %v8170_v54 = vpop.eup %8169 }
 0x9c5   :  { %v5461_v26 = vsub.f32 %v9596_v39, %v8170_v54  ;;  %v8172_v45 = vpop.eup %8171 }
 0x9c7   :  { %v5462_v44 = vmul.f32 %v8172_v45, %v5461_v26 }
 0x9c9   :  { %v5463_v46 = vadd.f32 %v8170_v54, %v5462_v44 }
 0x9cb   :  { %7470 = vmatmul.mubr.msk.f32.vlgmr.msra.gmra.mrb[66].mxu0 %vm403_vm2, %v5463_v46  ;;  %7481 = vmatmul.mubr.msk.f32.vlgmr.msra.gmra.mrb[62].mxu1 %vm403_vm2, %v5463_v46 }
 0x9cc   :  { %v8174_v7 = vpop.eup %8173  ;;  %7937 = vmatpush3.bf16.msra.mxu0 %v9015_v43  ;;  %7943 = vmatpush3.bf16.msra.mxu1 %v9034_v53 }
 0x9cd   :  { %7938 = vmatprep.subr.bf16.mxu0 %v8555_v9  ;;  %7944 = vmatprep.subr.bf16.mxu1 %v8555_v9  ;;  %v5694_v20 = vsub.f32 %v9613_v17, %v8174_v7  ;;  %v8176_v13 = vpop.eup %8175 }
 0x9ce   :  { %7491 = vmatprep.mubr.msk.f32.mxu0 %vm8556_vm1, %v8557_v21  ;;  %7502 = vmatprep.mubr.msk.f32.mxu1 %vm8556_vm1, %v8557_v21 }
 0x9cf   :  { %v5695_v39 = vmul.f32 %v8176_v13, %v5694_v20 }
 0x9d0   :  { %7940 = vmatpush3.bf16.msra.mxu0 %v9025_v49  ;;  %7946 = vmatpush3.bf16.msra.mxu1 %v9050_v59 }
 0x9d1   :  { %7947 = vmatprep.subr.bf16.mxu0 %v8555_v9  ;;  %7953 = vmatprep.subr.bf16.mxu1 %v8555_v9  ;;  %v5696_v43 = vadd.f32 %v8174_v7, %v5695_v39 }
 0x9d3   :  { %7492 = vmatmul.mubr.msk.f32.vlgmr.msra.gmra.mrb[68].mxu0 %vm403_vm2, %v5463_v46  ;;  %7503 = vmatmul.mubr.msk.f32.vlgmr.msra.gmra.mrb[64].mxu1 %vm403_vm2, %v5696_v43 }
 0x9d4   :  { %7949 = vmatpush3.bf16.msra.mxu0 %v9040_v55  ;;  %7955 = vmatpush3.bf16.msra.mxu1 %v9098_v42 }
 0x9d5   :  { %7950 = vmatprep.subr.bf16.mxu0 %v8555_v9  ;;  %7956 = vmatprep.subr.bf16.mxu1 %v8555_v9 }
 0x9d6   :  { %7513 = vmatprep.mubr.msk.f32.mxu0 %vm8556_vm1, %v8557_v21  ;;  %7524 = vmatprep.mubr.msk.f32.mxu1 %vm8556_vm1, %v8557_v21 }
 0x9d8   :  { %7952 = vmatpush3.bf16.msra.mxu0 %v9057_v61  ;;  %7958 = vmatpush3.bf16.msra.mxu1 %v9114_v48 }
 0x9db   :  { %7514 = vmatmul.mubr.msk.f32.vlgmr.msra.gmra.mrb[66].mxu0 %vm403_vm2, %v5696_v43  ;;  %7525 = vmatmul.mubr.msk.f32.vlgmr.msra.gmra.mrb[62].mxu1 %vm403_vm2, %v5696_v43 }
 0xaa6   :  { %v5906_v49 = vpop.f32.mrb[68].mxu0  ;;  %v5979_v53 = vpop.f32.mrb[64].mxu1 }
 0xaa7   :  { %v7493_v55 = vpop.f32.mrb[69].mxu0  ;;  %v7504_v59 = vpop.f32.mrb[65].mxu1  ;;  %v5907_v37 = vadd.f32 %v9588_v14, %v5906_v49  ;;  %v5980_v41 = vadd.f32 %v9591_v29, %v5979_v53 }
 0xaae   :  { %v6049_v42 = vpop.f32.mrb[66].mxu0  ;;  %v6125_v9 = vpop.f32.mrb[62].mxu1 }
 0xaaf   :  { %v7973_v17 = vadd.f32 %v9582_v35, %v6049_v42  ;;  %v7515_v22 = vpop.f32.mrb[67].mxu0  ;;  %v7526_v27 = vpop.f32.mrb[63].mxu1  ;;  %v7974_v21 = vadd.f32 %v9585_v52, %v6125_v9 }
 0xab1   :  { %v6301_v28 = vmul.f32 -1.442695, %v7973_v17  ;;  %v6303_v61 = vmul.f32 -1.442695, %v7974_v21 }
 0xab3   :  { %8177 = vpow2.f32 %v6301_v28 }
 0xab4   :  { %8179 = vpow2.f32 %v6303_v61 }
 0xabd   :  { %v8178_v48 = vpop.eup %8177 }
 0xabe   :  { %v6056_v31 = vadd.f32 1.0, %v8178_v48  ;;  %v8180_v34 = vpop.eup %8179 }
 0xabf   :  { %v6132_v58 = vadd.f32 1.0, %v8180_v34 }
 0xac0   :  { %8181 = vrcp.f32 %v6056_v31 }
 0xaca   :  { %v8182_v19 = vpop.eup %8181 }
 0xacb   :  { %v6135_v51 = vmul.f32 %v8182_v19, %v5907_v37 }
 0xacd   :  { %v6136_v35 = vadd.f32 %v6135_v51, %v5980_v41 }
 0xacf   :  { %8183 = vtanh.f32 %v6136_v35 }
 0xad0   :  { %8185 = vrcp.f32 %v6132_v58 }
 0xad9   :  { %v8184_v60 = vpop.eup %8183 }
 0xada   :  { %v6138_v63 = vsub.f32 %v5463_v46, %v8184_v60  ;;  %v8186_v47 = vpop.eup %8185 }
 0xadc   :  { %v6139_v52 = vmul.f32 %v8186_v47, %v6138_v63 }
 0xade   :  { %v6140_v62 = vadd.f32 %v8184_v60, %v6139_v52 }
 0xae0   :  { %v6148_v0 = vmul.f32 %v6304_v50, %v6140_v62 }
 0xae2   :  { %v6149_v1 = vsel %vm403_vm2, %v6148_v0, 0.0 }
 0xae3   :  { %6150 = vadd.xlane.f32.xlu0 %v6149_v1 }
 0xb70   :  { %v6151_v14 = vpop.xlane.xlu0 %6150 }
 0xb71   :  { %v6159_v2 = vadd.f32 %v6305_v24, %v6151_v14 }
 0xb73   :  { %6161 = vst.msk [vmem:[%s9739_s23] sm:$0xff] %vm6160_vm3, %v6159_v2 }
 0xb74   :  { %6166 = vsyncpa [#allocation7], 1 }
 0xb75   :  { %6167 = vsyncpa [#allocation9], 1 }
 0xb76   :  { %6168 = vsyncpa [#allocation12], 1 }
 0xb77   :  { %6169 = vsyncpa [#allocation15], 1 }
 0xb78   :  { %6170 = vsyncpa [#allocation18], 1 }
 0xb79   :  { %6171 = vsyncpa [#allocation21], 1 }
 0xb7a   :  { %6172 = vsyncpa [#allocation24], 1 }
 0xb7b   :  { %6173 = vsyncpa [#allocation27], 1 }

</bundles_post_ra>
